<compile_context>
chip_gen: v7x
topology: tpu7x:2x2x1
jax: 0.10.0
libtpu: 0.0.40
codegen_flags: <defaults>
</compile_context>

<pallas_src>
import jax
import jax.numpy as jnp
from jax import lax
from jax.experimental import pallas as pl
from jax.experimental.pallas import tpu as pltpu


# ----------------------------------------------------------------------------
# Pallas kernel: one grid step == TS timesteps of the 2-layer recurrence.
# ----------------------------------------------------------------------------
def _lstm_recurrent_kernel(g0_ref,    # (TS, Bp, 4Hp)  precomputed x@Wih0 + b0
                           whh0_ref,  # (Hp, 4Hp)      matmul dtype
                           wih1_ref,  # (Hp, 4Hp)
                           whh1_ref,  # (Hp, 4Hp)
                           b1_ref,    # (1, 4Hp)       f32
                           out_ref,   # (Bp, Hp) f32   doubles as the h1 carry
                           h0, c0, c1):  # VMEM f32 scratch, each (Bp, Hp)
    Bp, Hp = h0.shape
    TS = g0_ref.shape[0]
    mm_dtype = whh0_ref.dtype

    @pl.when(pl.program_id(0) == 0)
    def _init():
        h0[...] = jnp.zeros_like(h0)
        c0[...] = jnp.zeros_like(c0)
        c1[...] = jnp.zeros_like(c1)
        out_ref[...] = jnp.zeros_like(out_ref)   # h1 carry lives in out_ref

    # Constant operands: load once per chunk, hoisted out of the step loop.
    whh0 = whh0_ref[...]
    wih1 = wih1_ref[...]
    whh1 = whh1_ref[...]
    # JAX does not CSE broadcast_in_dim: hoist the (1,4Hp)->(Bp,4Hp) broadcast
    # so the unrolled loop does not re-emit it every iteration.
    b1b = jnp.broadcast_to(b1_ref[...].astype(jnp.float32), (Bp, 4 * Hp))

    def sigmoid(v):
        # One EUP push (tanh) instead of exp + reciprocal.
        return 0.5 * jnp.tanh(0.5 * v) + 0.5

    def gate_combine(gates, c):
        # PyTorch gate order [i, f, g, o]; each slice is a full 128-lane block.
        i = sigmoid(gates[:, 0 * Hp:1 * Hp])
        f = sigmoid(gates[:, 1 * Hp:2 * Hp])
        g = jnp.tanh(gates[:, 2 * Hp:3 * Hp])
        o = sigmoid(gates[:, 3 * Hp:4 * Hp])
        c_new = f * c + i * g
        h_new = o * jnp.tanh(c_new)
        return h_new, c_new

    def step(s, carry):
        h0v, c0v, h1v, c1v = carry
        # Layer 0: input projection hoisted; only the recurrent matmul left.
        gates0 = (g0_ref[s].astype(jnp.float32)
                  + jnp.dot(h0v.astype(mm_dtype), whh0,
                            preferred_element_type=jnp.float32))
        h0v, c0v = gate_combine(gates0, c0v)
        # Layer 1: two dots (no concat materialization), f32 accumulation.
        gates1 = (jnp.dot(h0v.astype(mm_dtype), wih1,
                          preferred_element_type=jnp.float32)
                  + jnp.dot(h1v.astype(mm_dtype), whh1,
                            preferred_element_type=jnp.float32)
                  + b1b)
        h1v, c1v = gate_combine(gates1, c1v)
        return h0v, c0v, h1v, c1v

    unroll = TS if TS <= 8 else 4   # cap unroll so big chunks don't spill vregs
    h0v, c0v, h1v, c1v = lax.fori_loop(
        0, TS, step, (h0[...], c0[...], out_ref[...], c1[...]), unroll=unroll)

    # One scratch write per state per chunk; out_ref carries the top-layer h.
    h0[...] = h0v
    c0[...] = c0v
    c1[...] = c1v
    out_ref[...] = h1v


# ----------------------------------------------------------------------------
# Padding helpers: pad hidden dim H -> Hp (multiple of 128), per gate block,
# with zeros so the padded hidden units stay exactly 0 through the recurrence.
# ----------------------------------------------------------------------------
def _pad_gate_cols(w, H, Hp):
    lead = w.shape[:-1]
    w4 = w.reshape(*lead, 4, H)
    w4 = jnp.pad(w4, [(0, 0)] * len(lead) + [(0, 0), (0, Hp - H)])
    return w4.reshape(*lead, 4 * Hp)


def _pad_rows(w, H, Hp):
    return jnp.pad(w, [(0, Hp - H)] + [(0, 0)] * (w.ndim - 1))


def _pick_chunk(T, max_chunk):
    # Largest divisor of T that is <= max_chunk.
    # TODO(synk): support a ragged last chunk (prime T currently degrades to 1).
    for ts in range(min(T, max_chunk), 0, -1):
        if T % ts == 0:
            return ts
    return 1


# ----------------------------------------------------------------------------
# Wrapper: hoisted layer-0 projection + Pallas recurrence + final FC.
# ----------------------------------------------------------------------------
def lstm_regressor_pallas(x, params, *, time_chunk=8, mm_dtype=jnp.bfloat16):
    """x: (B, T, D) float32 (batch_first, like PyTorch). Returns (B, 1)."""
    B, T, D = x.shape
    H = params["whh0"].shape[0]
    Hp = ((H + 127) // 128) * 128
    Bp = max(8, ((B + 7) // 8) * 8)      # sublane-align the batch
    TS = _pick_chunk(T, time_chunk)

    x_p = jnp.pad(x.astype(jnp.float32), ((0, Bp - B), (0, 0), (0, 0)))

    # ---- pad params per gate to the lane-aligned hidden width Hp ----
    wih0_p = _pad_gate_cols(params["wih0"], H, Hp)                    # (D, 4Hp)
    b0_p = _pad_gate_cols(params["b0"], H, Hp)                        # (1, 4Hp)
    whh0_p = _pad_rows(_pad_gate_cols(params["whh0"], H, Hp), H, Hp)  # (Hp,4Hp)
    wih1_p = _pad_rows(_pad_gate_cols(params["wih1"], H, Hp), H, Hp)  # (Hp,4Hp)
    whh1_p = _pad_rows(_pad_gate_cols(params["whh1"], H, Hp), H, Hp)  # (Hp,4Hp)
    b1_p = _pad_gate_cols(params["b1"], H, Hp)                        # (1, 4Hp)

    # Recurrent weights in the matmul dtype (bf16 halves weight VMEM residency
    # and the per-step MXU weight stream); accumulation stays f32 in-kernel.
    whh0_m = whh0_p.astype(mm_dtype)
    wih1_m = wih1_p.astype(mm_dtype)
    whh1_m = whh1_p.astype(mm_dtype)

    # Hoisted layer-0 input projection (f32 in XLA), streamed time-major in
    # mm_dtype: the only HBM stream the kernel reads.
    g0 = (jnp.einsum("btd,dg->tbg", x_p, wih0_p) + b0_p).astype(mm_dtype)

    # VMEM budget: single-buffered weights + double-buffered g0 chunk + states.
    mm_bytes = jnp.dtype(mm_dtype).itemsize
    est = (3 * Hp * 4 * Hp * mm_bytes          # whh0, wih1, whh1 (1 buffer each)
           + 4 * Hp * 4                        # b1
           + 2 * TS * Bp * 4 * Hp * mm_bytes   # g0 chunk, double-buffered
           + 4 * Bp * Hp * 4)                  # h0/c0/c1 scratch + out_ref
    vmem_limit = int(min(max(2 * est, 16 << 20), 96 << 20))

    const2 = lambda i: (0, 0)
    weight_spec = lambda shape: pl.BlockSpec(
        shape, const2, pipeline_mode=pl.Buffered(1))   # constant -> 1 buffer

    grid_spec = pltpu.PrefetchScalarGridSpec(
        num_scalar_prefetch=0,
        grid=(T // TS,),
        in_specs=[
            pl.BlockSpec((TS, Bp, 4 * Hp), lambda i: (i, 0, 0)),  # g0 chunk
            weight_spec((Hp, 4 * Hp)),        # whh0
            weight_spec((Hp, 4 * Hp)),        # wih1
            weight_spec((Hp, 4 * Hp)),        # whh1
            weight_spec((1, 4 * Hp)),         # b1
        ],
        out_specs=pl.BlockSpec((Bp, Hp), const2),
        scratch_shapes=[pltpu.VMEM((Bp, Hp), jnp.float32)] * 3,
    )

    # TODO(synk): on v7x, add a leading parallel batch grid axis to split the
    # recurrence across the 2 TensorCores once B/2 >= 8 sublanes.
    h1_last = pl.pallas_call(
        _lstm_recurrent_kernel,
        out_shape=jax.ShapeDtypeStruct((Bp, Hp), jnp.float32),
        grid_spec=grid_spec,
        compiler_params=pltpu.CompilerParams(
            dimension_semantics=("arbitrary",),   # time chunks are sequential
            vmem_limit_bytes=vmem_limit),
    )(g0, whh0_m, wih1_m, whh1_m, b1_p)

    # Final FC on the last timestep's top-layer hidden state (XLA; degenerate
    # (B,H)x(H,1) matmul has no business on the MXU / in the kernel epilogue).
    return h1_last[:B, :H] @ params["wfc"] + params["bfc"]


# ----------------------------------------------------------------------------
# Deterministic parameter init (matches nn.LSTM / nn.Linear shapes; PyTorch
# uses U(-1/sqrt(H), 1/sqrt(H)) and sums the two LSTM bias vectors).
# ----------------------------------------------------------------------------
def init_params(key, input_dim, hidden_dim):
    H = hidden_dim
    bound = 1.0 / (H ** 0.5)
    ks = jax.random.split(key, 10)
    u = lambda k, shape: jax.random.uniform(k, shape, jnp.float32, -bound, bound)

    wih0 = u(ks[0], (4 * H, input_dim))
    whh0 = u(ks[1], (4 * H, H))
    b0 = u(ks[2], (4 * H,)) + u(ks[3], (4 * H,))
    wih1 = u(ks[4], (4 * H, H))
    whh1 = u(ks[5], (4 * H, H))
    b1 = u(ks[6], (4 * H,)) + u(ks[7], (4 * H,))
    wfc = u(ks[8], (1, H))
    bfc = u(ks[9], (1,))

    return {
        "wih0": wih0.T, "whh0": whh0.T, "b0": b0.reshape(1, 4 * H),
        "wih1": wih1.T, "whh1": whh1.T, "b1": b1.reshape(1, 4 * H),
        "wfc": wfc.T, "bfc": bfc.reshape(1, 1),
    }


# ----------------------------------------------------------------------------
# Pure-JAX reference (lax.scan) for verification.
# ----------------------------------------------------------------------------
def lstm_regressor_ref(x, params):
    B, T, D = x.shape
    H = params["whh0"].shape[0]

    def cell(x_t, h, c, wih, whh, b):
        gates = x_t @ wih + h @ whh + b
        i = jax.nn.sigmoid(gates[:, 0 * H:1 * H])
        f = jax.nn.sigmoid(gates[:, 1 * H:2 * H])
        g = jnp.tanh(gates[:, 2 * H:3 * H])
        o = jax.nn.sigmoid(gates[:, 3 * H:4 * H])
        c_new = f * c + i * g
        return o * jnp.tanh(c_new), c_new

    def step(carry, x_t):
        h0, c0, h1, c1 = carry
        h0, c0 = cell(x_t, h0, c0, params["wih0"], params["whh0"], params["b0"])
        h1, c1 = cell(h0, h1, c1, params["wih1"], params["whh1"], params["b1"])
        return (h0, c0, h1, c1), None

    zeros = jnp.zeros((B, H), jnp.float32)
    (_, _, h1, _), _ = lax.scan(step, (zeros, zeros, zeros, zeros),
                                jnp.transpose(x, (1, 0, 2)))
    return h1 @ params["wfc"] + params["bfc"]


if __name__ == "__main__":
    B, T, D, H = 2, 8, 16, 64  # batch, seq, input_dim, hidden_dim (nn default)

    key = jax.random.PRNGKey(0)
    kx, kp = jax.random.split(key)
    x = jax.random.normal(kx, (B, T, D), jnp.float32)
    params = init_params(kp, D, H)

    ref = jax.block_until_ready(lstm_regressor_ref(x, params))

    # f32 matmul path: parity with the f32 reference (tolerance covers the
    # TPU default-matmul-precision difference between XLA and Mosaic).
    out_f32 = jax.block_until_ready(
        lstm_regressor_pallas(x, params, mm_dtype=jnp.float32))
    assert out_f32.shape == (B, 1)
    assert jnp.allclose(out_f32, ref, atol=2e-2, rtol=2e-2), (out_f32, ref)

    # bf16 matmul path (production config per perf review): looser tolerance.
    out_bf16 = jax.block_until_ready(
        lstm_regressor_pallas(x, params, mm_dtype=jnp.bfloat16))
    assert out_bf16.shape == (B, 1)
    assert jnp.allclose(out_bf16, ref, atol=5e-2, rtol=5e-2), (out_bf16, ref)

    print("KERNEL_OK")
</pallas_src>

<mosaic_0001>
module attributes {stable_mosaic.version = 11 : i64} {
  func.func @_lstm_recurrent_kernel(%arg0: i32, %arg1: memref<8x8x512xf32, #tpu.memory_space<vmem>>, %arg2: memref<128x512xf32, #tpu.memory_space<vmem>>, %arg3: memref<128x512xf32, #tpu.memory_space<vmem>>, %arg4: memref<128x512xf32, #tpu.memory_space<vmem>>, %arg5: memref<1x512xf32, #tpu.memory_space<vmem>>, %arg6: memref<8x128xf32, #tpu.memory_space<vmem>>, %arg7: memref<8x128xf32, #tpu.memory_space<vmem>>, %arg8: memref<8x128xf32, #tpu.memory_space<vmem>>, %arg9: memref<8x128xf32, #tpu.memory_space<vmem>>) attributes {dimension_semantics = [#tpu.dimension_semantics<arbitrary>], iteration_bounds = array<i64: 1>, scalar_prefetch = 0 : i64, scratch_operands = 3 : i64, tpu.core_type = #tpu.core_type<tc>, window_params = [{transform_indices = @transform_0, window_bounds = array<i64: 8, 8, 512>}, {pipeline_mode = #tpu.pipeline_mode<synchronous>, transform_indices = @transform_1, window_bounds = array<i64: 128, 512>}, {pipeline_mode = #tpu.pipeline_mode<synchronous>, transform_indices = @transform_2, window_bounds = array<i64: 128, 512>}, {pipeline_mode = #tpu.pipeline_mode<synchronous>, transform_indices = @transform_3, window_bounds = array<i64: 128, 512>}, {pipeline_mode = #tpu.pipeline_mode<synchronous>, transform_indices = @transform_4, window_bounds = array<i64: 1, 512>}, {pipeline_mode = #tpu.pipeline_mode<synchronous>, transform_indices = @transform_5, window_bounds = array<i64: 8, 128>}]} {
    %c0_i32 = arith.constant 0 : i32
    %0 = arith.cmpi eq, %arg0, %c0_i32 : i32
    %1 = arith.extui %0 : i1 to i32
    %c0_i32_0 = arith.constant 0 : i32
    %2 = arith.cmpi ne, %1, %c0_i32_0 : i32
    scf.if %2 {
      %cst_208 = arith.constant 0.000000e+00 : f32
      %585 = vector.broadcast %cst_208 : f32 to vector<8x128xf32>
      %c0_209 = arith.constant 0 : index
      %c0_210 = arith.constant 0 : index
      %586 = vector.load %arg7[%c0_209, %c0_210] : memref<8x128xf32, #tpu.memory_space<vmem>>, vector<8x128xf32>
      tpu.vector_store %arg7[%c0_209, %c0_210], %585 {strides = array<i32>} : memref<8x128xf32, #tpu.memory_space<vmem>>, vector<8x128xf32>,
      %cst_211 = arith.constant 0.000000e+00 : f32
      %587 = vector.broadcast %cst_211 : f32 to vector<8x128xf32>
      %c0_212 = arith.constant 0 : index
      %c0_213 = arith.constant 0 : index
      %588 = vector.load %arg8[%c0_212, %c0_213] : memref<8x128xf32, #tpu.memory_space<vmem>>, vector<8x128xf32>
      tpu.vector_store %arg8[%c0_212, %c0_213], %587 {strides = array<i32>} : memref<8x128xf32, #tpu.memory_space<vmem>>, vector<8x128xf32>,
      %cst_214 = arith.constant 0.000000e+00 : f32
      %589 = vector.broadcast %cst_214 : f32 to vector<8x128xf32>
      %c0_215 = arith.constant 0 : index
      %c0_216 = arith.constant 0 : index
      %590 = vector.load %arg9[%c0_215, %c0_216] : memref<8x128xf32, #tpu.memory_space<vmem>>, vector<8x128xf32>
      tpu.vector_store %arg9[%c0_215, %c0_216], %589 {strides = array<i32>} : memref<8x128xf32, #tpu.memory_space<vmem>>, vector<8x128xf32>,
      %cst_217 = arith.constant 0.000000e+00 : f32
      %591 = vector.broadcast %cst_217 : f32 to vector<8x128xf32>
      %c0_218 = arith.constant 0 : index
      %c0_219 = arith.constant 0 : index
      %592 = vector.load %arg6[%c0_218, %c0_219] : memref<8x128xf32, #tpu.memory_space<vmem>>, vector<8x128xf32>
      tpu.vector_store %arg6[%c0_218, %c0_219], %591 {strides = array<i32>} : memref<8x128xf32, #tpu.memory_space<vmem>>, vector<8x128xf32>,
    } else {
    }
    %c0 = arith.constant 0 : index
    %c0_1 = arith.constant 0 : index
    %3 = vector.load %arg2[%c0, %c0_1] : memref<128x512xf32, #tpu.memory_space<vmem>>, vector<128x512xf32>
    %c0_2 = arith.constant 0 : index
    %c0_3 = arith.constant 0 : index
    %4 = vector.load %arg3[%c0_2, %c0_3] : memref<128x512xf32, #tpu.memory_space<vmem>>, vector<128x512xf32>
    %c0_4 = arith.constant 0 : index
    %c0_5 = arith.constant 0 : index
    %5 = vector.load %arg4[%c0_4, %c0_5] : memref<128x512xf32, #tpu.memory_space<vmem>>, vector<128x512xf32>
    %c0_6 = arith.constant 0 : index
    %c0_7 = arith.constant 0 : index
    %6 = vector.load %arg5[%c0_6, %c0_7] : memref<1x512xf32, #tpu.memory_space<vmem>>, vector<1x512xf32>
    %7 = vector.shape_cast %6 : vector<1x512xf32> to vector<1x512xf32>
    %8 = vector.broadcast %7 : vector<1x512xf32> to vector<8x512xf32>
    %c0_8 = arith.constant 0 : index
    %c0_9 = arith.constant 0 : index
    %9 = vector.load %arg7[%c0_8, %c0_9] : memref<8x128xf32, #tpu.memory_space<vmem>>, vector<8x128xf32>
    %c0_10 = arith.constant 0 : index
    %c0_11 = arith.constant 0 : index
    %10 = vector.load %arg8[%c0_10, %c0_11] : memref<8x128xf32, #tpu.memory_space<vmem>>, vector<8x128xf32>
    %c0_12 = arith.constant 0 : index
    %c0_13 = arith.constant 0 : index
    %11 = vector.load %arg6[%c0_12, %c0_13] : memref<8x128xf32, #tpu.memory_space<vmem>>, vector<8x128xf32>
    %c0_14 = arith.constant 0 : index
    %c0_15 = arith.constant 0 : index
    %12 = vector.load %arg9[%c0_14, %c0_15] : memref<8x128xf32, #tpu.memory_space<vmem>>, vector<8x128xf32>
    %c0_i32_16 = arith.constant 0 : i32
    %13 = arith.index_cast %c0_i32_16 : i32 to index
    %c0_17 = arith.constant 0 : index
    %c0_18 = arith.constant 0 : index
    %14 = vector.load %arg1[%13, %c0_17, %c0_18] : memref<8x8x512xf32, #tpu.memory_space<vmem>>, vector<1x8x512xf32>
    %15 = vector.shape_cast %14 : vector<1x8x512xf32> to vector<8x512xf32>
    %cst = arith.constant dense<0.000000e+00> : vector<8x512xf32>
    %16 = tpu.matmul %9, %3, %cst {dimension_numbers = #tpu.dot_dimension_numbers<[1], [0], [0], [1], [0, 0, 1, 1], [], []>} : vector<8x128xf32>, vector<128x512xf32>, vector<8x512xf32> -> vector<8x512xf32>
    %17 = arith.addf %15, %16 : vector<8x512xf32>
    %18 = vector.extract_strided_slice %17 {offsets = [0, 0], sizes = [8, 128], strides = [1, 1]} : vector<8x512xf32> to vector<8x128xf32>
    %cst_19 = arith.constant 5.000000e-01 : f32
    %19 = vector.broadcast %cst_19 : f32 to vector<8x128xf32>
    %20 = arith.mulf %19, %18 : vector<8x128xf32>
    %21 = math.tanh %20 : vector<8x128xf32>
    %cst_20 = arith.constant 5.000000e-01 : f32
    %22 = vector.broadcast %cst_20 : f32 to vector<8x128xf32>
    %23 = arith.mulf %22, %21 : vector<8x128xf32>
    %cst_21 = arith.constant 5.000000e-01 : f32
    %24 = vector.broadcast %cst_21 : f32 to vector<8x128xf32>
    %25 = arith.addf %23, %24 : vector<8x128xf32>
    %26 = vector.extract_strided_slice %17 {offsets = [0, 128], sizes = [8, 128], strides = [1, 1]} : vector<8x512xf32> to vector<8x128xf32>
    %cst_22 = arith.constant 5.000000e-01 : f32
    %27 = vector.broadcast %cst_22 : f32 to vector<8x128xf32>
    %28 = arith.mulf %27, %26 : vector<8x128xf32>
    %29 = math.tanh %28 : vector<8x128xf32>
    %cst_23 = arith.constant 5.000000e-01 : f32
    %30 = vector.broadcast %cst_23 : f32 to vector<8x128xf32>
    %31 = arith.mulf %30, %29 : vector<8x128xf32>
    %cst_24 = arith.constant 5.000000e-01 : f32
    %32 = vector.broadcast %cst_24 : f32 to vector<8x128xf32>
    %33 = arith.addf %31, %32 : vector<8x128xf32>
    %34 = vector.extract_strided_slice %17 {offsets = [0, 256], sizes = [8, 128], strides = [1, 1]} : vector<8x512xf32> to vector<8x128xf32>
    %35 = math.tanh %34 : vector<8x128xf32>
    %36 = vector.extract_strided_slice %17 {offsets = [0, 384], sizes = [8, 128], strides = [1, 1]} : vector<8x512xf32> to vector<8x128xf32>
    %cst_25 = arith.constant 5.000000e-01 : f32
    %37 = vector.broadcast %cst_25 : f32 to vector<8x128xf32>
    %38 = arith.mulf %37, %36 : vector<8x128xf32>
    %39 = math.tanh %38 : vector<8x128xf32>
    %cst_26 = arith.constant 5.000000e-01 : f32
    %40 = vector.broadcast %cst_26 : f32 to vector<8x128xf32>
    %41 = arith.mulf %40, %39 : vector<8x128xf32>
    %cst_27 = arith.constant 5.000000e-01 : f32
    %42 = vector.broadcast %cst_27 : f32 to vector<8x128xf32>
    %43 = arith.addf %41, %42 : vector<8x128xf32>
    %44 = arith.mulf %33, %10 : vector<8x128xf32>
    %45 = arith.mulf %25, %35 : vector<8x128xf32>
    %46 = arith.addf %44, %45 : vector<8x128xf32>
    %47 = math.tanh %46 : vector<8x128xf32>
    %48 = arith.mulf %43, %47 : vector<8x128xf32>
    %cst_28 = arith.constant dense<0.000000e+00> : vector<8x512xf32>
    %49 = tpu.matmul %48, %4, %cst_28 {dimension_numbers = #tpu.dot_dimension_numbers<[1], [0], [0], [1], [0, 0, 1, 1], [], []>} : vector<8x128xf32>, vector<128x512xf32>, vector<8x512xf32> -> vector<8x512xf32>
    %cst_29 = arith.constant dense<0.000000e+00> : vector<8x512xf32>
    %50 = tpu.matmul %11, %5, %cst_29 {dimension_numbers = #tpu.dot_dimension_numbers<[1], [0], [0], [1], [0, 0, 1, 1], [], []>} : vector<8x128xf32>, vector<128x512xf32>, vector<8x512xf32> -> vector<8x512xf32>
    %51 = arith.addf %49, %50 : vector<8x512xf32>
    %52 = arith.addf %51, %8 : vector<8x512xf32>
    %53 = vector.extract_strided_slice %52 {offsets = [0, 0], sizes = [8, 128], strides = [1, 1]} : vector<8x512xf32> to vector<8x128xf32>
    %cst_30 = arith.constant 5.000000e-01 : f32
    %54 = vector.broadcast %cst_30 : f32 to vector<8x128xf32>
    %55 = arith.mulf %54, %53 : vector<8x128xf32>
    %56 = math.tanh %55 : vector<8x128xf32>
    %cst_31 = arith.constant 5.000000e-01 : f32
    %57 = vector.broadcast %cst_31 : f32 to vector<8x128xf32>
    %58 = arith.mulf %57, %56 : vector<8x128xf32>
    %cst_32 = arith.constant 5.000000e-01 : f32
    %59 = vector.broadcast %cst_32 : f32 to vector<8x128xf32>
    %60 = arith.addf %58, %59 : vector<8x128xf32>
    %61 = vector.extract_strided_slice %52 {offsets = [0, 128], sizes = [8, 128], strides = [1, 1]} : vector<8x512xf32> to vector<8x128xf32>
    %cst_33 = arith.constant 5.000000e-01 : f32
    %62 = vector.broadcast %cst_33 : f32 to vector<8x128xf32>
    %63 = arith.mulf %62, %61 : vector<8x128xf32>
    %64 = math.tanh %63 : vector<8x128xf32>
    %cst_34 = arith.constant 5.000000e-01 : f32
    %65 = vector.broadcast %cst_34 : f32 to vector<8x128xf32>
    %66 = arith.mulf %65, %64 : vector<8x128xf32>
    %cst_35 = arith.constant 5.000000e-01 : f32
    %67 = vector.broadcast %cst_35 : f32 to vector<8x128xf32>
    %68 = arith.addf %66, %67 : vector<8x128xf32>
    %69 = vector.extract_strided_slice %52 {offsets = [0, 256], sizes = [8, 128], strides = [1, 1]} : vector<8x512xf32> to vector<8x128xf32>
    %70 = math.tanh %69 : vector<8x128xf32>
    %71 = vector.extract_strided_slice %52 {offsets = [0, 384], sizes = [8, 128], strides = [1, 1]} : vector<8x512xf32> to vector<8x128xf32>
    %cst_36 = arith.constant 5.000000e-01 : f32
    %72 = vector.broadcast %cst_36 : f32 to vector<8x128xf32>
    %73 = arith.mulf %72, %71 : vector<8x128xf32>
    %74 = math.tanh %73 : vector<8x128xf32>
    %cst_37 = arith.constant 5.000000e-01 : f32
    %75 = vector.broadcast %cst_37 : f32 to vector<8x128xf32>
    %76 = arith.mulf %75, %74 : vector<8x128xf32>
    %cst_38 = arith.constant 5.000000e-01 : f32
    %77 = vector.broadcast %cst_38 : f32 to vector<8x128xf32>
    %78 = arith.addf %76, %77 : vector<8x128xf32>
    %79 = arith.mulf %68, %12 : vector<8x128xf32>
    %80 = arith.mulf %60, %70 : vector<8x128xf32>
    %81 = arith.addf %79, %80 : vector<8x128xf32>
    %82 = math.tanh %81 : vector<8x128xf32>
    %83 = arith.mulf %78, %82 : vector<8x128xf32>
    %c1_i32 = arith.constant 1 : i32
    %84 = arith.index_cast %c1_i32 : i32 to index
    %c0_39 = arith.constant 0 : index
    %c0_40 = arith.constant 0 : index
    %85 = vector.load %arg1[%84, %c0_39, %c0_40] : memref<8x8x512xf32, #tpu.memory_space<vmem>>, vector<1x8x512xf32>
    %86 = vector.shape_cast %85 : vector<1x8x512xf32> to vector<8x512xf32>
    %cst_41 = arith.constant dense<0.000000e+00> : vector<8x512xf32>
    %87 = tpu.matmul %48, %3, %cst_41 {dimension_numbers = #tpu.dot_dimension_numbers<[1], [0], [0], [1], [0, 0, 1, 1], [], []>} : vector<8x128xf32>, vector<128x512xf32>, vector<8x512xf32> -> vector<8x512xf32>
    %88 = arith.addf %86, %87 : vector<8x512xf32>
    %89 = vector.extract_strided_slice %88 {offsets = [0, 0], sizes = [8, 128], strides = [1, 1]} : vector<8x512xf32> to vector<8x128xf32>
    %cst_42 = arith.constant 5.000000e-01 : f32
    %90 = vector.broadcast %cst_42 : f32 to vector<8x128xf32>
    %91 = arith.mulf %90, %89 : vector<8x128xf32>
    %92 = math.tanh %91 : vector<8x128xf32>
    %cst_43 = arith.constant 5.000000e-01 : f32
    %93 = vector.broadcast %cst_43 : f32 to vector<8x128xf32>
    %94 = arith.mulf %93, %92 : vector<8x128xf32>
    %cst_44 = arith.constant 5.000000e-01 : f32
    %95 = vector.broadcast %cst_44 : f32 to vector<8x128xf32>
    %96 = arith.addf %94, %95 : vector<8x128xf32>
    %97 = vector.extract_strided_slice %88 {offsets = [0, 128], sizes = [8, 128], strides = [1, 1]} : vector<8x512xf32> to vector<8x128xf32>
    %cst_45 = arith.constant 5.000000e-01 : f32
    %98 = vector.broadcast %cst_45 : f32 to vector<8x128xf32>
    %99 = arith.mulf %98, %97 : vector<8x128xf32>
    %100 = math.tanh %99 : vector<8x128xf32>
    %cst_46 = arith.constant 5.000000e-01 : f32
    %101 = vector.broadcast %cst_46 : f32 to vector<8x128xf32>
    %102 = arith.mulf %101, %100 : vector<8x128xf32>
    %cst_47 = arith.constant 5.000000e-01 : f32
    %103 = vector.broadcast %cst_47 : f32 to vector<8x128xf32>
    %104 = arith.addf %102, %103 : vector<8x128xf32>
    %105 = vector.extract_strided_slice %88 {offsets = [0, 256], sizes = [8, 128], strides = [1, 1]} : vector<8x512xf32> to vector<8x128xf32>
    %106 = math.tanh %105 : vector<8x128xf32>
    %107 = vector.extract_strided_slice %88 {offsets = [0, 384], sizes = [8, 128], strides = [1, 1]} : vector<8x512xf32> to vector<8x128xf32>
    %cst_48 = arith.constant 5.000000e-01 : f32
    %108 = vector.broadcast %cst_48 : f32 to vector<8x128xf32>
    %109 = arith.mulf %108, %107 : vector<8x128xf32>
    %110 = math.tanh %109 : vector<8x128xf32>
    %cst_49 = arith.constant 5.000000e-01 : f32
    %111 = vector.broadcast %cst_49 : f32 to vector<8x128xf32>
    %112 = arith.mulf %111, %110 : vector<8x128xf32>
    %cst_50 = arith.constant 5.000000e-01 : f32
    %113 = vector.broadcast %cst_50 : f32 to vector<8x128xf32>
    %114 = arith.addf %112, %113 : vector<8x128xf32>
    %115 = arith.mulf %104, %46 : vector<8x128xf32>
    %116 = arith.mulf %96, %106 : vector<8x128xf32>
    %117 = arith.addf %115, %116 : vector<8x128xf32>
    %118 = math.tanh %117 : vector<8x128xf32>
    %119 = arith.mulf %114, %118 : vector<8x128xf32>
    %cst_51 = arith.constant dense<0.000000e+00> : vector<8x512xf32>
    %120 = tpu.matmul %119, %4, %cst_51 {dimension_numbers = #tpu.dot_dimension_numbers<[1], [0], [0], [1], [0, 0, 1, 1], [], []>} : vector<8x128xf32>, vector<128x512xf32>, vector<8x512xf32> -> vector<8x512xf32>
    %cst_52 = arith.constant dense<0.000000e+00> : vector<8x512xf32>
    %121 = tpu.matmul %83, %5, %cst_52 {dimension_numbers = #tpu.dot_dimension_numbers<[1], [0], [0], [1], [0, 0, 1, 1], [], []>} : vector<8x128xf32>, vector<128x512xf32>, vector<8x512xf32> -> vector<8x512xf32>
    %122 = arith.addf %120, %121 : vector<8x512xf32>
    %123 = arith.addf %122, %8 : vector<8x512xf32>
    %124 = vector.extract_strided_slice %123 {offsets = [0, 0], sizes = [8, 128], strides = [1, 1]} : vector<8x512xf32> to vector<8x128xf32>
    %cst_53 = arith.constant 5.000000e-01 : f32
    %125 = vector.broadcast %cst_53 : f32 to vector<8x128xf32>
    %126 = arith.mulf %125, %124 : vector<8x128xf32>
    %127 = math.tanh %126 : vector<8x128xf32>
    %cst_54 = arith.constant 5.000000e-01 : f32
    %128 = vector.broadcast %cst_54 : f32 to vector<8x128xf32>
    %129 = arith.mulf %128, %127 : vector<8x128xf32>
    %cst_55 = arith.constant 5.000000e-01 : f32
    %130 = vector.broadcast %cst_55 : f32 to vector<8x128xf32>
    %131 = arith.addf %129, %130 : vector<8x128xf32>
    %132 = vector.extract_strided_slice %123 {offsets = [0, 128], sizes = [8, 128], strides = [1, 1]} : vector<8x512xf32> to vector<8x128xf32>
    %cst_56 = arith.constant 5.000000e-01 : f32
    %133 = vector.broadcast %cst_56 : f32 to vector<8x128xf32>
    %134 = arith.mulf %133, %132 : vector<8x128xf32>
    %135 = math.tanh %134 : vector<8x128xf32>
    %cst_57 = arith.constant 5.000000e-01 : f32
    %136 = vector.broadcast %cst_57 : f32 to vector<8x128xf32>
    %137 = arith.mulf %136, %135 : vector<8x128xf32>
    %cst_58 = arith.constant 5.000000e-01 : f32
    %138 = vector.broadcast %cst_58 : f32 to vector<8x128xf32>
    %139 = arith.addf %137, %138 : vector<8x128xf32>
    %140 = vector.extract_strided_slice %123 {offsets = [0, 256], sizes = [8, 128], strides = [1, 1]} : vector<8x512xf32> to vector<8x128xf32>
    %141 = math.tanh %140 : vector<8x128xf32>
    %142 = vector.extract_strided_slice %123 {offsets = [0, 384], sizes = [8, 128], strides = [1, 1]} : vector<8x512xf32> to vector<8x128xf32>
    %cst_59 = arith.constant 5.000000e-01 : f32
    %143 = vector.broadcast %cst_59 : f32 to vector<8x128xf32>
    %144 = arith.mulf %143, %142 : vector<8x128xf32>
    %145 = math.tanh %144 : vector<8x128xf32>
    %cst_60 = arith.constant 5.000000e-01 : f32
    %146 = vector.broadcast %cst_60 : f32 to vector<8x128xf32>
    %147 = arith.mulf %146, %145 : vector<8x128xf32>
    %cst_61 = arith.constant 5.000000e-01 : f32
    %148 = vector.broadcast %cst_61 : f32 to vector<8x128xf32>
    %149 = arith.addf %147, %148 : vector<8x128xf32>
    %150 = arith.mulf %139, %81 : vector<8x128xf32>
    %151 = arith.mulf %131, %141 : vector<8x128xf32>
    %152 = arith.addf %150, %151 : vector<8x128xf32>
    %153 = math.tanh %152 : vector<8x128xf32>
    %154 = arith.mulf %149, %153 : vector<8x128xf32>
    %c2_i32 = arith.constant 2 : i32
    %155 = arith.index_cast %c2_i32 : i32 to index
    %c0_62 = arith.constant 0 : index
    %c0_63 = arith.constant 0 : index
    %156 = vector.load %arg1[%155, %c0_62, %c0_63] : memref<8x8x512xf32, #tpu.memory_space<vmem>>, vector<1x8x512xf32>
    %157 = vector.shape_cast %156 : vector<1x8x512xf32> to vector<8x512xf32>
    %cst_64 = arith.constant dense<0.000000e+00> : vector<8x512xf32>
    %158 = tpu.matmul %119, %3, %cst_64 {dimension_numbers = #tpu.dot_dimension_numbers<[1], [0], [0], [1], [0, 0, 1, 1], [], []>} : vector<8x128xf32>, vector<128x512xf32>, vector<8x512xf32> -> vector<8x512xf32>
    %159 = arith.addf %157, %158 : vector<8x512xf32>
    %160 = vector.extract_strided_slice %159 {offsets = [0, 0], sizes = [8, 128], strides = [1, 1]} : vector<8x512xf32> to vector<8x128xf32>
    %cst_65 = arith.constant 5.000000e-01 : f32
    %161 = vector.broadcast %cst_65 : f32 to vector<8x128xf32>
    %162 = arith.mulf %161, %160 : vector<8x128xf32>
    %163 = math.tanh %162 : vector<8x128xf32>
    %cst_66 = arith.constant 5.000000e-01 : f32
    %164 = vector.broadcast %cst_66 : f32 to vector<8x128xf32>
    %165 = arith.mulf %164, %163 : vector<8x128xf32>
    %cst_67 = arith.constant 5.000000e-01 : f32
    %166 = vector.broadcast %cst_67 : f32 to vector<8x128xf32>
    %167 = arith.addf %165, %166 : vector<8x128xf32>
    %168 = vector.extract_strided_slice %159 {offsets = [0, 128], sizes = [8, 128], strides = [1, 1]} : vector<8x512xf32> to vector<8x128xf32>
    %cst_68 = arith.constant 5.000000e-01 : f32
    %169 = vector.broadcast %cst_68 : f32 to vector<8x128xf32>
    %170 = arith.mulf %169, %168 : vector<8x128xf32>
    %171 = math.tanh %170 : vector<8x128xf32>
    %cst_69 = arith.constant 5.000000e-01 : f32
    %172 = vector.broadcast %cst_69 : f32 to vector<8x128xf32>
    %173 = arith.mulf %172, %171 : vector<8x128xf32>
    %cst_70 = arith.constant 5.000000e-01 : f32
    %174 = vector.broadcast %cst_70 : f32 to vector<8x128xf32>
    %175 = arith.addf %173, %174 : vector<8x128xf32>
    %176 = vector.extract_strided_slice %159 {offsets = [0, 256], sizes = [8, 128], strides = [1, 1]} : vector<8x512xf32> to vector<8x128xf32>
    %177 = math.tanh %176 : vector<8x128xf32>
    %178 = vector.extract_strided_slice %159 {offsets = [0, 384], sizes = [8, 128], strides = [1, 1]} : vector<8x512xf32> to vector<8x128xf32>
    %cst_71 = arith.constant 5.000000e-01 : f32
    %179 = vector.broadcast %cst_71 : f32 to vector<8x128xf32>
    %180 = arith.mulf %179, %178 : vector<8x128xf32>
    %181 = math.tanh %180 : vector<8x128xf32>
    %cst_72 = arith.constant 5.000000e-01 : f32
    %182 = vector.broadcast %cst_72 : f32 to vector<8x128xf32>
    %183 = arith.mulf %182, %181 : vector<8x128xf32>
    %cst_73 = arith.constant 5.000000e-01 : f32
    %184 = vector.broadcast %cst_73 : f32 to vector<8x128xf32>
    %185 = arith.addf %183, %184 : vector<8x128xf32>
    %186 = arith.mulf %175, %117 : vector<8x128xf32>
    %187 = arith.mulf %167, %177 : vector<8x128xf32>
    %188 = arith.addf %186, %187 : vector<8x128xf32>
    %189 = math.tanh %188 : vector<8x128xf32>
    %190 = arith.mulf %185, %189 : vector<8x128xf32>
    %cst_74 = arith.constant dense<0.000000e+00> : vector<8x512xf32>
    %191 = tpu.matmul %190, %4, %cst_74 {dimension_numbers = #tpu.dot_dimension_numbers<[1], [0], [0], [1], [0, 0, 1, 1], [], []>} : vector<8x128xf32>, vector<128x512xf32>, vector<8x512xf32> -> vector<8x512xf32>
    %cst_75 = arith.constant dense<0.000000e+00> : vector<8x512xf32>
    %192 = tpu.matmul %154, %5, %cst_75 {dimension_numbers = #tpu.dot_dimension_numbers<[1], [0], [0], [1], [0, 0, 1, 1], [], []>} : vector<8x128xf32>, vector<128x512xf32>, vector<8x512xf32> -> vector<8x512xf32>
    %193 = arith.addf %191, %192 : vector<8x512xf32>
    %194 = arith.addf %193, %8 : vector<8x512xf32>
    %195 = vector.extract_strided_slice %194 {offsets = [0, 0], sizes = [8, 128], strides = [1, 1]} : vector<8x512xf32> to vector<8x128xf32>
    %cst_76 = arith.constant 5.000000e-01 : f32
    %196 = vector.broadcast %cst_76 : f32 to vector<8x128xf32>
    %197 = arith.mulf %196, %195 : vector<8x128xf32>
    %198 = math.tanh %197 : vector<8x128xf32>
    %cst_77 = arith.constant 5.000000e-01 : f32
    %199 = vector.broadcast %cst_77 : f32 to vector<8x128xf32>
    %200 = arith.mulf %199, %198 : vector<8x128xf32>
    %cst_78 = arith.constant 5.000000e-01 : f32
    %201 = vector.broadcast %cst_78 : f32 to vector<8x128xf32>
    %202 = arith.addf %200, %201 : vector<8x128xf32>
    %203 = vector.extract_strided_slice %194 {offsets = [0, 128], sizes = [8, 128], strides = [1, 1]} : vector<8x512xf32> to vector<8x128xf32>
    %cst_79 = arith.constant 5.000000e-01 : f32
    %204 = vector.broadcast %cst_79 : f32 to vector<8x128xf32>
    %205 = arith.mulf %204, %203 : vector<8x128xf32>
    %206 = math.tanh %205 : vector<8x128xf32>
    %cst_80 = arith.constant 5.000000e-01 : f32
    %207 = vector.broadcast %cst_80 : f32 to vector<8x128xf32>
    %208 = arith.mulf %207, %206 : vector<8x128xf32>
    %cst_81 = arith.constant 5.000000e-01 : f32
    %209 = vector.broadcast %cst_81 : f32 to vector<8x128xf32>
    %210 = arith.addf %208, %209 : vector<8x128xf32>
    %211 = vector.extract_strided_slice %194 {offsets = [0, 256], sizes = [8, 128], strides = [1, 1]} : vector<8x512xf32> to vector<8x128xf32>
    %212 = math.tanh %211 : vector<8x128xf32>
    %213 = vector.extract_strided_slice %194 {offsets = [0, 384], sizes = [8, 128], strides = [1, 1]} : vector<8x512xf32> to vector<8x128xf32>
    %cst_82 = arith.constant 5.000000e-01 : f32
    %214 = vector.broadcast %cst_82 : f32 to vector<8x128xf32>
    %215 = arith.mulf %214, %213 : vector<8x128xf32>
    %216 = math.tanh %215 : vector<8x128xf32>
    %cst_83 = arith.constant 5.000000e-01 : f32
    %217 = vector.broadcast %cst_83 : f32 to vector<8x128xf32>
    %218 = arith.mulf %217, %216 : vector<8x128xf32>
    %cst_84 = arith.constant 5.000000e-01 : f32
    %219 = vector.broadcast %cst_84 : f32 to vector<8x128xf32>
    %220 = arith.addf %218, %219 : vector<8x128xf32>
    %221 = arith.mulf %210, %152 : vector<8x128xf32>
    %222 = arith.mulf %202, %212 : vector<8x128xf32>
    %223 = arith.addf %221, %222 : vector<8x128xf32>
    %224 = math.tanh %223 : vector<8x128xf32>
    %225 = arith.mulf %220, %224 : vector<8x128xf32>
    %c3_i32 = arith.constant 3 : i32
    %226 = arith.index_cast %c3_i32 : i32 to index
    %c0_85 = arith.constant 0 : index
    %c0_86 = arith.constant 0 : index
    %227 = vector.load %arg1[%226, %c0_85, %c0_86] : memref<8x8x512xf32, #tpu.memory_space<vmem>>, vector<1x8x512xf32>
    %228 = vector.shape_cast %227 : vector<1x8x512xf32> to vector<8x512xf32>
    %cst_87 = arith.constant dense<0.000000e+00> : vector<8x512xf32>
    %229 = tpu.matmul %190, %3, %cst_87 {dimension_numbers = #tpu.dot_dimension_numbers<[1], [0], [0], [1], [0, 0, 1, 1], [], []>} : vector<8x128xf32>, vector<128x512xf32>, vector<8x512xf32> -> vector<8x512xf32>
    %230 = arith.addf %228, %229 : vector<8x512xf32>
    %231 = vector.extract_strided_slice %230 {offsets = [0, 0], sizes = [8, 128], strides = [1, 1]} : vector<8x512xf32> to vector<8x128xf32>
    %cst_88 = arith.constant 5.000000e-01 : f32
    %232 = vector.broadcast %cst_88 : f32 to vector<8x128xf32>
    %233 = arith.mulf %232, %231 : vector<8x128xf32>
    %234 = math.tanh %233 : vector<8x128xf32>
    %cst_89 = arith.constant 5.000000e-01 : f32
    %235 = vector.broadcast %cst_89 : f32 to vector<8x128xf32>
    %236 = arith.mulf %235, %234 : vector<8x128xf32>
    %cst_90 = arith.constant 5.000000e-01 : f32
    %237 = vector.broadcast %cst_90 : f32 to vector<8x128xf32>
    %238 = arith.addf %236, %237 : vector<8x128xf32>
    %239 = vector.extract_strided_slice %230 {offsets = [0, 128], sizes = [8, 128], strides = [1, 1]} : vector<8x512xf32> to vector<8x128xf32>
    %cst_91 = arith.constant 5.000000e-01 : f32
    %240 = vector.broadcast %cst_91 : f32 to vector<8x128xf32>
    %241 = arith.mulf %240, %239 : vector<8x128xf32>
    %242 = math.tanh %241 : vector<8x128xf32>
    %cst_92 = arith.constant 5.000000e-01 : f32
    %243 = vector.broadcast %cst_92 : f32 to vector<8x128xf32>
    %244 = arith.mulf %243, %242 : vector<8x128xf32>
    %cst_93 = arith.constant 5.000000e-01 : f32
    %245 = vector.broadcast %cst_93 : f32 to vector<8x128xf32>
    %246 = arith.addf %244, %245 : vector<8x128xf32>
    %247 = vector.extract_strided_slice %230 {offsets = [0, 256], sizes = [8, 128], strides = [1, 1]} : vector<8x512xf32> to vector<8x128xf32>
    %248 = math.tanh %247 : vector<8x128xf32>
    %249 = vector.extract_strided_slice %230 {offsets = [0, 384], sizes = [8, 128], strides = [1, 1]} : vector<8x512xf32> to vector<8x128xf32>
    %cst_94 = arith.constant 5.000000e-01 : f32
    %250 = vector.broadcast %cst_94 : f32 to vector<8x128xf32>
    %251 = arith.mulf %250, %249 : vector<8x128xf32>
    %252 = math.tanh %251 : vector<8x128xf32>
    %cst_95 = arith.constant 5.000000e-01 : f32
    %253 = vector.broadcast %cst_95 : f32 to vector<8x128xf32>
    %254 = arith.mulf %253, %252 : vector<8x128xf32>
    %cst_96 = arith.constant 5.000000e-01 : f32
    %255 = vector.broadcast %cst_96 : f32 to vector<8x128xf32>
    %256 = arith.addf %254, %255 : vector<8x128xf32>
    %257 = arith.mulf %246, %188 : vector<8x128xf32>
    %258 = arith.mulf %238, %248 : vector<8x128xf32>
    %259 = arith.addf %257, %258 : vector<8x128xf32>
    %260 = math.tanh %259 : vector<8x128xf32>
    %261 = arith.mulf %256, %260 : vector<8x128xf32>
    %cst_97 = arith.constant dense<0.000000e+00> : vector<8x512xf32>
    %262 = tpu.matmul %261, %4, %cst_97 {dimension_numbers = #tpu.dot_dimension_numbers<[1], [0], [0], [1], [0, 0, 1, 1], [], []>} : vector<8x128xf32>, vector<128x512xf32>, vector<8x512xf32> -> vector<8x512xf32>
    %cst_98 = arith.constant dense<0.000000e+00> : vector<8x512xf32>
    %263 = tpu.matmul %225, %5, %cst_98 {dimension_numbers = #tpu.dot_dimension_numbers<[1], [0], [0], [1], [0, 0, 1, 1], [], []>} : vector<8x128xf32>, vector<128x512xf32>, vector<8x512xf32> -> vector<8x512xf32>
    %264 = arith.addf %262, %263 : vector<8x512xf32>
    %265 = arith.addf %264, %8 : vector<8x512xf32>
    %266 = vector.extract_strided_slice %265 {offsets = [0, 0], sizes = [8, 128], strides = [1, 1]} : vector<8x512xf32> to vector<8x128xf32>
    %cst_99 = arith.constant 5.000000e-01 : f32
    %267 = vector.broadcast %cst_99 : f32 to vector<8x128xf32>
    %268 = arith.mulf %267, %266 : vector<8x128xf32>
    %269 = math.tanh %268 : vector<8x128xf32>
    %cst_100 = arith.constant 5.000000e-01 : f32
    %270 = vector.broadcast %cst_100 : f32 to vector<8x128xf32>
    %271 = arith.mulf %270, %269 : vector<8x128xf32>
    %cst_101 = arith.constant 5.000000e-01 : f32
    %272 = vector.broadcast %cst_101 : f32 to vector<8x128xf32>
    %273 = arith.addf %271, %272 : vector<8x128xf32>
    %274 = vector.extract_strided_slice %265 {offsets = [0, 128], sizes = [8, 128], strides = [1, 1]} : vector<8x512xf32> to vector<8x128xf32>
    %cst_102 = arith.constant 5.000000e-01 : f32
    %275 = vector.broadcast %cst_102 : f32 to vector<8x128xf32>
    %276 = arith.mulf %275, %274 : vector<8x128xf32>
    %277 = math.tanh %276 : vector<8x128xf32>
    %cst_103 = arith.constant 5.000000e-01 : f32
    %278 = vector.broadcast %cst_103 : f32 to vector<8x128xf32>
    %279 = arith.mulf %278, %277 : vector<8x128xf32>
    %cst_104 = arith.constant 5.000000e-01 : f32
    %280 = vector.broadcast %cst_104 : f32 to vector<8x128xf32>
    %281 = arith.addf %279, %280 : vector<8x128xf32>
    %282 = vector.extract_strided_slice %265 {offsets = [0, 256], sizes = [8, 128], strides = [1, 1]} : vector<8x512xf32> to vector<8x128xf32>
    %283 = math.tanh %282 : vector<8x128xf32>
    %284 = vector.extract_strided_slice %265 {offsets = [0, 384], sizes = [8, 128], strides = [1, 1]} : vector<8x512xf32> to vector<8x128xf32>
    %cst_105 = arith.constant 5.000000e-01 : f32
    %285 = vector.broadcast %cst_105 : f32 to vector<8x128xf32>
    %286 = arith.mulf %285, %284 : vector<8x128xf32>
    %287 = math.tanh %286 : vector<8x128xf32>
    %cst_106 = arith.constant 5.000000e-01 : f32
    %288 = vector.broadcast %cst_106 : f32 to vector<8x128xf32>
    %289 = arith.mulf %288, %287 : vector<8x128xf32>
    %cst_107 = arith.constant 5.000000e-01 : f32
    %290 = vector.broadcast %cst_107 : f32 to vector<8x128xf32>
    %291 = arith.addf %289, %290 : vector<8x128xf32>
    %292 = arith.mulf %281, %223 : vector<8x128xf32>
    %293 = arith.mulf %273, %283 : vector<8x128xf32>
    %294 = arith.addf %292, %293 : vector<8x128xf32>
    %295 = math.tanh %294 : vector<8x128xf32>
    %296 = arith.mulf %291, %295 : vector<8x128xf32>
    %c4_i32 = arith.constant 4 : i32
    %297 = arith.index_cast %c4_i32 : i32 to index
    %c0_108 = arith.constant 0 : index
    %c0_109 = arith.constant 0 : index
    %298 = vector.load %arg1[%297, %c0_108, %c0_109] : memref<8x8x512xf32, #tpu.memory_space<vmem>>, vector<1x8x512xf32>
    %299 = vector.shape_cast %298 : vector<1x8x512xf32> to vector<8x512xf32>
    %cst_110 = arith.constant dense<0.000000e+00> : vector<8x512xf32>
    %300 = tpu.matmul %261, %3, %cst_110 {dimension_numbers = #tpu.dot_dimension_numbers<[1], [0], [0], [1], [0, 0, 1, 1], [], []>} : vector<8x128xf32>, vector<128x512xf32>, vector<8x512xf32> -> vector<8x512xf32>
    %301 = arith.addf %299, %300 : vector<8x512xf32>
    %302 = vector.extract_strided_slice %301 {offsets = [0, 0], sizes = [8, 128], strides = [1, 1]} : vector<8x512xf32> to vector<8x128xf32>
    %cst_111 = arith.constant 5.000000e-01 : f32
    %303 = vector.broadcast %cst_111 : f32 to vector<8x128xf32>
    %304 = arith.mulf %303, %302 : vector<8x128xf32>
    %305 = math.tanh %304 : vector<8x128xf32>
    %cst_112 = arith.constant 5.000000e-01 : f32
    %306 = vector.broadcast %cst_112 : f32 to vector<8x128xf32>
    %307 = arith.mulf %306, %305 : vector<8x128xf32>
    %cst_113 = arith.constant 5.000000e-01 : f32
    %308 = vector.broadcast %cst_113 : f32 to vector<8x128xf32>
    %309 = arith.addf %307, %308 : vector<8x128xf32>
    %310 = vector.extract_strided_slice %301 {offsets = [0, 128], sizes = [8, 128], strides = [1, 1]} : vector<8x512xf32> to vector<8x128xf32>
    %cst_114 = arith.constant 5.000000e-01 : f32
    %311 = vector.broadcast %cst_114 : f32 to vector<8x128xf32>
    %312 = arith.mulf %311, %310 : vector<8x128xf32>
    %313 = math.tanh %312 : vector<8x128xf32>
    %cst_115 = arith.constant 5.000000e-01 : f32
    %314 = vector.broadcast %cst_115 : f32 to vector<8x128xf32>
    %315 = arith.mulf %314, %313 : vector<8x128xf32>
    %cst_116 = arith.constant 5.000000e-01 : f32
    %316 = vector.broadcast %cst_116 : f32 to vector<8x128xf32>
    %317 = arith.addf %315, %316 : vector<8x128xf32>
    %318 = vector.extract_strided_slice %301 {offsets = [0, 256], sizes = [8, 128], strides = [1, 1]} : vector<8x512xf32> to vector<8x128xf32>
    %319 = math.tanh %318 : vector<8x128xf32>
    %320 = vector.extract_strided_slice %301 {offsets = [0, 384], sizes = [8, 128], strides = [1, 1]} : vector<8x512xf32> to vector<8x128xf32>
    %cst_117 = arith.constant 5.000000e-01 : f32
    %321 = vector.broadcast %cst_117 : f32 to vector<8x128xf32>
    %322 = arith.mulf %321, %320 : vector<8x128xf32>
    %323 = math.tanh %322 : vector<8x128xf32>
    %cst_118 = arith.constant 5.000000e-01 : f32
    %324 = vector.broadcast %cst_118 : f32 to vector<8x128xf32>
    %325 = arith.mulf %324, %323 : vector<8x128xf32>
    %cst_119 = arith.constant 5.000000e-01 : f32
    %326 = vector.broadcast %cst_119 : f32 to vector<8x128xf32>
    %327 = arith.addf %325, %326 : vector<8x128xf32>
    %328 = arith.mulf %317, %259 : vector<8x128xf32>
    %329 = arith.mulf %309, %319 : vector<8x128xf32>
    %330 = arith.addf %328, %329 : vector<8x128xf32>
    %331 = math.tanh %330 : vector<8x128xf32>
    %332 = arith.mulf %327, %331 : vector<8x128xf32>
    %cst_120 = arith.constant dense<0.000000e+00> : vector<8x512xf32>
    %333 = tpu.matmul %332, %4, %cst_120 {dimension_numbers = #tpu.dot_dimension_numbers<[1], [0], [0], [1], [0, 0, 1, 1], [], []>} : vector<8x128xf32>, vector<128x512xf32>, vector<8x512xf32> -> vector<8x512xf32>
    %cst_121 = arith.constant dense<0.000000e+00> : vector<8x512xf32>
    %334 = tpu.matmul %296, %5, %cst_121 {dimension_numbers = #tpu.dot_dimension_numbers<[1], [0], [0], [1], [0, 0, 1, 1], [], []>} : vector<8x128xf32>, vector<128x512xf32>, vector<8x512xf32> -> vector<8x512xf32>
    %335 = arith.addf %333, %334 : vector<8x512xf32>
    %336 = arith.addf %335, %8 : vector<8x512xf32>
    %337 = vector.extract_strided_slice %336 {offsets = [0, 0], sizes = [8, 128], strides = [1, 1]} : vector<8x512xf32> to vector<8x128xf32>
    %cst_122 = arith.constant 5.000000e-01 : f32
    %338 = vector.broadcast %cst_122 : f32 to vector<8x128xf32>
    %339 = arith.mulf %338, %337 : vector<8x128xf32>
    %340 = math.tanh %339 : vector<8x128xf32>
    %cst_123 = arith.constant 5.000000e-01 : f32
    %341 = vector.broadcast %cst_123 : f32 to vector<8x128xf32>
    %342 = arith.mulf %341, %340 : vector<8x128xf32>
    %cst_124 = arith.constant 5.000000e-01 : f32
    %343 = vector.broadcast %cst_124 : f32 to vector<8x128xf32>
    %344 = arith.addf %342, %343 : vector<8x128xf32>
    %345 = vector.extract_strided_slice %336 {offsets = [0, 128], sizes = [8, 128], strides = [1, 1]} : vector<8x512xf32> to vector<8x128xf32>
    %cst_125 = arith.constant 5.000000e-01 : f32
    %346 = vector.broadcast %cst_125 : f32 to vector<8x128xf32>
    %347 = arith.mulf %346, %345 : vector<8x128xf32>
    %348 = math.tanh %347 : vector<8x128xf32>
    %cst_126 = arith.constant 5.000000e-01 : f32
    %349 = vector.broadcast %cst_126 : f32 to vector<8x128xf32>
    %350 = arith.mulf %349, %348 : vector<8x128xf32>
    %cst_127 = arith.constant 5.000000e-01 : f32
    %351 = vector.broadcast %cst_127 : f32 to vector<8x128xf32>
    %352 = arith.addf %350, %351 : vector<8x128xf32>
    %353 = vector.extract_strided_slice %336 {offsets = [0, 256], sizes = [8, 128], strides = [1, 1]} : vector<8x512xf32> to vector<8x128xf32>
    %354 = math.tanh %353 : vector<8x128xf32>
    %355 = vector.extract_strided_slice %336 {offsets = [0, 384], sizes = [8, 128], strides = [1, 1]} : vector<8x512xf32> to vector<8x128xf32>
    %cst_128 = arith.constant 5.000000e-01 : f32
    %356 = vector.broadcast %cst_128 : f32 to vector<8x128xf32>
    %357 = arith.mulf %356, %355 : vector<8x128xf32>
    %358 = math.tanh %357 : vector<8x128xf32>
    %cst_129 = arith.constant 5.000000e-01 : f32
    %359 = vector.broadcast %cst_129 : f32 to vector<8x128xf32>
    %360 = arith.mulf %359, %358 : vector<8x128xf32>
    %cst_130 = arith.constant 5.000000e-01 : f32
    %361 = vector.broadcast %cst_130 : f32 to vector<8x128xf32>
    %362 = arith.addf %360, %361 : vector<8x128xf32>
    %363 = arith.mulf %352, %294 : vector<8x128xf32>
    %364 = arith.mulf %344, %354 : vector<8x128xf32>
    %365 = arith.addf %363, %364 : vector<8x128xf32>
    %366 = math.tanh %365 : vector<8x128xf32>
    %367 = arith.mulf %362, %366 : vector<8x128xf32>
    %c5_i32 = arith.constant 5 : i32
    %368 = arith.index_cast %c5_i32 : i32 to index
    %c0_131 = arith.constant 0 : index
    %c0_132 = arith.constant 0 : index
    %369 = vector.load %arg1[%368, %c0_131, %c0_132] : memref<8x8x512xf32, #tpu.memory_space<vmem>>, vector<1x8x512xf32>
    %370 = vector.shape_cast %369 : vector<1x8x512xf32> to vector<8x512xf32>
    %cst_133 = arith.constant dense<0.000000e+00> : vector<8x512xf32>
    %371 = tpu.matmul %332, %3, %cst_133 {dimension_numbers = #tpu.dot_dimension_numbers<[1], [0], [0], [1], [0, 0, 1, 1], [], []>} : vector<8x128xf32>, vector<128x512xf32>, vector<8x512xf32> -> vector<8x512xf32>
    %372 = arith.addf %370, %371 : vector<8x512xf32>
    %373 = vector.extract_strided_slice %372 {offsets = [0, 0], sizes = [8, 128], strides = [1, 1]} : vector<8x512xf32> to vector<8x128xf32>
    %cst_134 = arith.constant 5.000000e-01 : f32
    %374 = vector.broadcast %cst_134 : f32 to vector<8x128xf32>
    %375 = arith.mulf %374, %373 : vector<8x128xf32>
    %376 = math.tanh %375 : vector<8x128xf32>
    %cst_135 = arith.constant 5.000000e-01 : f32
    %377 = vector.broadcast %cst_135 : f32 to vector<8x128xf32>
    %378 = arith.mulf %377, %376 : vector<8x128xf32>
    %cst_136 = arith.constant 5.000000e-01 : f32
    %379 = vector.broadcast %cst_136 : f32 to vector<8x128xf32>
    %380 = arith.addf %378, %379 : vector<8x128xf32>
    %381 = vector.extract_strided_slice %372 {offsets = [0, 128], sizes = [8, 128], strides = [1, 1]} : vector<8x512xf32> to vector<8x128xf32>
    %cst_137 = arith.constant 5.000000e-01 : f32
    %382 = vector.broadcast %cst_137 : f32 to vector<8x128xf32>
    %383 = arith.mulf %382, %381 : vector<8x128xf32>
    %384 = math.tanh %383 : vector<8x128xf32>
    %cst_138 = arith.constant 5.000000e-01 : f32
    %385 = vector.broadcast %cst_138 : f32 to vector<8x128xf32>
    %386 = arith.mulf %385, %384 : vector<8x128xf32>
    %cst_139 = arith.constant 5.000000e-01 : f32
    %387 = vector.broadcast %cst_139 : f32 to vector<8x128xf32>
    %388 = arith.addf %386, %387 : vector<8x128xf32>
    %389 = vector.extract_strided_slice %372 {offsets = [0, 256], sizes = [8, 128], strides = [1, 1]} : vector<8x512xf32> to vector<8x128xf32>
    %390 = math.tanh %389 : vector<8x128xf32>
    %391 = vector.extract_strided_slice %372 {offsets = [0, 384], sizes = [8, 128], strides = [1, 1]} : vector<8x512xf32> to vector<8x128xf32>
    %cst_140 = arith.constant 5.000000e-01 : f32
    %392 = vector.broadcast %cst_140 : f32 to vector<8x128xf32>
    %393 = arith.mulf %392, %391 : vector<8x128xf32>
    %394 = math.tanh %393 : vector<8x128xf32>
    %cst_141 = arith.constant 5.000000e-01 : f32
    %395 = vector.broadcast %cst_141 : f32 to vector<8x128xf32>
    %396 = arith.mulf %395, %394 : vector<8x128xf32>
    %cst_142 = arith.constant 5.000000e-01 : f32
    %397 = vector.broadcast %cst_142 : f32 to vector<8x128xf32>
    %398 = arith.addf %396, %397 : vector<8x128xf32>
    %399 = arith.mulf %388, %330 : vector<8x128xf32>
    %400 = arith.mulf %380, %390 : vector<8x128xf32>
    %401 = arith.addf %399, %400 : vector<8x128xf32>
    %402 = math.tanh %401 : vector<8x128xf32>
    %403 = arith.mulf %398, %402 : vector<8x128xf32>
    %cst_143 = arith.constant dense<0.000000e+00> : vector<8x512xf32>
    %404 = tpu.matmul %403, %4, %cst_143 {dimension_numbers = #tpu.dot_dimension_numbers<[1], [0], [0], [1], [0, 0, 1, 1], [], []>} : vector<8x128xf32>, vector<128x512xf32>, vector<8x512xf32> -> vector<8x512xf32>
    %cst_144 = arith.constant dense<0.000000e+00> : vector<8x512xf32>
    %405 = tpu.matmul %367, %5, %cst_144 {dimension_numbers = #tpu.dot_dimension_numbers<[1], [0], [0], [1], [0, 0, 1, 1], [], []>} : vector<8x128xf32>, vector<128x512xf32>, vector<8x512xf32> -> vector<8x512xf32>
    %406 = arith.addf %404, %405 : vector<8x512xf32>
    %407 = arith.addf %406, %8 : vector<8x512xf32>
    %408 = vector.extract_strided_slice %407 {offsets = [0, 0], sizes = [8, 128], strides = [1, 1]} : vector<8x512xf32> to vector<8x128xf32>
    %cst_145 = arith.constant 5.000000e-01 : f32
    %409 = vector.broadcast %cst_145 : f32 to vector<8x128xf32>
    %410 = arith.mulf %409, %408 : vector<8x128xf32>
    %411 = math.tanh %410 : vector<8x128xf32>
    %cst_146 = arith.constant 5.000000e-01 : f32
    %412 = vector.broadcast %cst_146 : f32 to vector<8x128xf32>
    %413 = arith.mulf %412, %411 : vector<8x128xf32>
    %cst_147 = arith.constant 5.000000e-01 : f32
    %414 = vector.broadcast %cst_147 : f32 to vector<8x128xf32>
    %415 = arith.addf %413, %414 : vector<8x128xf32>
    %416 = vector.extract_strided_slice %407 {offsets = [0, 128], sizes = [8, 128], strides = [1, 1]} : vector<8x512xf32> to vector<8x128xf32>
    %cst_148 = arith.constant 5.000000e-01 : f32
    %417 = vector.broadcast %cst_148 : f32 to vector<8x128xf32>
    %418 = arith.mulf %417, %416 : vector<8x128xf32>
    %419 = math.tanh %418 : vector<8x128xf32>
    %cst_149 = arith.constant 5.000000e-01 : f32
    %420 = vector.broadcast %cst_149 : f32 to vector<8x128xf32>
    %421 = arith.mulf %420, %419 : vector<8x128xf32>
    %cst_150 = arith.constant 5.000000e-01 : f32
    %422 = vector.broadcast %cst_150 : f32 to vector<8x128xf32>
    %423 = arith.addf %421, %422 : vector<8x128xf32>
    %424 = vector.extract_strided_slice %407 {offsets = [0, 256], sizes = [8, 128], strides = [1, 1]} : vector<8x512xf32> to vector<8x128xf32>
    %425 = math.tanh %424 : vector<8x128xf32>
    %426 = vector.extract_strided_slice %407 {offsets = [0, 384], sizes = [8, 128], strides = [1, 1]} : vector<8x512xf32> to vector<8x128xf32>
    %cst_151 = arith.constant 5.000000e-01 : f32
    %427 = vector.broadcast %cst_151 : f32 to vector<8x128xf32>
    %428 = arith.mulf %427, %426 : vector<8x128xf32>
    %429 = math.tanh %428 : vector<8x128xf32>
    %cst_152 = arith.constant 5.000000e-01 : f32
    %430 = vector.broadcast %cst_152 : f32 to vector<8x128xf32>
    %431 = arith.mulf %430, %429 : vector<8x128xf32>
    %cst_153 = arith.constant 5.000000e-01 : f32
    %432 = vector.broadcast %cst_153 : f32 to vector<8x128xf32>
    %433 = arith.addf %431, %432 : vector<8x128xf32>
    %434 = arith.mulf %423, %365 : vector<8x128xf32>
    %435 = arith.mulf %415, %425 : vector<8x128xf32>
    %436 = arith.addf %434, %435 : vector<8x128xf32>
    %437 = math.tanh %436 : vector<8x128xf32>
    %438 = arith.mulf %433, %437 : vector<8x128xf32>
    %c6_i32 = arith.constant 6 : i32
    %439 = arith.index_cast %c6_i32 : i32 to index
    %c0_154 = arith.constant 0 : index
    %c0_155 = arith.constant 0 : index
    %440 = vector.load %arg1[%439, %c0_154, %c0_155] : memref<8x8x512xf32, #tpu.memory_space<vmem>>, vector<1x8x512xf32>
    %441 = vector.shape_cast %440 : vector<1x8x512xf32> to vector<8x512xf32>
    %cst_156 = arith.constant dense<0.000000e+00> : vector<8x512xf32>
    %442 = tpu.matmul %403, %3, %cst_156 {dimension_numbers = #tpu.dot_dimension_numbers<[1], [0], [0], [1], [0, 0, 1, 1], [], []>} : vector<8x128xf32>, vector<128x512xf32>, vector<8x512xf32> -> vector<8x512xf32>
    %443 = arith.addf %441, %442 : vector<8x512xf32>
    %444 = vector.extract_strided_slice %443 {offsets = [0, 0], sizes = [8, 128], strides = [1, 1]} : vector<8x512xf32> to vector<8x128xf32>
    %cst_157 = arith.constant 5.000000e-01 : f32
    %445 = vector.broadcast %cst_157 : f32 to vector<8x128xf32>
    %446 = arith.mulf %445, %444 : vector<8x128xf32>
    %447 = math.tanh %446 : vector<8x128xf32>
    %cst_158 = arith.constant 5.000000e-01 : f32
    %448 = vector.broadcast %cst_158 : f32 to vector<8x128xf32>
    %449 = arith.mulf %448, %447 : vector<8x128xf32>
    %cst_159 = arith.constant 5.000000e-01 : f32
    %450 = vector.broadcast %cst_159 : f32 to vector<8x128xf32>
    %451 = arith.addf %449, %450 : vector<8x128xf32>
    %452 = vector.extract_strided_slice %443 {offsets = [0, 128], sizes = [8, 128], strides = [1, 1]} : vector<8x512xf32> to vector<8x128xf32>
    %cst_160 = arith.constant 5.000000e-01 : f32
    %453 = vector.broadcast %cst_160 : f32 to vector<8x128xf32>
    %454 = arith.mulf %453, %452 : vector<8x128xf32>
    %455 = math.tanh %454 : vector<8x128xf32>
    %cst_161 = arith.constant 5.000000e-01 : f32
    %456 = vector.broadcast %cst_161 : f32 to vector<8x128xf32>
    %457 = arith.mulf %456, %455 : vector<8x128xf32>
    %cst_162 = arith.constant 5.000000e-01 : f32
    %458 = vector.broadcast %cst_162 : f32 to vector<8x128xf32>
    %459 = arith.addf %457, %458 : vector<8x128xf32>
    %460 = vector.extract_strided_slice %443 {offsets = [0, 256], sizes = [8, 128], strides = [1, 1]} : vector<8x512xf32> to vector<8x128xf32>
    %461 = math.tanh %460 : vector<8x128xf32>
    %462 = vector.extract_strided_slice %443 {offsets = [0, 384], sizes = [8, 128], strides = [1, 1]} : vector<8x512xf32> to vector<8x128xf32>
    %cst_163 = arith.constant 5.000000e-01 : f32
    %463 = vector.broadcast %cst_163 : f32 to vector<8x128xf32>
    %464 = arith.mulf %463, %462 : vector<8x128xf32>
    %465 = math.tanh %464 : vector<8x128xf32>
    %cst_164 = arith.constant 5.000000e-01 : f32
    %466 = vector.broadcast %cst_164 : f32 to vector<8x128xf32>
    %467 = arith.mulf %466, %465 : vector<8x128xf32>
    %cst_165 = arith.constant 5.000000e-01 : f32
    %468 = vector.broadcast %cst_165 : f32 to vector<8x128xf32>
    %469 = arith.addf %467, %468 : vector<8x128xf32>
    %470 = arith.mulf %459, %401 : vector<8x128xf32>
    %471 = arith.mulf %451, %461 : vector<8x128xf32>
    %472 = arith.addf %470, %471 : vector<8x128xf32>
    %473 = math.tanh %472 : vector<8x128xf32>
    %474 = arith.mulf %469, %473 : vector<8x128xf32>
    %cst_166 = arith.constant dense<0.000000e+00> : vector<8x512xf32>
    %475 = tpu.matmul %474, %4, %cst_166 {dimension_numbers = #tpu.dot_dimension_numbers<[1], [0], [0], [1], [0, 0, 1, 1], [], []>} : vector<8x128xf32>, vector<128x512xf32>, vector<8x512xf32> -> vector<8x512xf32>
    %cst_167 = arith.constant dense<0.000000e+00> : vector<8x512xf32>
    %476 = tpu.matmul %438, %5, %cst_167 {dimension_numbers = #tpu.dot_dimension_numbers<[1], [0], [0], [1], [0, 0, 1, 1], [], []>} : vector<8x128xf32>, vector<128x512xf32>, vector<8x512xf32> -> vector<8x512xf32>
    %477 = arith.addf %475, %476 : vector<8x512xf32>
    %478 = arith.addf %477, %8 : vector<8x512xf32>
    %479 = vector.extract_strided_slice %478 {offsets = [0, 0], sizes = [8, 128], strides = [1, 1]} : vector<8x512xf32> to vector<8x128xf32>
    %cst_168 = arith.constant 5.000000e-01 : f32
    %480 = vector.broadcast %cst_168 : f32 to vector<8x128xf32>
    %481 = arith.mulf %480, %479 : vector<8x128xf32>
    %482 = math.tanh %481 : vector<8x128xf32>
    %cst_169 = arith.constant 5.000000e-01 : f32
    %483 = vector.broadcast %cst_169 : f32 to vector<8x128xf32>
    %484 = arith.mulf %483, %482 : vector<8x128xf32>
    %cst_170 = arith.constant 5.000000e-01 : f32
    %485 = vector.broadcast %cst_170 : f32 to vector<8x128xf32>
    %486 = arith.addf %484, %485 : vector<8x128xf32>
    %487 = vector.extract_strided_slice %478 {offsets = [0, 128], sizes = [8, 128], strides = [1, 1]} : vector<8x512xf32> to vector<8x128xf32>
    %cst_171 = arith.constant 5.000000e-01 : f32
    %488 = vector.broadcast %cst_171 : f32 to vector<8x128xf32>
    %489 = arith.mulf %488, %487 : vector<8x128xf32>
    %490 = math.tanh %489 : vector<8x128xf32>
    %cst_172 = arith.constant 5.000000e-01 : f32
    %491 = vector.broadcast %cst_172 : f32 to vector<8x128xf32>
    %492 = arith.mulf %491, %490 : vector<8x128xf32>
    %cst_173 = arith.constant 5.000000e-01 : f32
    %493 = vector.broadcast %cst_173 : f32 to vector<8x128xf32>
    %494 = arith.addf %492, %493 : vector<8x128xf32>
    %495 = vector.extract_strided_slice %478 {offsets = [0, 256], sizes = [8, 128], strides = [1, 1]} : vector<8x512xf32> to vector<8x128xf32>
    %496 = math.tanh %495 : vector<8x128xf32>
    %497 = vector.extract_strided_slice %478 {offsets = [0, 384], sizes = [8, 128], strides = [1, 1]} : vector<8x512xf32> to vector<8x128xf32>
    %cst_174 = arith.constant 5.000000e-01 : f32
    %498 = vector.broadcast %cst_174 : f32 to vector<8x128xf32>
    %499 = arith.mulf %498, %497 : vector<8x128xf32>
    %500 = math.tanh %499 : vector<8x128xf32>
    %cst_175 = arith.constant 5.000000e-01 : f32
    %501 = vector.broadcast %cst_175 : f32 to vector<8x128xf32>
    %502 = arith.mulf %501, %500 : vector<8x128xf32>
    %cst_176 = arith.constant 5.000000e-01 : f32
    %503 = vector.broadcast %cst_176 : f32 to vector<8x128xf32>
    %504 = arith.addf %502, %503 : vector<8x128xf32>
    %505 = arith.mulf %494, %436 : vector<8x128xf32>
    %506 = arith.mulf %486, %496 : vector<8x128xf32>
    %507 = arith.addf %505, %506 : vector<8x128xf32>
    %508 = math.tanh %507 : vector<8x128xf32>
    %509 = arith.mulf %504, %508 : vector<8x128xf32>
    %c7_i32 = arith.constant 7 : i32
    %510 = arith.index_cast %c7_i32 : i32 to index
    %c0_177 = arith.constant 0 : index
    %c0_178 = arith.constant 0 : index
    %511 = vector.load %arg1[%510, %c0_177, %c0_178] : memref<8x8x512xf32, #tpu.memory_space<vmem>>, vector<1x8x512xf32>
    %512 = vector.shape_cast %511 : vector<1x8x512xf32> to vector<8x512xf32>
    %cst_179 = arith.constant dense<0.000000e+00> : vector<8x512xf32>
    %513 = tpu.matmul %474, %3, %cst_179 {dimension_numbers = #tpu.dot_dimension_numbers<[1], [0], [0], [1], [0, 0, 1, 1], [], []>} : vector<8x128xf32>, vector<128x512xf32>, vector<8x512xf32> -> vector<8x512xf32>
    %514 = arith.addf %512, %513 : vector<8x512xf32>
    %515 = vector.extract_strided_slice %514 {offsets = [0, 0], sizes = [8, 128], strides = [1, 1]} : vector<8x512xf32> to vector<8x128xf32>
    %cst_180 = arith.constant 5.000000e-01 : f32
    %516 = vector.broadcast %cst_180 : f32 to vector<8x128xf32>
    %517 = arith.mulf %516, %515 : vector<8x128xf32>
    %518 = math.tanh %517 : vector<8x128xf32>
    %cst_181 = arith.constant 5.000000e-01 : f32
    %519 = vector.broadcast %cst_181 : f32 to vector<8x128xf32>
    %520 = arith.mulf %519, %518 : vector<8x128xf32>
    %cst_182 = arith.constant 5.000000e-01 : f32
    %521 = vector.broadcast %cst_182 : f32 to vector<8x128xf32>
    %522 = arith.addf %520, %521 : vector<8x128xf32>
    %523 = vector.extract_strided_slice %514 {offsets = [0, 128], sizes = [8, 128], strides = [1, 1]} : vector<8x512xf32> to vector<8x128xf32>
    %cst_183 = arith.constant 5.000000e-01 : f32
    %524 = vector.broadcast %cst_183 : f32 to vector<8x128xf32>
    %525 = arith.mulf %524, %523 : vector<8x128xf32>
    %526 = math.tanh %525 : vector<8x128xf32>
    %cst_184 = arith.constant 5.000000e-01 : f32
    %527 = vector.broadcast %cst_184 : f32 to vector<8x128xf32>
    %528 = arith.mulf %527, %526 : vector<8x128xf32>
    %cst_185 = arith.constant 5.000000e-01 : f32
    %529 = vector.broadcast %cst_185 : f32 to vector<8x128xf32>
    %530 = arith.addf %528, %529 : vector<8x128xf32>
    %531 = vector.extract_strided_slice %514 {offsets = [0, 256], sizes = [8, 128], strides = [1, 1]} : vector<8x512xf32> to vector<8x128xf32>
    %532 = math.tanh %531 : vector<8x128xf32>
    %533 = vector.extract_strided_slice %514 {offsets = [0, 384], sizes = [8, 128], strides = [1, 1]} : vector<8x512xf32> to vector<8x128xf32>
    %cst_186 = arith.constant 5.000000e-01 : f32
    %534 = vector.broadcast %cst_186 : f32 to vector<8x128xf32>
    %535 = arith.mulf %534, %533 : vector<8x128xf32>
    %536 = math.tanh %535 : vector<8x128xf32>
    %cst_187 = arith.constant 5.000000e-01 : f32
    %537 = vector.broadcast %cst_187 : f32 to vector<8x128xf32>
    %538 = arith.mulf %537, %536 : vector<8x128xf32>
    %cst_188 = arith.constant 5.000000e-01 : f32
    %539 = vector.broadcast %cst_188 : f32 to vector<8x128xf32>
    %540 = arith.addf %538, %539 : vector<8x128xf32>
    %541 = arith.mulf %530, %472 : vector<8x128xf32>
    %542 = arith.mulf %522, %532 : vector<8x128xf32>
    %543 = arith.addf %541, %542 : vector<8x128xf32>
    %544 = math.tanh %543 : vector<8x128xf32>
    %545 = arith.mulf %540, %544 : vector<8x128xf32>
    %cst_189 = arith.constant dense<0.000000e+00> : vector<8x512xf32>
    %546 = tpu.matmul %545, %4, %cst_189 {dimension_numbers = #tpu.dot_dimension_numbers<[1], [0], [0], [1], [0, 0, 1, 1], [], []>} : vector<8x128xf32>, vector<128x512xf32>, vector<8x512xf32> -> vector<8x512xf32>
    %cst_190 = arith.constant dense<0.000000e+00> : vector<8x512xf32>
    %547 = tpu.matmul %509, %5, %cst_190 {dimension_numbers = #tpu.dot_dimension_numbers<[1], [0], [0], [1], [0, 0, 1, 1], [], []>} : vector<8x128xf32>, vector<128x512xf32>, vector<8x512xf32> -> vector<8x512xf32>
    %548 = arith.addf %546, %547 : vector<8x512xf32>
    %549 = arith.addf %548, %8 : vector<8x512xf32>
    %550 = vector.extract_strided_slice %549 {offsets = [0, 0], sizes = [8, 128], strides = [1, 1]} : vector<8x512xf32> to vector<8x128xf32>
    %cst_191 = arith.constant 5.000000e-01 : f32
    %551 = vector.broadcast %cst_191 : f32 to vector<8x128xf32>
    %552 = arith.mulf %551, %550 : vector<8x128xf32>
    %553 = math.tanh %552 : vector<8x128xf32>
    %cst_192 = arith.constant 5.000000e-01 : f32
    %554 = vector.broadcast %cst_192 : f32 to vector<8x128xf32>
    %555 = arith.mulf %554, %553 : vector<8x128xf32>
    %cst_193 = arith.constant 5.000000e-01 : f32
    %556 = vector.broadcast %cst_193 : f32 to vector<8x128xf32>
    %557 = arith.addf %555, %556 : vector<8x128xf32>
    %558 = vector.extract_strided_slice %549 {offsets = [0, 128], sizes = [8, 128], strides = [1, 1]} : vector<8x512xf32> to vector<8x128xf32>
    %cst_194 = arith.constant 5.000000e-01 : f32
    %559 = vector.broadcast %cst_194 : f32 to vector<8x128xf32>
    %560 = arith.mulf %559, %558 : vector<8x128xf32>
    %561 = math.tanh %560 : vector<8x128xf32>
    %cst_195 = arith.constant 5.000000e-01 : f32
    %562 = vector.broadcast %cst_195 : f32 to vector<8x128xf32>
    %563 = arith.mulf %562, %561 : vector<8x128xf32>
    %cst_196 = arith.constant 5.000000e-01 : f32
    %564 = vector.broadcast %cst_196 : f32 to vector<8x128xf32>
    %565 = arith.addf %563, %564 : vector<8x128xf32>
    %566 = vector.extract_strided_slice %549 {offsets = [0, 256], sizes = [8, 128], strides = [1, 1]} : vector<8x512xf32> to vector<8x128xf32>
    %567 = math.tanh %566 : vector<8x128xf32>
    %568 = vector.extract_strided_slice %549 {offsets = [0, 384], sizes = [8, 128], strides = [1, 1]} : vector<8x512xf32> to vector<8x128xf32>
    %cst_197 = arith.constant 5.000000e-01 : f32
    %569 = vector.broadcast %cst_197 : f32 to vector<8x128xf32>
    %570 = arith.mulf %569, %568 : vector<8x128xf32>
    %571 = math.tanh %570 : vector<8x128xf32>
    %cst_198 = arith.constant 5.000000e-01 : f32
    %572 = vector.broadcast %cst_198 : f32 to vector<8x128xf32>
    %573 = arith.mulf %572, %571 : vector<8x128xf32>
    %cst_199 = arith.constant 5.000000e-01 : f32
    %574 = vector.broadcast %cst_199 : f32 to vector<8x128xf32>
    %575 = arith.addf %573, %574 : vector<8x128xf32>
    %576 = arith.mulf %565, %507 : vector<8x128xf32>
    %577 = arith.mulf %557, %567 : vector<8x128xf32>
    %578 = arith.addf %576, %577 : vector<8x128xf32>
    %579 = math.tanh %578 : vector<8x128xf32>
    %580 = arith.mulf %575, %579 : vector<8x128xf32>
    %c8_i32 = arith.constant 8 : i32
    %c0_200 = arith.constant 0 : index
    %c0_201 = arith.constant 0 : index
    %581 = vector.load %arg7[%c0_200, %c0_201] : memref<8x128xf32, #tpu.memory_space<vmem>>, vector<8x128xf32>
    tpu.vector_store %arg7[%c0_200, %c0_201], %545 {strides = array<i32>} : memref<8x128xf32, #tpu.memory_space<vmem>>, vector<8x128xf32>,
    %c0_202 = arith.constant 0 : index
    %c0_203 = arith.constant 0 : index
    %582 = vector.load %arg8[%c0_202, %c0_203] : memref<8x128xf32, #tpu.memory_space<vmem>>, vector<8x128xf32>
    tpu.vector_store %arg8[%c0_202, %c0_203], %543 {strides = array<i32>} : memref<8x128xf32, #tpu.memory_space<vmem>>, vector<8x128xf32>,
    %c0_204 = arith.constant 0 : index
    %c0_205 = arith.constant 0 : index
    %583 = vector.load %arg9[%c0_204, %c0_205] : memref<8x128xf32, #tpu.memory_space<vmem>>, vector<8x128xf32>
    tpu.vector_store %arg9[%c0_204, %c0_205], %578 {strides = array<i32>} : memref<8x128xf32, #tpu.memory_space<vmem>>, vector<8x128xf32>,
    %c0_206 = arith.constant 0 : index
    %c0_207 = arith.constant 0 : index
    %584 = vector.load %arg6[%c0_206, %c0_207] : memref<8x128xf32, #tpu.memory_space<vmem>>, vector<8x128xf32>
    tpu.vector_store %arg6[%c0_206, %c0_207], %580 {strides = array<i32>} : memref<8x128xf32, #tpu.memory_space<vmem>>, vector<8x128xf32>,
    return
  }
  func.func @transform_0(%arg0: i32) -> (i32, i32, i32) {
    %c0_i32 = arith.constant 0 : i32
    %c0_i32_0 = arith.constant 0 : i32
    %c0_i32_1 = arith.constant 0 : i32
    return %arg0, %c0_i32, %c0_i32_0 : i32, i32, i32
  }
  func.func @transform_1(%arg0: i32) -> (i32, i32) {
    %c0_i32 = arith.constant 0 : i32
    %c0_i32_0 = arith.constant 0 : i32
    %c0_i32_1 = arith.constant 0 : i32
    return %c0_i32, %c0_i32_0 : i32, i32
  }
  func.func @transform_2(%arg0: i32) -> (i32, i32) {
    %c0_i32 = arith.constant 0 : i32
    %c0_i32_0 = arith.constant 0 : i32
    %c0_i32_1 = arith.constant 0 : i32
    return %c0_i32, %c0_i32_0 : i32, i32
  }
  func.func @transform_3(%arg0: i32) -> (i32, i32) {
    %c0_i32 = arith.constant 0 : i32
    %c0_i32_0 = arith.constant 0 : i32
    %c0_i32_1 = arith.constant 0 : i32
    return %c0_i32, %c0_i32_0 : i32, i32
  }
  func.func @transform_4(%arg0: i32) -> (i32, i32) {
    %c0_i32 = arith.constant 0 : i32
    %c0_i32_0 = arith.constant 0 : i32
    %c0_i32_1 = arith.constant 0 : i32
    return %c0_i32, %c0_i32_0 : i32, i32
  }
  func.func @transform_5(%arg0: i32) -> (i32, i32) {
    %c0_i32 = arith.constant 0 : i32
    %c0_i32_0 = arith.constant 0 : i32
    %c0_i32_1 = arith.constant 0 : i32
    return %c0_i32, %c0_i32_0 : i32, i32
  }
}

</mosaic_0001>

<bundles_post_ra>
// kernel: tpu_custom_call.1
= control target key start
LH: loop header
LB: loop body
LE: loop exit
PB: predicated region body
PF: predicated region fallthrough
CT: control target
= control target key end

     0   :  { %10 = vsyncpa [#allocation6], 0  ;;  %s7211_s0 = inlined_call_operand.hbm [shape: f32[8,8,512], index: 0, kind: input, shape index: {}]   ;;  %s7212_s1 = inlined_call_operand.hbm [shape: f32[128,512], index: 1, kind: input, shape index: {}]   ;;  %s7213_s2 = inlined_call_operand.hbm [shape: f32[128,512], index: 2, kind: input, shape index: {}]   ;;  %s7214_s3 = inlined_call_operand.hbm [shape: f32[128,512], index: 3, kind: input, shape index: {}]   ;;  %s7215_s4 = inlined_call_operand.vmem [shape: f32[1,512], index: 4, kind: input, shape index: {}]   ;;  %s7216_s5 = inlined_call_operand.hbm [shape: f32[8,128], index: 5, kind: output, shape index: {}]  }
   0x1   :  { %11 = vsyncpa [#allocation9], 0 }
   0x2   :  { %12 = vsyncpa [#allocation12], 0 }
   0x3   :  { %13 = vsyncpa [#allocation7], 0  ;;  %s5976_s18 = smov [#allocation8]   ;;  %s5977_s20 = smov [#allocation5]  }
   0x4   :  { %s31_s19 = sshll.u32 %s5976_s18, 4  ;;  %s19_s21 = sshll.u32 %s5977_s20, 4  ;;  %s32_s19 = int_to_ptr.vmem [resolvable:$true] %s31_s19  ;;  %s6014_s21 = int_to_ptr.vmem [resolvable:$true] %s19_s21 }
   0x5   :  { %s5858_s24 = scalar_lea.hbm %s7212_s1, 8192 }
   0x6   :  { %p5859_p0 = scmp.ne.s32.totalorder %s7212_s1, %s5858_s24  ;;  %p5862_p1 = scmp.lt.u32.totalorder %s5858_s24, %s7212_s1 }
   0x8   :  { %p5864_p2 = pnand %p5862_p1, %p5859_p0 }
   0xa   :  { %5867 = shalt.err (!%p5864_p2)
}
   0xb   :  { %s5868_s29 = scalar_lea.vmem %s32_s19, 8192  ;;  %p5873_p4 = scmp.lt.s32.totalorder %s32_s19, %s32_s19 }
   0xc   :  { %p5869_p3 = scmp.ne.s32.totalorder %s32_s19, %s5868_s29  ;;  %p5874_p5 = scmp.lt.s32.totalorder %s5868_s29, %s5868_s29 }
   0xe   :  { %p5875_p6 = por %p5874_p5, %p5873_p4 }
  0x10   :  { %p5876_p7 = pnand %p5875_p6, %p5869_p3 }
  0x12   :  { %5879 = shalt.err (!%p5876_p7)
}
  0x13   :  { %s5978_s30 = smov 512   ;;  %s5979_s6 = smov 32  }
  0x14   :  { %37 = dma.hbm_to_vmem [thread:$0]  %s7212_s1, 8192, %s32_s19, [#allocation9], %s5978_s30, %s5978_s30, %s5979_s6  }
  0x15   :  { %s5880_s11 = scalar_lea.hbm %s7211_s0, 4096 }
  0x16   :  { %p5881_p8 = scmp.ne.s32.totalorder %s7211_s0, %s5880_s11  ;;  %p5884_p9 = scmp.lt.u32.totalorder %s5880_s11, %s7211_s0 }
  0x18   :  { %p5886_p10 = pnand %p5884_p9, %p5881_p8 }
  0x1a   :  { %5889 = shalt.err (!%p5886_p10)
}
  0x1b   :  { %s5890_s16 = scalar_lea.vmem %s6014_s21, 4096  ;;  %p5895_p12 = scmp.lt.s32.totalorder %s6014_s21, %s6014_s21 }
  0x1c   :  { %p5891_p11 = scmp.ne.s32.totalorder %s6014_s21, %s5890_s16  ;;  %p5896_p13 = scmp.lt.s32.totalorder %s5890_s16, %s5890_s16 }
  0x1e   :  { %p5897_p0 = por %p5896_p13, %p5895_p12 }
  0x20   :  { %p5898_p1 = pnand %p5897_p0, %p5891_p11 }
  0x22   :  { %5901 = shalt.err (!%p5898_p1)
}
  0x23   :  { %25 = dma.hbm_to_vmem [thread:$0]  %s7211_s0, 4096, %s6014_s21, [#allocation6], %s5978_s30, %s5978_s30, %s5979_s6  }
  0x24   :  { %s5980_s18 = smov [#allocation10]   ;;  %s5981_s20 = smov [#allocation11]  }
  0x25   :  { %s43_s19 = sshll.u32 %s5980_s18, 4  ;;  %s55_s22 = sshll.u32 %s5981_s20, 4  ;;  %s44_s19 = int_to_ptr.vmem [resolvable:$true] %s43_s19  ;;  %s6051_s22 = int_to_ptr.vmem [resolvable:$true] %s55_s22 }
  0x26   :  { %s5902_s25 = scalar_lea.hbm %s7213_s2, 8192 }
  0x27   :  { %p5903_p2 = scmp.ne.s32.totalorder %s7213_s2, %s5902_s25  ;;  %p5906_p3 = scmp.lt.u32.totalorder %s5902_s25, %s7213_s2 }
  0x29   :  { %p5908_p4 = pnand %p5906_p3, %p5903_p2 }
  0x2b   :  { %5911 = shalt.err (!%p5908_p4)
}
  0x2c   :  { %s5912_s0 = scalar_lea.vmem %s44_s19, 8192  ;;  %p5917_p6 = scmp.lt.s32.totalorder %s44_s19, %s44_s19 }
  0x2d   :  { %p5913_p5 = scmp.ne.s32.totalorder %s44_s19, %s5912_s0  ;;  %p5918_p7 = scmp.lt.s32.totalorder %s5912_s0, %s5912_s0 }
  0x2f   :  { %p5919_p8 = por %p5918_p7, %p5917_p6 }
  0x31   :  { %p5920_p9 = pnand %p5919_p8, %p5913_p5 }
  0x33   :  { %5923 = shalt.err (!%p5920_p9)
}
  0x34   :  { %49 = dma.hbm_to_vmem [thread:$0]  %s7213_s2, 8192, %s44_s19, [#allocation9], %s5978_s30, %s5978_s30, %s5979_s6  }
  0x35   :  { %s5924_s10 = scalar_lea.hbm %s7214_s3, 8192 }
  0x36   :  { %p5925_p10 = scmp.ne.s32.totalorder %s7214_s3, %s5924_s10  ;;  %p5928_p11 = scmp.lt.u32.totalorder %s5924_s10, %s7214_s3 }
  0x38   :  { %p5930_p12 = pnand %p5928_p11, %p5925_p10 }
  0x3a   :  { %5933 = shalt.err (!%p5930_p12)
}
  0x3b   :  { %s5934_s15 = scalar_lea.vmem %s6051_s22, 8192  ;;  %p5939_p0 = scmp.lt.s32.totalorder %s6051_s22, %s6051_s22 }
  0x3c   :  { %p5935_p13 = scmp.ne.s32.totalorder %s6051_s22, %s5934_s15  ;;  %p5940_p1 = scmp.lt.s32.totalorder %s5934_s15, %s5934_s15 }
  0x3e   :  { %p5941_p2 = por %p5940_p1, %p5939_p0 }
  0x40   :  { %p5942_p3 = pnand %p5941_p2, %p5935_p13 }
  0x42   :  { %5945 = shalt.err (!%p5942_p3)
}
  0x43   :  { %61 = dma.hbm_to_vmem [thread:$0]  %s7214_s3, 8192, %s6051_s22, [#allocation12], %s5978_s30, %s5978_s30, %s5979_s6  }
  0x44   :  { %5968 = dma.done.wait [#allocation6], 4096  }
  0x45   :  { %5969 = vsyncadd [#allocation6], 4294963200 }
  0x46   :  { %5970 = dma.done.wait [#allocation9], 16384  }
  0x47   :  { %5971 = vsyncadd [#allocation9], 4294950912 }
  0x48   :  { %5972 = dma.done.wait [#allocation12], 8192  }
  0x49   :  { %5973 = vsyncadd [#allocation12], 4294959104  ;;  %v7217_v0 = vmov 0.0   ;;  %v85_v1 = vld [vmem:[#allocation8 + $0x8] sm:$0xff]  ;;  %v84_v3 = vld [vmem:[#allocation8] sm:$0xff] }
  0x4a   :  { %370 = vmatprep.mubr.f32.mxu0 %v7217_v0  ;;  %441 = vmatprep.mubr.f32.mxu1 %v7217_v0  ;;  %v89_v2 = vld [vmem:[#allocation8 + $0x28] sm:$0xff]  ;;  %v88_v5 = vld [vmem:[#allocation8 + $0x20] sm:$0xff]  ;;  %v87_v12 = vld [vmem:[#allocation8 + $0x18] sm:$0xff] }
  0x4b   :  { %v6090_v4 = vpack.c.bf16 %v89_v2, %v85_v1  ;;  %v93_v6 = vld [vmem:[#allocation8 + $0x48] sm:$0xff]  ;;  %v6092_v8 = vpack.c.bf16 %v88_v5, %v84_v3  ;;  %v92_v10 = vld [vmem:[#allocation8 + $0x40] sm:$0xff]  ;;  %v91_v13 = vld [vmem:[#allocation8 + $0x38] sm:$0xff] }
  0x4c   :  { %v97_v7 = vld [vmem:[#allocation8 + $0x68] sm:$0xff]  ;;  %v96_v11 = vld [vmem:[#allocation8 + $0x60] sm:$0xff]  ;;  %v86_v14 = vld [vmem:[#allocation8 + $0x10] sm:$0xff]  ;;  %v6100_v17 = vpack.c.bf16 %v91_v13, %v87_v12 }
  0x4d   :  { %7402 = vst [vmem:[#allocation18_spill] sm:$0xff] %v6090_v4  ;;  %v6094_v9 = vpack.c.bf16 %v97_v7, %v93_v6  ;;  %4123 = vmatprep.subr.bf16.mxu0 %v6090_v4  ;;  %v90_v15 = vld [vmem:[#allocation8 + $0x30] sm:$0xff]  ;;  %v6098_v16 = vpack.c.bf16 %v96_v11, %v92_v10  ;;  %v101_v19 = vld [vmem:[#allocation8 + $0x88] sm:$0xff]  ;;  %v100_v21 = vld [vmem:[#allocation8 + $0x80] sm:$0xff] }
  0x4e   :  { %4125 = vmatpush1.bf16.msra.mxu0 %v6092_v8  ;;  %7403 = vst [vmem:[#allocation19_spill] sm:$0xff] %v6100_v17  ;;  %v6102_v18 = vpack.c.bf16 %v90_v15, %v86_v14  ;;  %v105_v20 = vld [vmem:[#allocation8 + $0xa8] sm:$0xff]  ;;  %v104_v23 = vld [vmem:[#allocation8 + $0xa0] sm:$0xff]  ;;  %v95_v24 = vld [vmem:[#allocation8 + $0x58] sm:$0xff]  ;;  %4155 = vmatprep.subr.bf16.mxu1 %v6100_v17 }
  0x4f   :  { %4127 = vmatprep.subr.bf16.mxu0 %v6094_v9  ;;  %v6105_v22 = vpack.c.bf16 %v105_v20, %v101_v19  ;;  %v99_v25 = vld [vmem:[#allocation8 + $0x78] sm:$0xff]  ;;  %v94_v27 = vld [vmem:[#allocation8 + $0x50] sm:$0xff]  ;;  %v109_v29 = vld [vmem:[#allocation8 + $0xc8] sm:$0xff]  ;;  %v6114_v32 = vpack.c.bf16 %v104_v23, %v100_v21 }
  0x50   :  { %v6108_v26 = vpack.c.bf16 %v99_v25, %v95_v24  ;;  %v98_v28 = vld [vmem:[#allocation8 + $0x70] sm:$0xff]  ;;  %4157 = vmatpush1.bf16.msra.mxu1 %v6102_v18  ;;  %v113_v31 = vld [vmem:[#allocation8 + $0xe8] sm:$0xff]  ;;  %v103_v33 = vld [vmem:[#allocation8 + $0x98] sm:$0xff] }
  0x51   :  { %v6111_v30 = vpack.c.bf16 %v98_v28, %v94_v27  ;;  %7404 = vst [vmem:[#allocation20_spill] sm:$0xff] %v6114_v32  ;;  %v107_v34 = vld [vmem:[#allocation8 + $0xb8] sm:$0xff]  ;;  %v102_v35 = vld [vmem:[#allocation8 + $0x90] sm:$0xff]  ;;  %v6118_v36 = vpack.c.bf16 %v113_v31, %v109_v29  ;;  %v108_v37 = vld [vmem:[#allocation8 + $0xc0] sm:$0xff] }
  0x52   :  { %4129 = vmatpush1.bf16.msra.mxu0 %v6098_v16  ;;  %4159 = vmatprep.subr.bf16.mxu1 %v6108_v26  ;;  %v112_v38 = vld [vmem:[#allocation8 + $0xe0] sm:$0xff]  ;;  %v6120_v39 = vpack.c.bf16 %v107_v34, %v103_v33  ;;  %v106_v40 = vld [vmem:[#allocation8 + $0xb0] sm:$0xff]  ;;  %v117_v41 = vld [vmem:[#allocation8 + $0x108] sm:$0xff] }
  0x53   :  { %4131 = vmatprep.subr.bf16.mxu0 %v6105_v22  ;;  %7405 = vst [vmem:[#allocation21_spill] sm:$0xff] %v6118_v36  ;;  %v121_v42 = vld [vmem:[#allocation8 + $0x128] sm:$0xff]  ;;  %v111_v43 = vld [vmem:[#allocation8 + $0xd8] sm:$0xff]  ;;  %v6123_v44 = vpack.c.bf16 %v106_v40, %v102_v35  ;;  %v6126_v46 = vpack.c.bf16 %v112_v38, %v108_v37  ;;  %v116_v47 = vld [vmem:[#allocation8 + $0x100] sm:$0xff] }
  0x54   :  { %4161 = vmatpush1.bf16.msra.mxu1 %v6111_v30  ;;  %v115_v45 = vld [vmem:[#allocation8 + $0xf8] sm:$0xff]  ;;  %v110_v49 = vld [vmem:[#allocation8 + $0xd0] sm:$0xff]  ;;  %v6132_v51 = vpack.c.bf16 %v121_v42, %v117_v41  ;;  %v120_v52 = vld [vmem:[#allocation8 + $0x120] sm:$0xff] }
  0x55   :  { %7406 = vst [vmem:[#allocation22_spill] sm:$0xff] %v6123_v44  ;;  %7407 = vst [vmem:[#allocation23_spill] sm:$0xff] %v6126_v46  ;;  %4163 = vmatprep.subr.bf16.mxu1 %v6120_v39  ;;  %v6129_v48 = vpack.c.bf16 %v115_v45, %v111_v43  ;;  %v114_v50 = vld [vmem:[#allocation8 + $0xf0] sm:$0xff]  ;;  %v119_v53 = vld [vmem:[#allocation8 + $0x118] sm:$0xff]  ;;  %v6138_v58 = vpack.c.bf16 %v120_v52, %v116_v47 }
  0x56   :  { %4133 = vmatpush1.bf16.msra.mxu0 %v6114_v32  ;;  %7409 = vst [vmem:[#allocation25_spill] sm:$0xff] %v6132_v51  ;;  %v123_v54 = vld [vmem:[#allocation8 + $0x138] sm:$0xff]  ;;  %v125_v55 = vld [vmem:[#allocation8 + $0x148] sm:$0xff]  ;;  %v6135_v57 = vpack.c.bf16 %v114_v50, %v110_v49  ;;  %v124_v59 = vld [vmem:[#allocation8 + $0x140] sm:$0xff] }
  0x57   :  { %7408 = vst [vmem:[#allocation24_spill] sm:$0xff] %v6129_v48  ;;  %4135 = vmatprep.subr.bf16.mxu0 %v6118_v36  ;;  %v129_v56 = vld [vmem:[#allocation8 + $0x168] sm:$0xff]  ;;  %7411 = vst [vmem:[#allocation27_spill] sm:$0xff] %v6138_v58  ;;  %v6141_v60 = vpack.c.bf16 %v123_v54, %v119_v53  ;;  %v118_v61 = vld [vmem:[#allocation8 + $0x110] sm:$0xff] }
  0x58   :  { %4165 = vmatpush1.bf16.msra.mxu1 %v6123_v44  ;;  %7410 = vst [vmem:[#allocation26_spill] sm:$0xff] %v6135_v57  ;;  %v122_v62 = vld [vmem:[#allocation8 + $0x130] sm:$0xff]  ;;  %v6144_v63 = vpack.c.bf16 %v129_v56, %v125_v55  ;;  %v128_v1 = vld [vmem:[#allocation8 + $0x160] sm:$0xff]  ;;  %v127_v2 = vld [vmem:[#allocation8 + $0x158] sm:$0xff] }
  0x59   :  { %4167 = vmatprep.subr.bf16.mxu1 %v6129_v48  ;;  %7412 = vst [vmem:[#allocation28_spill] sm:$0xff] %v6141_v60  ;;  %v131_v3 = vld [vmem:[#allocation8 + $0x178] sm:$0xff]  ;;  %v133_v5 = vld [vmem:[#allocation8 + $0x188] sm:$0xff]  ;;  %v6147_v7 = vpack.c.bf16 %v122_v62, %v118_v61  ;;  %v6150_v10 = vpack.c.bf16 %v128_v1, %v124_v59  ;;  %v132_v11 = vld [vmem:[#allocation8 + $0x180] sm:$0xff] }
  0x5a   :  { %4137 = vmatpush1.bf16.msra.mxu0 %v6126_v46  ;;  %7413 = vst [vmem:[#allocation29_spill] sm:$0xff] %v6144_v63  ;;  %v137_v6 = vld [vmem:[#allocation8 + $0x1a8] sm:$0xff]  ;;  %v6153_v12 = vpack.c.bf16 %v131_v3, %v127_v2  ;;  %v126_v13 = vld [vmem:[#allocation8 + $0x150] sm:$0xff]  ;;  %v136_v19 = vld [vmem:[#allocation8 + $0x1a0] sm:$0xff] }
  0x5b   :  { %4139 = vmatprep.subr.bf16.mxu0 %v6132_v51  ;;  %7414 = vst [vmem:[#allocation30_spill] sm:$0xff] %v6147_v7  ;;  %7415 = vst [vmem:[#allocation31_spill] sm:$0xff] %v6150_v10  ;;  %v130_v14 = vld [vmem:[#allocation8 + $0x170] sm:$0xff]  ;;  %v6156_v15 = vpack.c.bf16 %v137_v6, %v133_v5  ;;  %v135_v20 = vld [vmem:[#allocation8 + $0x198] sm:$0xff]  ;;  %v6162_v27 = vpack.c.bf16 %v136_v19, %v132_v11 }
  0x5c   :  { %4169 = vmatpush1.bf16.msra.mxu1 %v6135_v57  ;;  %7416 = vst [vmem:[#allocation32_spill] sm:$0xff] %v6153_v12  ;;  %v139_v21 = vld [vmem:[#allocation8 + $0x1b8] sm:$0xff]  ;;  %v141_v23 = vld [vmem:[#allocation8 + $0x1c8] sm:$0xff]  ;;  %v6159_v25 = vpack.c.bf16 %v130_v14, %v126_v13  ;;  %v140_v28 = vld [vmem:[#allocation8 + $0x1c0] sm:$0xff] }
  0x5d   :  { %4171 = vmatprep.subr.bf16.mxu1 %v6141_v60  ;;  %7417 = vst [vmem:[#allocation33_spill] sm:$0xff] %v6156_v15  ;;  %v145_v24 = vld [vmem:[#allocation8 + $0x1e8] sm:$0xff]  ;;  %7419 = vst [vmem:[#allocation35_spill] sm:$0xff] %v6162_v27  ;;  %v6165_v29 = vpack.c.bf16 %v139_v21, %v135_v20  ;;  %v134_v31 = vld [vmem:[#allocation8 + $0x190] sm:$0xff] }
  0x5e   :  { %4141 = vmatpush1.bf16.msra.mxu0 %v6138_v58  ;;  %7418 = vst [vmem:[#allocation34_spill] sm:$0xff] %v6159_v25  ;;  %v138_v33 = vld [vmem:[#allocation8 + $0x1b0] sm:$0xff]  ;;  %v6168_v34 = vpack.c.bf16 %v145_v24, %v141_v23  ;;  %v144_v35 = vld [vmem:[#allocation8 + $0x1e0] sm:$0xff]  ;;  %v143_v37 = vld [vmem:[#allocation8 + $0x1d8] sm:$0xff] }
  0x5f   :  { %4143 = vmatprep.subr.bf16.mxu0 %v6144_v63  ;;  %7420 = vst [vmem:[#allocation36_spill] sm:$0xff] %v6165_v29  ;;  %v147_v38 = vld [vmem:[#allocation8 + $0x1f8] sm:$0xff]  ;;  %v213_v40 = vld [vmem:[#allocation11 + $0x8] sm:$0xff]  ;;  %v6171_v42 = vpack.c.bf16 %v138_v33, %v134_v31  ;;  %v6174_v43 = vpack.c.bf16 %v144_v35, %v140_v28  ;;  %v142_v47 = vld [vmem:[#allocation8 + $0x1d0] sm:$0xff] }
  0x60   :  { %4173 = vmatpush1.bf16.msra.mxu1 %v6147_v7  ;;  %7421 = vst [vmem:[#allocation37_spill] sm:$0xff] %v6168_v34  ;;  %v217_v41 = vld [vmem:[#allocation11 + $0x28] sm:$0xff]  ;;  %v6177_v45 = vpack.c.bf16 %v147_v38, %v143_v37  ;;  %v146_v49 = vld [vmem:[#allocation8 + $0x1f0] sm:$0xff]  ;;  %v215_v50 = vld [vmem:[#allocation11 + $0x18] sm:$0xff] }
  0x61   :  { %4175 = vmatprep.subr.bf16.mxu1 %v6153_v12  ;;  %7422 = vst [vmem:[#allocation38_spill] sm:$0xff] %v6171_v42  ;;  %7423 = vst [vmem:[#allocation39_spill] sm:$0xff] %v6174_v43  ;;  %v6180_v52 = vpack.c.bf16 %v217_v41, %v213_v40  ;;  %v219_v53 = vld [vmem:[#allocation11 + $0x38] sm:$0xff]  ;;  %v212_v54 = vld [vmem:[#allocation11] sm:$0xff]  ;;  %v6183_v61 = vpack.c.bf16 %v146_v49, %v142_v47 }
  0x62   :  { %4145 = vmatpush1.bf16.msra.mxu0 %v6150_v10  ;;  %7424 = vst [vmem:[#allocation40_spill] sm:$0xff] %v6177_v45  ;;  %v216_v55 = vld [vmem:[#allocation11 + $0x20] sm:$0xff]  ;;  %v221_v56 = vld [vmem:[#allocation11 + $0x48] sm:$0xff]  ;;  %v6187_v62 = vpack.c.bf16 %v219_v53, %v215_v50  ;;  %v214_v2 = vld [vmem:[#allocation11 + $0x10] sm:$0xff] }
  0x63   :  { %4147 = vmatprep.subr.bf16.mxu0 %v6156_v15  ;;  %7425 = vst [vmem:[#allocation41_spill] sm:$0xff] %v6180_v52  ;;  %v225_v59 = vld [vmem:[#allocation11 + $0x68] sm:$0xff]  ;;  %7426 = vst [vmem:[#allocation42_spill] sm:$0xff] %v6183_v61  ;;  %v6189_v1 = vpack.c.bf16 %v216_v55, %v212_v54  ;;  %v218_v3 = vld [vmem:[#allocation11 + $0x30] sm:$0xff] }
  0x64   :  { %4177 = vmatpush1.bf16.msra.mxu1 %v6159_v25  ;;  %7427 = vst [vmem:[#allocation43_spill] sm:$0xff] %v6187_v62  ;;  %v223_v5 = vld [vmem:[#allocation11 + $0x58] sm:$0xff]  ;;  %v6192_v6 = vpack.c.bf16 %v225_v59, %v221_v56  ;;  %v220_v13 = vld [vmem:[#allocation11 + $0x40] sm:$0xff]  ;;  %v229_v19 = vld [vmem:[#allocation11 + $0x88] sm:$0xff]  ;;  %v6196_v21 = vpack.c.bf16 %v218_v3, %v214_v2 }
  0x65   :  { %4179 = vmatprep.subr.bf16.mxu1 %v6165_v29  ;;  %7428 = vst [vmem:[#allocation44_spill] sm:$0xff] %v6189_v1  ;;  %v227_v11 = vld [vmem:[#allocation11 + $0x78] sm:$0xff]  ;;  %v224_v14 = vld [vmem:[#allocation11 + $0x60] sm:$0xff]  ;;  %v233_v20 = vld [vmem:[#allocation11 + $0xa8] sm:$0xff] }
  0x66   :  { %4149 = vmatpush1.bf16.msra.mxu0 %v6162_v27  ;;  %7429 = vst [vmem:[#allocation45_spill] sm:$0xff] %v6192_v6  ;;  %7430 = vst [vmem:[#allocation46_spill] sm:$0xff] %v6196_v21  ;;  %v6200_v23 = vpack.c.bf16 %v227_v11, %v223_v5  ;;  %v6202_v24 = vpack.c.bf16 %v224_v14, %v220_v13  ;;  %v222_v28 = vld [vmem:[#allocation11 + $0x50] sm:$0xff]  ;;  %v231_v33 = vld [vmem:[#allocation11 + $0x98] sm:$0xff]  ;;  %v6205_v35 = vpack.c.bf16 %v233_v20, %v229_v19 }
  0x67   :  { %4151 = vmatprep.subr.bf16.mxu0 %v6168_v34  ;;  %v226_v31 = vld [vmem:[#allocation11 + $0x70] sm:$0xff]  ;;  %v235_v37 = vld [vmem:[#allocation11 + $0xb8] sm:$0xff]  ;;  %v228_v38 = vld [vmem:[#allocation11 + $0x80] sm:$0xff] }
  0x68   :  { %4181 = vmatpush1.bf16.msra.mxu1 %v6171_v42  ;;  %7431 = vst [vmem:[#allocation47_spill] sm:$0xff] %v6200_v23  ;;  %7432 = vst [vmem:[#allocation48_spill] sm:$0xff] %v6202_v24  ;;  %v232_v40 = vld [vmem:[#allocation11 + $0xa0] sm:$0xff]  ;;  %v237_v41 = vld [vmem:[#allocation11 + $0xc8] sm:$0xff]  ;;  %v6210_v49 = vpack.c.bf16 %v226_v31, %v222_v28  ;;  %v6215_v50 = vpack.c.bf16 %v235_v37, %v231_v33 }
  0x69   :  { %4183 = vmatprep.subr.bf16.mxu1 %v6177_v45  ;;  %7433 = vst [vmem:[#allocation49_spill] sm:$0xff] %v6205_v35  ;;  %v241_v47 = vld [vmem:[#allocation11 + $0xe8] sm:$0xff]  ;;  %v6217_v53 = vpack.c.bf16 %v232_v40, %v228_v38  ;;  %v230_v54 = vld [vmem:[#allocation11 + $0x90] sm:$0xff]  ;;  %v239_v56 = vld [vmem:[#allocation11 + $0xd8] sm:$0xff] }
  0x6a   :  { %4153 = vmatpush1.bf16.msra.mxu0 %v6174_v43  ;;  %7434 = vst [vmem:[#allocation50_spill] sm:$0xff] %v6210_v49  ;;  %7435 = vst [vmem:[#allocation51_spill] sm:$0xff] %v6215_v50  ;;  %v234_v55 = vld [vmem:[#allocation11 + $0xb0] sm:$0xff]  ;;  %v6220_v59 = vpack.c.bf16 %v241_v47, %v237_v41  ;;  %v243_v2 = vld [vmem:[#allocation11 + $0xf8] sm:$0xff] }
  0x6b   :  { %4187 = vmatprep.subr.bf16.mxu0 %v6180_v52  ;;  %7436 = vst [vmem:[#allocation52_spill] sm:$0xff] %v6217_v53  ;;  %v236_v3 = vld [vmem:[#allocation11 + $0xc0] sm:$0xff]  ;;  %v245_v11 = vld [vmem:[#allocation11 + $0x108] sm:$0xff]  ;;  %v6223_v14 = vpack.c.bf16 %v234_v55, %v230_v54  ;;  %v6227_v19 = vpack.c.bf16 %v243_v2, %v239_v56  ;;  %v238_v28 = vld [vmem:[#allocation11 + $0xd0] sm:$0xff] }
  0x6c   :  { %4185 = vmatpush1.bf16.msra.mxu1 %v6183_v61  ;;  %7437 = vst [vmem:[#allocation53_spill] sm:$0xff] %v6220_v59  ;;  %v240_v5 = vld [vmem:[#allocation11 + $0xe0] sm:$0xff]  ;;  %v249_v13 = vld [vmem:[#allocation11 + $0x128] sm:$0xff]  ;;  %v242_v31 = vld [vmem:[#allocation11 + $0xf0] sm:$0xff] }
  0x6d   :  { %371 = vmatmul.mubr.f32.vlgmr.msra.gmra.mrb[0].mxu0 %v7217_v0  ;;  %4219 = vmatprep.subr.bf16.mxu1 %v6187_v62  ;;  %7438 = vst [vmem:[#allocation54_spill] sm:$0xff] %v6223_v14  ;;  %7439 = vst [vmem:[#allocation55_spill] sm:$0xff] %v6227_v19  ;;  %v6229_v20 = vpack.c.bf16 %v240_v5, %v236_v3  ;;  %v247_v33 = vld [vmem:[#allocation11 + $0x118] sm:$0xff]  ;;  %v6232_v37 = vpack.c.bf16 %v249_v13, %v245_v11  ;;  %v244_v40 = vld [vmem:[#allocation11 + $0x100] sm:$0xff] }
  0x6e   :  { %4189 = vmatpush1.bf16.msra.mxu0 %v6189_v1  ;;  %534 = vmatprep.mubr.f32.mxu0 %v7217_v0  ;;  %v251_v38 = vld [vmem:[#allocation11 + $0x138] sm:$0xff]  ;;  %v248_v41 = vld [vmem:[#allocation11 + $0x120] sm:$0xff]  ;;  %v253_v47 = vld [vmem:[#allocation11 + $0x148] sm:$0xff]  ;;  %v6235_v55 = vpack.c.bf16 %v242_v31, %v238_v28 }
  0x6f   :  { %4191 = vmatprep.subr.bf16.mxu0 %v6192_v6  ;;  %442 = vmatmul.mubr.f32.vlgmr.msra.gmra.mrb[0].mxu1 %v7217_v0  ;;  %7440 = vst [vmem:[#allocation56_spill] sm:$0xff] %v6229_v20  ;;  %7441 = vst [vmem:[#allocation57_spill] sm:$0xff] %v6232_v37  ;;  %v257_v54 = vld [vmem:[#allocation11 + $0x168] sm:$0xff]  ;;  %v6239_v56 = vpack.c.bf16 %v251_v38, %v247_v33  ;;  %v6241_v2 = vpack.c.bf16 %v248_v41, %v244_v40  ;;  %v246_v3 = vld [vmem:[#allocation11 + $0x110] sm:$0xff] }
  0x70   :  { %4221 = vmatpush1.bf16.msra.mxu1 %v6196_v21  ;;  %605 = vmatprep.mubr.f32.mxu1 %v7217_v0  ;;  %7442 = vst [vmem:[#allocation58_spill] sm:$0xff] %v6235_v55  ;;  %v250_v5 = vld [vmem:[#allocation11 + $0x130] sm:$0xff]  ;;  %v255_v11 = vld [vmem:[#allocation11 + $0x158] sm:$0xff]  ;;  %v6244_v13 = vpack.c.bf16 %v257_v54, %v253_v47  ;;  %v261_v28 = vld [vmem:[#allocation11 + $0x188] sm:$0xff] }
  0x71   :  { %4223 = vmatprep.subr.bf16.mxu1 %v6200_v23  ;;  %7443 = vst [vmem:[#allocation59_spill] sm:$0xff] %v6239_v56  ;;  %7444 = vst [vmem:[#allocation60_spill] sm:$0xff] %v6241_v2  ;;  %v259_v0 = vld [vmem:[#allocation11 + $0x178] sm:$0xff]  ;;  %v265_v31 = vld [vmem:[#allocation11 + $0x1a8] sm:$0xff] }
  0x72   :  { %4193 = vmatpush1.bf16.msra.mxu0 %v6202_v24  ;;  %7445 = vst [vmem:[#allocation61_spill] sm:$0xff] %v6244_v13  ;;  %v6251_v33 = vpack.c.bf16 %v259_v0, %v255_v11  ;;  %v254_v40 = vld [vmem:[#allocation11 + $0x150] sm:$0xff]  ;;  %v263_v47 = vld [vmem:[#allocation11 + $0x198] sm:$0xff]  ;;  %v6256_v54 = vpack.c.bf16 %v265_v31, %v261_v28  ;;  %v269_v28 = vld [vmem:[#allocation11 + $0x1c8] sm:$0xff] }
  0x73   :  { %4195 = vmatprep.subr.bf16.mxu0 %v6205_v35  ;;  %v258_v41 = vld [vmem:[#allocation11 + $0x170] sm:$0xff]  ;;  %v273_v31 = vld [vmem:[#allocation11 + $0x1e8] sm:$0xff] }
  0x74   :  { %4225 = vmatpush1.bf16.msra.mxu1 %v6210_v49  ;;  %7447 = vst [vmem:[#allocation63_spill] sm:$0xff] %v6251_v33  ;;  %7449 = vst [vmem:[#allocation65_spill] sm:$0xff] %v6256_v54 }
  0x75   :  { %4227 = vmatprep.subr.bf16.mxu1 %v6215_v50 }
  0x76   :  { %4197 = vmatpush1.bf16.msra.mxu0 %v6217_v53 }
  0x77   :  { %4199 = vmatprep.subr.bf16.mxu0 %v6220_v59  ;;  %v252_v59 = vld [vmem:[#allocation11 + $0x140] sm:$0xff] }
  0x78   :  { %4229 = vmatpush1.bf16.msra.mxu1 %v6223_v14  ;;  %v256_v14 = vld [vmem:[#allocation11 + $0x160] sm:$0xff] }
  0x79   :  { %4231 = vmatprep.subr.bf16.mxu1 %v6227_v19  ;;  %v6247_v19 = vpack.c.bf16 %v250_v5, %v246_v3  ;;  %v6253_v38 = vpack.c.bf16 %v256_v14, %v252_v59  ;;  %v6259_v3 = vpack.c.bf16 %v258_v41, %v254_v40  ;;  %v262_v14 = vld [vmem:[#allocation11 + $0x190] sm:$0xff]  ;;  %v6274_v40 = vpack.c.bf16 %v273_v31, %v269_v28  ;;  %v272_v41 = vld [vmem:[#allocation11 + $0x1e0] sm:$0xff]  ;;  %v153_v28 = vld [vmem:[#allocation10 + $0x28] sm:$0xff] }
  0x7a   :  { %4201 = vmatpush1.bf16.msra.mxu0 %v6229_v20  ;;  %v260_v20 = vld [vmem:[#allocation11 + $0x180] sm:$0xff]  ;;  %v266_v5 = vld [vmem:[#allocation11 + $0x1b0] sm:$0xff]  ;;  %v151_v31 = vld [vmem:[#allocation10 + $0x18] sm:$0xff] }
  0x7b   :  { %4203 = vmatprep.subr.bf16.mxu0 %v6232_v37  ;;  %7446 = vst [vmem:[#allocation62_spill] sm:$0xff] %v6247_v19  ;;  %7448 = vst [vmem:[#allocation64_spill] sm:$0xff] %v6253_v38  ;;  %v267_v37 = vld [vmem:[#allocation11 + $0x1b8] sm:$0xff]  ;;  %v6269_v11 = vpack.c.bf16 %v266_v5, %v262_v14  ;;  %v270_v14 = vld [vmem:[#allocation11 + $0x1d0] sm:$0xff] }
  0x7c   :  { %4233 = vmatpush1.bf16.msra.mxu1 %v6235_v55  ;;  %v264_v55 = vld [vmem:[#allocation11 + $0x1a0] sm:$0xff]  ;;  %7450 = vst [vmem:[#allocation66_spill] sm:$0xff] %v6259_v3  ;;  %v6263_v0 = vpack.c.bf16 %v267_v37, %v263_v47  ;;  %v271_v37 = vld [vmem:[#allocation11 + $0x1d8] sm:$0xff]  ;;  %7454 = vst [vmem:[#allocation70_spill] sm:$0xff] %v6274_v40 }
  0x7d   :  { %4235 = vmatprep.subr.bf16.mxu1 %v6239_v56  ;;  %v6265_v59 = vpack.c.bf16 %v264_v55, %v260_v20  ;;  %7453 = vst [vmem:[#allocation69_spill] sm:$0xff] %v6269_v11  ;;  %v275_v20 = vld [vmem:[#allocation11 + $0x1f8] sm:$0xff]  ;;  %v268_v55 = vld [vmem:[#allocation11 + $0x1c0] sm:$0xff]  ;;  %v274_v5 = vld [vmem:[#allocation11 + $0x1f0] sm:$0xff] }
  0x7e   :  { %4205 = vmatpush1.bf16.msra.mxu0 %v6241_v2  ;;  %7451 = vst [vmem:[#allocation67_spill] sm:$0xff] %v6263_v0  ;;  %v6276_v47 = vpack.c.bf16 %v275_v20, %v271_v37  ;;  %v155_v37 = vld [vmem:[#allocation10 + $0x38] sm:$0xff]  ;;  %v148_v20 = vld [vmem:[#allocation10] sm:$0xff] }
  0x7f   :  { %4207 = vmatprep.subr.bf16.mxu0 %v6244_v13  ;;  %7452 = vst [vmem:[#allocation68_spill] sm:$0xff] %v6265_v59 }
  0x80   :  { %4237 = vmatpush1.bf16.msra.mxu1 %v6247_v19  ;;  %7455 = vst [vmem:[#allocation71_spill] sm:$0xff] %v6276_v47 }
  0x81   :  { %4239 = vmatprep.subr.bf16.mxu1 %v6251_v33 }
  0x82   :  { %4209 = vmatpush1.bf16.msra.mxu0 %v6253_v38  ;;  %v168_v38 = vld [vmem:[#allocation10 + $0xa0] sm:$0xff] }
  0x83   :  { %4211 = vmatprep.subr.bf16.mxu0 %v6256_v54  ;;  %v6278_v54 = vpack.c.bf16 %v272_v41, %v268_v55  ;;  %v152_v55 = vld [vmem:[#allocation10 + $0x20] sm:$0xff]  ;;  %v6288_v41 = vpack.c.bf16 %v155_v37, %v151_v31  ;;  %v159_v37 = vld [vmem:[#allocation10 + $0x58] sm:$0xff] }
  0x84   :  { %4241 = vmatpush1.bf16.msra.mxu1 %v6259_v3  ;;  %v6290_v3 = vpack.c.bf16 %v152_v55, %v148_v20  ;;  %v163_v20 = vld [vmem:[#allocation10 + $0x78] sm:$0xff] }
  0x85   :  { %4243 = vmatprep.subr.bf16.mxu1 %v6263_v0  ;;  %7456 = vst [vmem:[#allocation72_spill] sm:$0xff] %v6278_v54  ;;  %v6281_v0 = vpack.c.bf16 %v274_v5, %v270_v14  ;;  %7459 = vst [vmem:[#allocation75_spill] sm:$0xff] %v6288_v41  ;;  %v150_v14 = vld [vmem:[#allocation10 + $0x10] sm:$0xff]  ;;  %v6302_v55 = vpack.c.bf16 %v163_v20, %v159_v37  ;;  %v167_v37 = vld [vmem:[#allocation10 + $0x98] sm:$0xff] }
  0x86   :  { %4213 = vmatpush1.bf16.msra.mxu0 %v6265_v59  ;;  %7460 = vst [vmem:[#allocation76_spill] sm:$0xff] %v6290_v3  ;;  %v154_v5 = vld [vmem:[#allocation10 + $0x30] sm:$0xff] }
  0x87   :  { %4215 = vmatprep.subr.bf16.mxu0 %v6274_v40  ;;  %7457 = vst [vmem:[#allocation73_spill] sm:$0xff] %v6281_v0  ;;  %7464 = vst [vmem:[#allocation79_spill] sm:$0xff] %v6302_v55  ;;  %v164_v40 = vld [vmem:[#allocation10 + $0x80] sm:$0xff] }
  0x88   :  { %4245 = vmatpush1.bf16.msra.mxu1 %v6269_v11  ;;  %v149_v11 = vld [vmem:[#allocation10 + $0x8] sm:$0xff] }
  0x89   :  { %4247 = vmatprep.subr.bf16.mxu1 %v6276_v47  ;;  %v6286_v59 = vpack.c.bf16 %v153_v28, %v149_v11  ;;  %v7461_v47 = vmov 0.0   ;;  %v157_v11 = vld [vmem:[#allocation10 + $0x48] sm:$0xff] }
  0x8a   :  { %4217 = vmatpush1.bf16.msra.mxu0 %v6278_v54  ;;  %v6294_v54 = vpack.c.bf16 %v154_v5, %v150_v14  ;;  %v161_v28 = vld [vmem:[#allocation10 + $0x68] sm:$0xff]  ;;  %v158_v14 = vld [vmem:[#allocation10 + $0x50] sm:$0xff] }
  0x8b   :  { %7458 = vst [vmem:[#allocation74_spill] sm:$0xff] %v6286_v59  ;;  %4251 = vmatprep.subr.bf16.mxu0 %v6286_v59  ;;  %v6300_v31 = vpack.c.bf16 %v161_v28, %v157_v11  ;;  %v156_v59 = vld [vmem:[#allocation10 + $0x40] sm:$0xff]  ;;  %v165_v28 = vld [vmem:[#allocation10 + $0x88] sm:$0xff] }
  0x8c   :  { %4249 = vmatpush1.bf16.msra.mxu1 %v6281_v0  ;;  %7462 = vst [vmem:[#allocation77_spill] sm:$0xff] %v6294_v54  ;;  %v160_v0 = vld [vmem:[#allocation10 + $0x60] sm:$0xff] }
  0x8d   :  { %535 = vmatmul.mubr.f32.vlgmr.msra.gmra.mrb[2].mxu0 %v7461_v47  ;;  %4283 = vmatprep.subr.bf16.mxu1 %v6288_v41  ;;  %7463 = vst [vmem:[#allocation78_spill] sm:$0xff] %v6300_v31  ;;  %v6307_v5 = vpack.c.bf16 %v160_v0, %v156_v59  ;;  %v171_v41 = vld [vmem:[#allocation10 + $0xb8] sm:$0xff]  ;;  %v6318_v0 = vpack.c.bf16 %v168_v38, %v164_v40  ;;  %v166_v59 = vld [vmem:[#allocation10 + $0x90] sm:$0xff] }
  0x8e   :  { %4253 = vmatpush1.bf16.msra.mxu0 %v6290_v3  ;;  %676 = vmatprep.mubr.f32.mxu0 %v7461_v47  ;;  %v162_v3 = vld [vmem:[#allocation10 + $0x70] sm:$0xff] }
  0x8f   :  { %606 = vmatmul.mubr.f32.vlgmr.msra.gmra.mrb[2].mxu1 %v7461_v47  ;;  %4255 = vmatprep.subr.bf16.mxu0 %v6300_v31  ;;  %7465 = vst [vmem:[#allocation80_spill] sm:$0xff] %v6307_v5  ;;  %v6310_v11 = vpack.c.bf16 %v162_v3, %v158_v14  ;;  %v6316_v31 = vpack.c.bf16 %v171_v41, %v167_v37  ;;  %7469 = vst [vmem:[#allocation84_spill] sm:$0xff] %v6318_v0  ;;  %v173_v14 = vld [vmem:[#allocation10 + $0xc8] sm:$0xff]  ;;  %v172_v41 = vld [vmem:[#allocation10 + $0xc0] sm:$0xff] }
  0x90   :  { %4285 = vmatpush1.bf16.msra.mxu1 %v6294_v54  ;;  %747 = vmatprep.mubr.f32.mxu1 %v7461_v47  ;;  %v169_v54 = vld [vmem:[#allocation10 + $0xa8] sm:$0xff]  ;;  %v176_v37 = vld [vmem:[#allocation10 + $0xe0] sm:$0xff] }
  0x91   :  { %4287 = vmatprep.subr.bf16.mxu1 %v6302_v55  ;;  %7466 = vst [vmem:[#allocation81_spill] sm:$0xff] %v6310_v11  ;;  %v6313_v20 = vpack.c.bf16 %v169_v54, %v165_v28  ;;  %7468 = vst [vmem:[#allocation83_spill] sm:$0xff] %v6316_v31  ;;  %v170_v55 = vld [vmem:[#allocation10 + $0xb0] sm:$0xff]  ;;  %v177_v54 = vld [vmem:[#allocation10 + $0xe8] sm:$0xff]  ;;  %v6330_v40 = vpack.c.bf16 %v176_v37, %v172_v41 }
  0x92   :  { %4257 = vmatpush1.bf16.msra.mxu0 %v6307_v5  ;;  %v6321_v3 = vpack.c.bf16 %v170_v55, %v166_v59  ;;  %v175_v28 = vld [vmem:[#allocation10 + $0xd8] sm:$0xff]  ;;  %v6325_v5 = vpack.c.bf16 %v177_v54, %v173_v14  ;;  %v174_v55 = vld [vmem:[#allocation10 + $0xd0] sm:$0xff]  ;;  %v185_v14 = vld [vmem:[#allocation10 + $0x128] sm:$0xff] }
  0x93   :  { %7467 = vst [vmem:[#allocation82_spill] sm:$0xff] %v6313_v20  ;;  %4259 = vmatprep.subr.bf16.mxu0 %v6313_v20  ;;  %7473 = vst [vmem:[#allocation88_spill] sm:$0xff] %v6330_v40  ;;  %v178_v59 = vld [vmem:[#allocation10 + $0xf0] sm:$0xff]  ;;  %v183_v54 = vld [vmem:[#allocation10 + $0x118] sm:$0xff] }
  0x94   :  { %4289 = vmatpush1.bf16.msra.mxu1 %v6310_v11  ;;  %7470 = vst [vmem:[#allocation85_spill] sm:$0xff] %v6321_v3  ;;  %7471 = vst [vmem:[#allocation86_spill] sm:$0xff] %v6325_v5  ;;  %v179_v11 = vld [vmem:[#allocation10 + $0xf8] sm:$0xff] }
  0x95   :  { %4291 = vmatprep.subr.bf16.mxu1 %v6316_v31  ;;  %v6328_v38 = vpack.c.bf16 %v179_v11, %v175_v28  ;;  %v6333_v31 = vpack.c.bf16 %v178_v59, %v174_v55  ;;  %v180_v11 = vld [vmem:[#allocation10 + $0x100] sm:$0xff]  ;;  %v182_v55 = vld [vmem:[#allocation10 + $0x110] sm:$0xff] }
  0x96   :  { %4261 = vmatpush1.bf16.msra.mxu0 %v6318_v0  ;;  %v181_v0 = vld [vmem:[#allocation10 + $0x108] sm:$0xff]  ;;  %v184_v28 = vld [vmem:[#allocation10 + $0x120] sm:$0xff]  ;;  %v186_v59 = vld [vmem:[#allocation10 + $0x130] sm:$0xff] }
  0x97   :  { %7472 = vst [vmem:[#allocation87_spill] sm:$0xff] %v6328_v38  ;;  %4263 = vmatprep.subr.bf16.mxu0 %v6325_v5  ;;  %7474 = vst [vmem:[#allocation89_spill] sm:$0xff] %v6333_v31  ;;  %v6337_v20 = vpack.c.bf16 %v185_v14, %v181_v0  ;;  %v6342_v37 = vpack.c.bf16 %v184_v28, %v180_v11  ;;  %v193_v0 = vld [vmem:[#allocation10 + $0x168] sm:$0xff]  ;;  %v191_v14 = vld [vmem:[#allocation10 + $0x158] sm:$0xff] }
  0x98   :  { %4293 = vmatpush1.bf16.msra.mxu1 %v6321_v3  ;;  %v187_v3 = vld [vmem:[#allocation10 + $0x138] sm:$0xff] }
  0x99   :  { %4295 = vmatprep.subr.bf16.mxu1 %v6328_v38  ;;  %7475 = vst [vmem:[#allocation90_spill] sm:$0xff] %v6337_v20  ;;  %v6340_v41 = vpack.c.bf16 %v187_v3, %v183_v54  ;;  %7477 = vst [vmem:[#allocation92_spill] sm:$0xff] %v6342_v37  ;;  %v6345_v38 = vpack.c.bf16 %v186_v59, %v182_v55  ;;  %v188_v3 = vld [vmem:[#allocation10 + $0x140] sm:$0xff]  ;;  %v190_v55 = vld [vmem:[#allocation10 + $0x150] sm:$0xff] }
  0x9a   :  { %4265 = vmatpush1.bf16.msra.mxu0 %v6330_v40  ;;  %v189_v40 = vld [vmem:[#allocation10 + $0x148] sm:$0xff]  ;;  %v192_v54 = vld [vmem:[#allocation10 + $0x160] sm:$0xff]  ;;  %v194_v59 = vld [vmem:[#allocation10 + $0x170] sm:$0xff] }
  0x9b   :  { %7476 = vst [vmem:[#allocation91_spill] sm:$0xff] %v6340_v41  ;;  %4267 = vmatprep.subr.bf16.mxu0 %v6337_v20  ;;  %7478 = vst [vmem:[#allocation93_spill] sm:$0xff] %v6345_v38  ;;  %v6349_v5 = vpack.c.bf16 %v193_v0, %v189_v40  ;;  %v6354_v28 = vpack.c.bf16 %v192_v54, %v188_v3  ;;  %v201_v40 = vld [vmem:[#allocation10 + $0x1a8] sm:$0xff]  ;;  %v199_v0 = vld [vmem:[#allocation10 + $0x198] sm:$0xff] }
  0x9c   :  { %4297 = vmatpush1.bf16.msra.mxu1 %v6333_v31  ;;  %v195_v31 = vld [vmem:[#allocation10 + $0x178] sm:$0xff] }
  0x9d   :  { %4299 = vmatprep.subr.bf16.mxu1 %v6340_v41  ;;  %7479 = vst [vmem:[#allocation94_spill] sm:$0xff] %v6349_v5  ;;  %v6352_v11 = vpack.c.bf16 %v195_v31, %v191_v14  ;;  %7481 = vst [vmem:[#allocation96_spill] sm:$0xff] %v6354_v28  ;;  %v6357_v41 = vpack.c.bf16 %v194_v59, %v190_v55  ;;  %v196_v31 = vld [vmem:[#allocation10 + $0x180] sm:$0xff]  ;;  %v198_v55 = vld [vmem:[#allocation10 + $0x190] sm:$0xff] }
  0x9e   :  { %4269 = vmatpush1.bf16.msra.mxu0 %v6342_v37  ;;  %v197_v37 = vld [vmem:[#allocation10 + $0x188] sm:$0xff]  ;;  %v200_v14 = vld [vmem:[#allocation10 + $0x1a0] sm:$0xff]  ;;  %v202_v59 = vld [vmem:[#allocation10 + $0x1b0] sm:$0xff] }
  0x9f   :  { %7480 = vst [vmem:[#allocation95_spill] sm:$0xff] %v6352_v11  ;;  %4271 = vmatprep.subr.bf16.mxu0 %v6349_v5  ;;  %7482 = vst [vmem:[#allocation97_spill] sm:$0xff] %v6357_v41  ;;  %v6361_v20 = vpack.c.bf16 %v201_v40, %v197_v37  ;;  %v6366_v54 = vpack.c.bf16 %v200_v14, %v196_v31  ;;  %v209_v37 = vld [vmem:[#allocation10 + $0x1e8] sm:$0xff]  ;;  %v207_v40 = vld [vmem:[#allocation10 + $0x1d8] sm:$0xff] }
  0xa0   :  { %4301 = vmatpush1.bf16.msra.mxu1 %v6345_v38  ;;  %v203_v38 = vld [vmem:[#allocation10 + $0x1b8] sm:$0xff] }
  0xa1   :  { %4303 = vmatprep.subr.bf16.mxu1 %v6352_v11  ;;  %7483 = vst [vmem:[#allocation98_spill] sm:$0xff] %v6361_v20  ;;  %v6364_v3 = vpack.c.bf16 %v203_v38, %v199_v0  ;;  %7485 = vst [vmem:[#allocation100_spill] sm:$0xff] %v6366_v54  ;;  %v6369_v11 = vpack.c.bf16 %v202_v59, %v198_v55  ;;  %v204_v38 = vld [vmem:[#allocation10 + $0x1c0] sm:$0xff]  ;;  %v206_v55 = vld [vmem:[#allocation10 + $0x1d0] sm:$0xff] }
  0xa2   :  { %4273 = vmatpush1.bf16.msra.mxu0 %v6354_v28  ;;  %v205_v28 = vld [vmem:[#allocation10 + $0x1c8] sm:$0xff]  ;;  %v208_v0 = vld [vmem:[#allocation10 + $0x1e0] sm:$0xff]  ;;  %v210_v59 = vld [vmem:[#allocation10 + $0x1f0] sm:$0xff] }
  0xa3   :  { %7484 = vst [vmem:[#allocation99_spill] sm:$0xff] %v6364_v3  ;;  %4275 = vmatprep.subr.bf16.mxu0 %v6361_v20  ;;  %7486 = vst [vmem:[#allocation101_spill] sm:$0xff] %v6369_v11  ;;  %v6373_v5 = vpack.c.bf16 %v209_v37, %v205_v28  ;;  %v6378_v14 = vpack.c.bf16 %v208_v0, %v204_v38  ;;  %v303_v28 = vld [vmem:[#allocation5 + $0x8] sm:$0xff]  ;;  %v304_v0 = vld [vmem:[#allocation5 + $0x10] sm:$0xff] }
  0xa4   :  { %4305 = vmatpush1.bf16.msra.mxu1 %v6357_v41  ;;  %v211_v41 = vld [vmem:[#allocation10 + $0x1f8] sm:$0xff] }
  0xa5   :  { %4307 = vmatprep.subr.bf16.mxu1 %v6364_v3  ;;  %7487 = vst [vmem:[#allocation102_spill] sm:$0xff] %v6373_v5  ;;  %v6376_v31 = vpack.c.bf16 %v211_v41, %v207_v40  ;;  %7489 = vst [vmem:[#allocation104_spill] sm:$0xff] %v6378_v14  ;;  %v6381_v3 = vpack.c.bf16 %v210_v59, %v206_v55  ;;  %v302_v41 = vld [vmem:[#allocation5] sm:$0xff] }
  0xa6   :  { %4277 = vmatpush1.bf16.msra.mxu0 %v6366_v54 }
  0xa7   :  { %7488 = vst [vmem:[#allocation103_spill] sm:$0xff] %v6376_v31  ;;  %4279 = vmatprep.subr.bf16.mxu0 %v6373_v5  ;;  %7490 = vst [vmem:[#allocation105_spill] sm:$0xff] %v6381_v3 }
  0xa8   :  { %4309 = vmatpush1.bf16.msra.mxu1 %v6369_v11 }
  0xa9   :  { %4311 = vmatprep.subr.bf16.mxu1 %v6376_v31 }
  0xaa   :  { %4281 = vmatpush1.bf16.msra.mxu0 %v6378_v14  ;;  %v305_v14 = vld [vmem:[#allocation5 + $0x18] sm:$0xff] }
  0xab   :  { %4315 = vmatprep.subr.bf16.mxu0 %v6090_v4 }
  0xac   :  { %4313 = vmatpush1.bf16.msra.mxu1 %v6381_v3 }
  0xad   :  { %4347 = vmatprep.subr.bf16.mxu1 %v6100_v17 }
 0x140   :  { %v372_v37 = vpop.f32.mrb[0].mxu0 }
 0x141   :  { %v448_v40 = vadd.f32 %v372_v37, %v302_v41  ;;  %v374_v38 = vpop.f32.mrb[1].mxu0 }
 0x142   :  { %v449_v11 = vadd.f32 %v374_v38, %v303_v28  ;;  %v443_v55 = vpop.f32.mrb[0].mxu1 }
 0x143   :  { %v452_v5 = vmul.f32 0.5, %v448_v40  ;;  %v450_v54 = vadd.f32 %v443_v55, %v304_v0  ;;  %v445_v31 = vpop.f32.mrb[1].mxu1  ;;  %v7499_v55 = vld [vmem:[#allocation63_spill] sm:$0xff] }
 0x144   :  { %v456_v59 = vmul.f32 0.5, %v449_v11  ;;  %v451_v3 = vadd.f32 %v445_v31, %v305_v14  ;;  %v7498_v14 = vld [vmem:[#allocation61_spill] sm:$0xff] }
 0x145   :  { %5698 = vtanh.f32 %v452_v5 }
 0x146   :  { %5700 = vtanh.f32 %v456_v59  ;;  %v461_v4 = vmul.f32 0.5, %v451_v3  ;;  %v7497_v3 = vld [vmem:[#allocation62_spill] sm:$0xff]  ;;  %v7500_v59 = vld [vmem:[#allocation64_spill] sm:$0xff] }
 0x147   :  { %5702 = vtanh.f32 %v450_v54 }
 0x148   :  { %5704 = vtanh.f32 %v461_v4  ;;  %v7491_v4 = vld [vmem:[#allocation54_spill] sm:$0xff] }
 0x14f   :  { %v5699_v20 = vpop.eup %5698 }
 0x150   :  { %v5701_v17 = vpop.eup %5700  ;;  %v454_v33 = vmul.f32 0.5, %v5699_v20  ;;  %v7496_v20 = vld [vmem:[#allocation57_spill] sm:$0xff] }
 0x151   :  { %v5703_v13 = vpop.eup %5702  ;;  %v458_v19 = vmul.f32 0.5, %v5701_v17  ;;  %v7492_v17 = vld [vmem:[#allocation53_spill] sm:$0xff] }
 0x152   :  { %v455_v41 = vadd.f32 0.5, %v454_v33  ;;  %v5705_v5 = vpop.eup %5704  ;;  %v7495_v33 = vld [vmem:[#allocation58_spill] sm:$0xff] }
 0x153   :  { %v459_v37 = vadd.f32 0.5, %v458_v19  ;;  %v463_v11 = vmul.f32 0.5, %v5705_v5  ;;  %v7493_v19 = vld [vmem:[#allocation55_spill] sm:$0xff]  ;;  %v7505_v5 = vld [vmem:[#allocation69_spill] sm:$0xff] }
 0x154   :  { %v466_v28 = vmul.f32 %v5703_v13, %v455_v41  ;;  %v7494_v13 = vld [vmem:[#allocation56_spill] sm:$0xff]  ;;  %v7501_v41 = vld [vmem:[#allocation66_spill] sm:$0xff] }
 0x155   :  { %v465_v40 = vmul.f32 0.0, %v459_v37  ;;  %v464_v0 = vadd.f32 0.5, %v463_v11  ;;  %v7502_v37 = vld [vmem:[#allocation65_spill] sm:$0xff]  ;;  %v7506_v11 = vld [vmem:[#allocation70_spill] sm:$0xff] }
 0x157   :  { %v6388_v38 = vadd.f32 %v466_v28, %v465_v40  ;;  %v7503_v28 = vld [vmem:[#allocation67_spill] sm:$0xff]  ;;  %v7504_v40 = vld [vmem:[#allocation68_spill] sm:$0xff] }
 0x159   :  { %5706 = vtanh.f32 %v6388_v38 }
 0x163   :  { %v5707_v54 = vpop.eup %5706 }
 0x164   :  { %v469_v31 = vmul.f32 %v5707_v54, %v464_v0  ;;  %v7507_v0 = vld [vmem:[#allocation71_spill] sm:$0xff]  ;;  %v7508_v54 = vld [vmem:[#allocation72_spill] sm:$0xff] }
 0x166   :  { %677 = vmatmul.mubr.f32.vlgmr.msra.gmra.mrb[2].mxu0 %v469_v31  ;;  %748 = vmatmul.mubr.f32.vlgmr.msra.gmra.mrb[2].mxu1 %v469_v31 }
 0x167   :  { %4317 = vmatpush1.bf16.msra.mxu0 %v6092_v8  ;;  %4349 = vmatpush1.bf16.msra.mxu1 %v6102_v18 }
 0x168   :  { %4319 = vmatprep.subr.bf16.mxu0 %v6094_v9  ;;  %4351 = vmatprep.subr.bf16.mxu1 %v6108_v26 }
 0x169   :  { %845 = vmatprep.mubr.f32.mxu0 %v7461_v47  ;;  %916 = vmatprep.mubr.f32.mxu1 %v7461_v47 }
 0x16b   :  { %4321 = vmatpush1.bf16.msra.mxu0 %v6098_v16  ;;  %4353 = vmatpush1.bf16.msra.mxu1 %v6111_v30 }
 0x16c   :  { %4323 = vmatprep.subr.bf16.mxu0 %v6105_v22  ;;  %4355 = vmatprep.subr.bf16.mxu1 %v6120_v39 }
 0x16f   :  { %4325 = vmatpush1.bf16.msra.mxu0 %v6114_v32  ;;  %4357 = vmatpush1.bf16.msra.mxu1 %v6123_v44 }
 0x170   :  { %4327 = vmatprep.subr.bf16.mxu0 %v6118_v36  ;;  %4359 = vmatprep.subr.bf16.mxu1 %v6129_v48 }
 0x173   :  { %4329 = vmatpush1.bf16.msra.mxu0 %v6126_v46  ;;  %4361 = vmatpush1.bf16.msra.mxu1 %v6135_v57 }
 0x174   :  { %4331 = vmatprep.subr.bf16.mxu0 %v6132_v51  ;;  %4363 = vmatprep.subr.bf16.mxu1 %v6141_v60 }
 0x177   :  { %4333 = vmatpush1.bf16.msra.mxu0 %v6138_v58  ;;  %4365 = vmatpush1.bf16.msra.mxu1 %v6147_v7 }
 0x178   :  { %4335 = vmatprep.subr.bf16.mxu0 %v6144_v63  ;;  %4367 = vmatprep.subr.bf16.mxu1 %v6153_v12 }
 0x17b   :  { %4337 = vmatpush1.bf16.msra.mxu0 %v6150_v10  ;;  %4369 = vmatpush1.bf16.msra.mxu1 %v6159_v25 }
 0x17c   :  { %4339 = vmatprep.subr.bf16.mxu0 %v6156_v15  ;;  %4371 = vmatprep.subr.bf16.mxu1 %v6165_v29 }
 0x17f   :  { %4341 = vmatpush1.bf16.msra.mxu0 %v6162_v27  ;;  %4373 = vmatpush1.bf16.msra.mxu1 %v6171_v42 }
 0x180   :  { %4343 = vmatprep.subr.bf16.mxu0 %v6168_v34  ;;  %4375 = vmatprep.subr.bf16.mxu1 %v6177_v45 }
 0x183   :  { %4345 = vmatpush1.bf16.msra.mxu0 %v6174_v43  ;;  %4377 = vmatpush1.bf16.msra.mxu1 %v6183_v61 }
 0x184   :  { %4379 = vmatprep.subr.bf16.mxu0 %v6180_v52  ;;  %4411 = vmatprep.subr.bf16.mxu1 %v6187_v62 }
 0x186   :  { %846 = vmatmul.mubr.f32.vlgmr.msra.gmra.mrb[4].mxu0 %v469_v31  ;;  %917 = vmatmul.mubr.f32.vlgmr.msra.gmra.mrb[4].mxu1 %v469_v31  ;;  %v7509_v31 = vld [vmem:[#allocation73_spill] sm:$0xff] }
 0x187   :  { %4381 = vmatpush1.bf16.msra.mxu0 %v6189_v1  ;;  %4413 = vmatpush1.bf16.msra.mxu1 %v6196_v21 }
 0x188   :  { %4383 = vmatprep.subr.bf16.mxu0 %v6192_v6  ;;  %4415 = vmatprep.subr.bf16.mxu1 %v6200_v23 }
 0x189   :  { %1009 = vmatprep.mubr.f32.mxu0 %v7461_v47  ;;  %1080 = vmatprep.mubr.f32.mxu1 %v7461_v47 }
 0x18b   :  { %4385 = vmatpush1.bf16.msra.mxu0 %v6202_v24  ;;  %4417 = vmatpush1.bf16.msra.mxu1 %v6210_v49 }
 0x18c   :  { %4387 = vmatprep.subr.bf16.mxu0 %v6205_v35  ;;  %4419 = vmatprep.subr.bf16.mxu1 %v6215_v50 }
 0x18f   :  { %4389 = vmatpush1.bf16.msra.mxu0 %v6217_v53  ;;  %4421 = vmatpush1.bf16.msra.mxu1 %v7491_v4 }
 0x190   :  { %4391 = vmatprep.subr.bf16.mxu0 %v7492_v17  ;;  %4423 = vmatprep.subr.bf16.mxu1 %v7493_v19 }
 0x193   :  { %4393 = vmatpush1.bf16.msra.mxu0 %v7494_v13  ;;  %4425 = vmatpush1.bf16.msra.mxu1 %v7495_v33 }
 0x194   :  { %4395 = vmatprep.subr.bf16.mxu0 %v7496_v20  ;;  %4427 = vmatprep.subr.bf16.mxu1 %v6239_v56 }
 0x197   :  { %4397 = vmatpush1.bf16.msra.mxu0 %v6241_v2  ;;  %4429 = vmatpush1.bf16.msra.mxu1 %v7497_v3 }
 0x198   :  { %4399 = vmatprep.subr.bf16.mxu0 %v7498_v14  ;;  %4431 = vmatprep.subr.bf16.mxu1 %v7499_v55  ;;  %v7510_v55 = vld [vmem:[#allocation74_spill] sm:$0xff] }
 0x19b   :  { %4401 = vmatpush1.bf16.msra.mxu0 %v7500_v59  ;;  %4433 = vmatpush1.bf16.msra.mxu1 %v7501_v41  ;;  %v7511_v59 = vld [vmem:[#allocation75_spill] sm:$0xff]  ;;  %v278_v41 = vlaneseq }
 0x19c   :  { %4403 = vmatprep.subr.bf16.mxu0 %v7502_v37  ;;  %4435 = vmatprep.subr.bf16.mxu1 %v7503_v28 }
 0x19d   :  { %v279_v37 = vshrl.u32 %v278_v41, 7 }
 0x19f   :  { %4405 = vmatpush1.bf16.msra.mxu0 %v7504_v40  ;;  %4437 = vmatpush1.bf16.msra.mxu1 %v7505_v5  ;;  %v280_v14 = vsub.s32 0, %v279_v37  ;;  %v276_v40 = vld [vmem:[%s7215_s4] sm:$0xf]  ;;  %v284_v5 = vsub.s32 1, %v279_v37  ;;  %v292_v2 = vsub.s32 3, %v279_v37  ;;  %s5983_s4 = smov [#allocation13]  }
 0x1a0   :  { %4407 = vmatprep.subr.bf16.mxu0 %v7506_v11  ;;  %4439 = vmatprep.subr.bf16.mxu1 %v7507_v0  ;;  %v288_v11 = vsub.s32 2, %v279_v37  ;;  %s4111_s6 = sshll.u32 %s5983_s4, 4  ;;  %s4112_s6 = int_to_ptr.vmem [resolvable:$true] %s4111_s6 }
 0x1a1   :  { %v6462_v28 = vrot.slane %v276_v40, %v280_v14  ;;  %v6464_v0 = vrot.slane %v276_v40, %v284_v5  ;;  %v6471_v13 = vrot.slane %v276_v40, %v292_v2  ;;  %s5946_s1 = scalar_lea.vmem %s4112_s6, 128  ;;  %p5951_p5 = scmp.lt.s32.totalorder %s4112_s6, %s4112_s6 }
 0x1a2   :  { %p5947_p4 = scmp.ne.s32.totalorder %s4112_s6, %s5946_s1  ;;  %p5952_p6 = scmp.lt.s32.totalorder %s5946_s1, %s5946_s1 }
 0x1a3   :  { %4409 = vmatpush1.bf16.msra.mxu0 %v7508_v54  ;;  %4441 = vmatpush1.bf16.msra.mxu1 %v7509_v31  ;;  %7512 = vst [vmem:[#allocation106_spill] sm:$0xff] %v6462_v28  ;;  %7514 = vst [vmem:[#allocation108_spill] sm:$0xff] %v6471_v13 }
 0x1a4   :  { %4443 = vmatprep.subr.bf16.mxu0 %v7510_v55  ;;  %4475 = vmatprep.subr.bf16.mxu1 %v7511_v59  ;;  %v6467_v55 = vrot.slane %v276_v40, %v288_v11  ;;  %v778_v40 = vld [vmem:[#allocation5 + $0x28] sm:$0xff]  ;;  %p5953_p7 = por %p5952_p6, %p5951_p5 }
 0x1a6   :  { %7513 = vst [vmem:[#allocation107_spill] sm:$0xff] %v6467_v55  ;;  %p5954_p8 = pnand %p5953_p7, %p5947_p4 }
 0x239   :  { %v678_v54 = vpop.f32.mrb[2].mxu0  ;;  %v749_v3 = vpop.f32.mrb[2].mxu1 }
 0x23a   :  { %v754_v31 = vadd.f32 %v678_v54, %v6462_v28  ;;  %v680_v59 = vpop.f32.mrb[3].mxu0  ;;  %v751_v41 = vpop.f32.mrb[3].mxu1  ;;  %v756_v14 = vadd.f32 %v749_v3, %v6467_v55  ;;  %v777_v3 = vld [vmem:[#allocation5 + $0x20] sm:$0xff] }
 0x23b   :  { %v755_v56 = vadd.f32 %v680_v59, %v6464_v0  ;;  %v757_v5 = vadd.f32 %v751_v41, %v6471_v13 }
 0x23c   :  { %v758_v20 = vmul.f32 0.5, %v754_v31 }
 0x23d   :  { %v762_v33 = vmul.f32 0.5, %v755_v56  ;;  %v767_v19 = vmul.f32 0.5, %v757_v5 }
 0x23e   :  { %5708 = vtanh.f32 %v758_v20 }
 0x23f   :  { %5710 = vtanh.f32 %v762_v33 }
 0x240   :  { %5712 = vtanh.f32 %v756_v14 }
 0x241   :  { %5714 = vtanh.f32 %v767_v19  ;;  %v779_v19 = vld [vmem:[#allocation5 + $0x30] sm:$0xff] }
 0x248   :  { %v5709_v54 = vpop.eup %5708 }
 0x249   :  { %v5711_v11 = vpop.eup %5710  ;;  %v760_v28 = vmul.f32 0.5, %v5709_v54 }
 0x24a   :  { %v764_v17 = vmul.f32 0.5, %v5711_v11  ;;  %v5713_v4 = vpop.eup %5712 }
 0x24b   :  { %v761_v37 = vadd.f32 0.5, %v760_v28  ;;  %v5715_v2 = vpop.eup %5714 }
 0x24c   :  { %v765_v59 = vadd.f32 0.5, %v764_v17  ;;  %v769_v33 = vmul.f32 0.5, %v5715_v2  ;;  %v7516_v2 = vld [vmem:[#allocation77_spill] sm:$0xff] }
 0x24d   :  { %v772_v31 = vmul.f32 %v5713_v4, %v761_v37 }
 0x24e   :  { %v771_v56 = vmul.f32 0.0, %v765_v59  ;;  %v770_v11 = vadd.f32 0.5, %v769_v33  ;;  %v7520_v33 = vld [vmem:[#allocation81_spill] sm:$0xff] }
 0x250   :  { %v6474_v20 = vadd.f32 %v772_v31, %v771_v56  ;;  %v780_v31 = vld [vmem:[#allocation5 + $0x38] sm:$0xff] }
 0x251   :  { %v7515_v56 = vld [vmem:[#allocation76_spill] sm:$0xff] }
 0x252   :  { %5716 = vtanh.f32 %v6474_v20 }
 0x259   :  { %v847_v41 = vpop.f32.mrb[4].mxu0  ;;  %v918_v14 = vpop.f32.mrb[4].mxu1 }
 0x25a   :  { %v923_v5 = vadd.f32 %v847_v41, %v777_v3  ;;  %v849_v13 = vpop.f32.mrb[5].mxu0  ;;  %v920_v54 = vpop.f32.mrb[5].mxu1  ;;  %v925_v59 = vadd.f32 %v918_v14, %v779_v19  ;;  %v7517_v3 = vld [vmem:[#allocation78_spill] sm:$0xff]  ;;  %v7518_v41 = vld [vmem:[#allocation79_spill] sm:$0xff]  ;;  %v7523_v19 = vld [vmem:[#allocation84_spill] sm:$0xff] }
 0x25b   :  { %v924_v28 = vadd.f32 %v849_v13, %v778_v40  ;;  %v926_v13 = vadd.f32 %v920_v54, %v780_v31  ;;  %v7521_v40 = vld [vmem:[#allocation82_spill] sm:$0xff]  ;;  %v7522_v14 = vld [vmem:[#allocation83_spill] sm:$0xff] }
 0x25c   :  { %v5717_v55 = vpop.eup %5716  ;;  %v927_v17 = vmul.f32 0.5, %v923_v5 }
 0x25d   :  { %v775_v4 = vmul.f32 %v5717_v55, %v770_v11  ;;  %v931_v37 = vmul.f32 0.5, %v924_v28  ;;  %v7519_v55 = vld [vmem:[#allocation80_spill] sm:$0xff]  ;;  %v936_v5 = vmul.f32 0.5, %v926_v13  ;;  %v7524_v28 = vld [vmem:[#allocation85_spill] sm:$0xff] }
 0x25e   :  { %5718 = vtanh.f32 %v927_v17 }
 0x25f   :  { %5720 = vtanh.f32 %v931_v37  ;;  %1010 = vmatmul.mubr.f32.vlgmr.msra.gmra.mrb[6].mxu0 %v775_v4  ;;  %1081 = vmatmul.mubr.f32.vlgmr.msra.gmra.mrb[6].mxu1 %v775_v4  ;;  %v7525_v4 = vld [vmem:[#allocation86_spill] sm:$0xff]  ;;  %v7526_v37 = vld [vmem:[#allocation87_spill] sm:$0xff] }
 0x260   :  { %4445 = vmatpush1.bf16.msra.mxu0 %v7515_v56  ;;  %4477 = vmatpush1.bf16.msra.mxu1 %v7516_v2  ;;  %5722 = vtanh.f32 %v925_v59 }
 0x261   :  { %4447 = vmatprep.subr.bf16.mxu0 %v7517_v3  ;;  %4479 = vmatprep.subr.bf16.mxu1 %v7518_v41  ;;  %5724 = vtanh.f32 %v936_v5  ;;  %v7529_v41 = vld [vmem:[#allocation90_spill] sm:$0xff] }
 0x262   :  { %1151 = vmatprep.mubr.f32.mxu0 %v7461_v47  ;;  %1222 = vmatprep.mubr.f32.mxu1 %v7461_v47  ;;  %v7534_v5 = vld [vmem:[#allocation94_spill] sm:$0xff] }
 0x264   :  { %4449 = vmatpush1.bf16.msra.mxu0 %v7519_v55  ;;  %4481 = vmatpush1.bf16.msra.mxu1 %v7520_v33 }
 0x265   :  { %4451 = vmatprep.subr.bf16.mxu0 %v7521_v40  ;;  %4483 = vmatprep.subr.bf16.mxu1 %v7522_v14  ;;  %v7527_v40 = vld [vmem:[#allocation88_spill] sm:$0xff]  ;;  %v7528_v14 = vld [vmem:[#allocation89_spill] sm:$0xff] }
 0x268   :  { %v5719_v11 = vpop.eup %5718  ;;  %4453 = vmatpush1.bf16.msra.mxu0 %v7523_v19  ;;  %4485 = vmatpush1.bf16.msra.mxu1 %v7524_v28  ;;  %v7530_v19 = vld [vmem:[#allocation91_spill] sm:$0xff] }
 0x269   :  { %v5721_v17 = vpop.eup %5720  ;;  %v929_v54 = vmul.f32 0.5, %v5719_v11  ;;  %4455 = vmatprep.subr.bf16.mxu0 %v7525_v4  ;;  %4487 = vmatprep.subr.bf16.mxu1 %v7526_v37  ;;  %v7532_v4 = vld [vmem:[#allocation92_spill] sm:$0xff] }
 0x26a   :  { %v933_v59 = vmul.f32 0.5, %v5721_v17  ;;  %v5723_v33 = vpop.eup %5722  ;;  %v7533_v17 = vld [vmem:[#allocation93_spill] sm:$0xff] }
 0x26b   :  { %v930_v31 = vadd.f32 0.5, %v929_v54  ;;  %v7535_v54 = vld [vmem:[#allocation95_spill] sm:$0xff] }
 0x26c   :  { %v934_v55 = vadd.f32 0.5, %v933_v59  ;;  %4457 = vmatpush1.bf16.msra.mxu0 %v7527_v40  ;;  %4489 = vmatpush1.bf16.msra.mxu1 %v7528_v14  ;;  %v5725_v59 = vpop.eup %5724 }
 0x26d   :  { %v941_v13 = vmul.f32 %v5723_v33, %v930_v31  ;;  %4459 = vmatprep.subr.bf16.mxu0 %v7529_v41  ;;  %4491 = vmatprep.subr.bf16.mxu1 %v7530_v19  ;;  %v7536_v33 = vld [vmem:[#allocation96_spill] sm:$0xff]  ;;  %v7537_v31 = vld [vmem:[#allocation97_spill] sm:$0xff]  ;;  %v7538_v19 = vld [vmem:[#allocation98_spill] sm:$0xff] }
 0x26e   :  { %v940_v11 = vmul.f32 %v934_v55, %v6388_v38  ;;  %v7539_v38 = vld [vmem:[#allocation99_spill] sm:$0xff]  ;;  %v938_v55 = vmul.f32 0.5, %v5725_v59  ;;  %v7546_v41 = vld [vmem:[#allocation18_spill] sm:$0xff] }
 0x26f   :  { %v7550_v59 = vld [vmem:[#allocation55_spill] sm:$0xff] }
 0x270   :  { %v6496_v28 = vadd.f32 %v941_v13, %v940_v11  ;;  %4461 = vmatpush1.bf16.msra.mxu0 %v7532_v4  ;;  %4493 = vmatpush1.bf16.msra.mxu1 %v7533_v17  ;;  %v7540_v13 = vld [vmem:[#allocation100_spill] sm:$0xff]  ;;  %v7541_v11 = vld [vmem:[#allocation101_spill] sm:$0xff]  ;;  %v7542_v17 = vld [vmem:[#allocation102_spill] sm:$0xff] }
 0x271   :  { %4463 = vmatprep.subr.bf16.mxu0 %v7534_v5  ;;  %4495 = vmatprep.subr.bf16.mxu1 %v7535_v54  ;;  %v7543_v5 = vld [vmem:[#allocation103_spill] sm:$0xff]  ;;  %v939_v54 = vadd.f32 0.5, %v938_v55  ;;  %v7552_v55 = vld [vmem:[#allocation58_spill] sm:$0xff] }
 0x272   :  { %7531 = vst [vmem:[#allocation76_spill] sm:$0xff] %v6496_v28  ;;  %5726 = vtanh.f32 %v6496_v28  ;;  %v7544_v28 = vld [vmem:[#allocation104_spill] sm:$0xff] }
 0x274   :  { %4465 = vmatpush1.bf16.msra.mxu0 %v7536_v33  ;;  %4497 = vmatpush1.bf16.msra.mxu1 %v7537_v31  ;;  %v7545_v33 = vld [vmem:[#allocation105_spill] sm:$0xff] }
 0x275   :  { %4467 = vmatprep.subr.bf16.mxu0 %v7538_v19  ;;  %4499 = vmatprep.subr.bf16.mxu1 %v7539_v38  ;;  %v7547_v19 = vld [vmem:[#allocation19_spill] sm:$0xff] }
 0x278   :  { %4469 = vmatpush1.bf16.msra.mxu0 %v7540_v13  ;;  %4501 = vmatpush1.bf16.msra.mxu1 %v7541_v11 }
 0x279   :  { %4471 = vmatprep.subr.bf16.mxu0 %v7542_v17  ;;  %4503 = vmatprep.subr.bf16.mxu1 %v7543_v5 }
 0x27c   :  { %v5727_v4 = vpop.eup %5726  ;;  %4473 = vmatpush1.bf16.msra.mxu0 %v7544_v28  ;;  %4505 = vmatpush1.bf16.msra.mxu1 %v7545_v33 }
 0x27d   :  { %v944_v31 = vmul.f32 %v5727_v4, %v939_v54  ;;  %4507 = vmatprep.subr.bf16.mxu0 %v7546_v41  ;;  %4539 = vmatprep.subr.bf16.mxu1 %v7547_v19  ;;  %v7548_v4 = vld [vmem:[#allocation54_spill] sm:$0xff]  ;;  %v7549_v54 = vld [vmem:[#allocation53_spill] sm:$0xff] }
 0x27f   :  { %1152 = vmatmul.mubr.f32.vlgmr.msra.gmra.mrb[6].mxu0 %v944_v31  ;;  %1223 = vmatmul.mubr.f32.vlgmr.msra.gmra.mrb[6].mxu1 %v944_v31 }
 0x280   :  { %4509 = vmatpush1.bf16.msra.mxu0 %v6092_v8  ;;  %4541 = vmatpush1.bf16.msra.mxu1 %v6102_v18 }
 0x281   :  { %4511 = vmatprep.subr.bf16.mxu0 %v6094_v9  ;;  %4543 = vmatprep.subr.bf16.mxu1 %v6108_v26 }
 0x282   :  { %1320 = vmatprep.mubr.f32.mxu0 %v7461_v47  ;;  %1391 = vmatprep.mubr.f32.mxu1 %v7461_v47 }
 0x284   :  { %4513 = vmatpush1.bf16.msra.mxu0 %v6098_v16  ;;  %4545 = vmatpush1.bf16.msra.mxu1 %v6111_v30 }
 0x285   :  { %4515 = vmatprep.subr.bf16.mxu0 %v6105_v22  ;;  %4547 = vmatprep.subr.bf16.mxu1 %v6120_v39 }
 0x288   :  { %4517 = vmatpush1.bf16.msra.mxu0 %v6114_v32  ;;  %4549 = vmatpush1.bf16.msra.mxu1 %v6123_v44 }
 0x289   :  { %4519 = vmatprep.subr.bf16.mxu0 %v6118_v36  ;;  %4551 = vmatprep.subr.bf16.mxu1 %v6129_v48 }
 0x28c   :  { %4521 = vmatpush1.bf16.msra.mxu0 %v6126_v46  ;;  %4553 = vmatpush1.bf16.msra.mxu1 %v6135_v57 }
 0x28d   :  { %4523 = vmatprep.subr.bf16.mxu0 %v6132_v51  ;;  %4555 = vmatprep.subr.bf16.mxu1 %v6141_v60 }
 0x290   :  { %4525 = vmatpush1.bf16.msra.mxu0 %v6138_v58  ;;  %4557 = vmatpush1.bf16.msra.mxu1 %v6147_v7 }
 0x291   :  { %4527 = vmatprep.subr.bf16.mxu0 %v6144_v63  ;;  %4559 = vmatprep.subr.bf16.mxu1 %v6153_v12 }
 0x294   :  { %4529 = vmatpush1.bf16.msra.mxu0 %v6150_v10  ;;  %4561 = vmatpush1.bf16.msra.mxu1 %v6159_v25 }
 0x295   :  { %4531 = vmatprep.subr.bf16.mxu0 %v6156_v15  ;;  %4563 = vmatprep.subr.bf16.mxu1 %v6165_v29 }
 0x298   :  { %4533 = vmatpush1.bf16.msra.mxu0 %v6162_v27  ;;  %4565 = vmatpush1.bf16.msra.mxu1 %v6171_v42 }
 0x299   :  { %4535 = vmatprep.subr.bf16.mxu0 %v6168_v34  ;;  %4567 = vmatprep.subr.bf16.mxu1 %v6177_v45 }
 0x29c   :  { %4537 = vmatpush1.bf16.msra.mxu0 %v6174_v43  ;;  %4569 = vmatpush1.bf16.msra.mxu1 %v6183_v61 }
 0x29d   :  { %4571 = vmatprep.subr.bf16.mxu0 %v6180_v52  ;;  %4603 = vmatprep.subr.bf16.mxu1 %v6187_v62 }
 0x29f   :  { %1321 = vmatmul.mubr.f32.vlgmr.msra.gmra.mrb[8].mxu0 %v944_v31  ;;  %1392 = vmatmul.mubr.f32.vlgmr.msra.gmra.mrb[8].mxu1 %v944_v31  ;;  %v7551_v31 = vld [vmem:[#allocation56_spill] sm:$0xff] }
 0x2a0   :  { %4573 = vmatpush1.bf16.msra.mxu0 %v6189_v1  ;;  %4605 = vmatpush1.bf16.msra.mxu1 %v6196_v21 }
 0x2a1   :  { %4575 = vmatprep.subr.bf16.mxu0 %v6192_v6  ;;  %4607 = vmatprep.subr.bf16.mxu1 %v6200_v23  ;;  %v7553_v23 = vld [vmem:[#allocation57_spill] sm:$0xff]  ;;  %v7571_v6 = vld [vmem:[#allocation106_spill] sm:$0xff] }
 0x2a2   :  { %1484 = vmatprep.mubr.f32.mxu0 %v7461_v47  ;;  %1555 = vmatprep.mubr.f32.mxu1 %v7461_v47 }
 0x2a4   :  { %4577 = vmatpush1.bf16.msra.mxu0 %v6202_v24  ;;  %4609 = vmatpush1.bf16.msra.mxu1 %v6210_v49  ;;  %v7554_v24 = vld [vmem:[#allocation59_spill] sm:$0xff]  ;;  %v7555_v49 = vld [vmem:[#allocation60_spill] sm:$0xff] }
 0x2a5   :  { %4579 = vmatprep.subr.bf16.mxu0 %v6205_v35  ;;  %4611 = vmatprep.subr.bf16.mxu1 %v6215_v50  ;;  %v7556_v35 = vld [vmem:[#allocation62_spill] sm:$0xff]  ;;  %v7557_v50 = vld [vmem:[#allocation61_spill] sm:$0xff] }
 0x2a8   :  { %4581 = vmatpush1.bf16.msra.mxu0 %v6217_v53  ;;  %4613 = vmatpush1.bf16.msra.mxu1 %v7548_v4  ;;  %v7558_v53 = vld [vmem:[#allocation63_spill] sm:$0xff]  ;;  %v7559_v4 = vld [vmem:[#allocation64_spill] sm:$0xff] }
 0x2a9   :  { %4583 = vmatprep.subr.bf16.mxu0 %v7549_v54  ;;  %4615 = vmatprep.subr.bf16.mxu1 %v7550_v59  ;;  %v7560_v54 = vld [vmem:[#allocation66_spill] sm:$0xff]  ;;  %v7561_v59 = vld [vmem:[#allocation65_spill] sm:$0xff] }
 0x2ac   :  { %4585 = vmatpush1.bf16.msra.mxu0 %v7551_v31  ;;  %4617 = vmatpush1.bf16.msra.mxu1 %v7552_v55  ;;  %v7562_v31 = vld [vmem:[#allocation67_spill] sm:$0xff]  ;;  %v7563_v55 = vld [vmem:[#allocation68_spill] sm:$0xff] }
 0x2ad   :  { %4587 = vmatprep.subr.bf16.mxu0 %v7553_v23  ;;  %4619 = vmatprep.subr.bf16.mxu1 %v7554_v24  ;;  %v7564_v23 = vld [vmem:[#allocation69_spill] sm:$0xff]  ;;  %v7565_v24 = vld [vmem:[#allocation70_spill] sm:$0xff] }
 0x2b0   :  { %4589 = vmatpush1.bf16.msra.mxu0 %v7555_v49  ;;  %4621 = vmatpush1.bf16.msra.mxu1 %v7556_v35  ;;  %v7566_v49 = vld [vmem:[#allocation71_spill] sm:$0xff]  ;;  %v7567_v35 = vld [vmem:[#allocation72_spill] sm:$0xff] }
 0x2b1   :  { %4591 = vmatprep.subr.bf16.mxu0 %v7557_v50  ;;  %4623 = vmatprep.subr.bf16.mxu1 %v7558_v53  ;;  %v7568_v50 = vld [vmem:[#allocation73_spill] sm:$0xff]  ;;  %v7569_v53 = vld [vmem:[#allocation74_spill] sm:$0xff] }
 0x2b4   :  { %4593 = vmatpush1.bf16.msra.mxu0 %v7559_v4  ;;  %4625 = vmatpush1.bf16.msra.mxu1 %v7560_v54  ;;  %v7570_v4 = vld [vmem:[#allocation75_spill] sm:$0xff] }
 0x2b5   :  { %4595 = vmatprep.subr.bf16.mxu0 %v7561_v59  ;;  %4627 = vmatprep.subr.bf16.mxu1 %v7562_v31 }
 0x2b8   :  { %4597 = vmatpush1.bf16.msra.mxu0 %v7563_v55  ;;  %4629 = vmatpush1.bf16.msra.mxu1 %v7564_v23 }
 0x2b9   :  { %4599 = vmatprep.subr.bf16.mxu0 %v7565_v24  ;;  %4631 = vmatprep.subr.bf16.mxu1 %v7566_v49  ;;  %v7572_v49 = vld [vmem:[#allocation107_spill] sm:$0xff] }
 0x2bc   :  { %4601 = vmatpush1.bf16.msra.mxu0 %v7567_v35  ;;  %4633 = vmatpush1.bf16.msra.mxu1 %v7568_v50  ;;  %v7573_v50 = vld [vmem:[#allocation108_spill] sm:$0xff] }
 0x2bd   :  { %4635 = vmatprep.subr.bf16.mxu0 %v7569_v53  ;;  %4667 = vmatprep.subr.bf16.mxu1 %v7570_v4 }
 0x352   :  { %v1153_v54 = vpop.f32.mrb[6].mxu0  ;;  %v1224_v59 = vpop.f32.mrb[6].mxu1 }
 0x353   :  { %v1229_v31 = vadd.f32 %v1153_v54, %v7571_v6  ;;  %v1155_v21 = vpop.f32.mrb[7].mxu0  ;;  %v1226_v55 = vpop.f32.mrb[7].mxu1  ;;  %v1231_v62 = vadd.f32 %v1224_v59, %v7572_v49  ;;  %v1253_v59 = vld [vmem:[#allocation5 + $0x48] sm:$0xff] }
 0x354   :  { %v1230_v23 = vadd.f32 %v1155_v21, %v6464_v0  ;;  %v1232_v35 = vadd.f32 %v1226_v55, %v7573_v50 }
 0x355   :  { %v1233_v1 = vmul.f32 0.5, %v1229_v31 }
 0x356   :  { %v1237_v24 = vmul.f32 0.5, %v1230_v23  ;;  %v1242_v53 = vmul.f32 0.5, %v1232_v35 }
 0x357   :  { %5728 = vtanh.f32 %v1233_v1 }
 0x358   :  { %5730 = vtanh.f32 %v1237_v24  ;;  %v1252_v24 = vld [vmem:[#allocation5 + $0x40] sm:$0xff] }
 0x359   :  { %5732 = vtanh.f32 %v1231_v62 }
 0x35a   :  { %5734 = vtanh.f32 %v1242_v53 }
 0x361   :  { %v5729_v52 = vpop.eup %5728 }
 0x362   :  { %v5731_v4 = vpop.eup %5730  ;;  %v1235_v61 = vmul.f32 0.5, %v5729_v52 }
 0x363   :  { %v1239_v43 = vmul.f32 0.5, %v5731_v4  ;;  %v5733_v6 = vpop.eup %5732 }
 0x364   :  { %v1236_v54 = vadd.f32 0.5, %v1235_v61  ;;  %v5735_v1 = vpop.eup %5734  ;;  %v1254_v61 = vld [vmem:[#allocation5 + $0x50] sm:$0xff] }
 0x365   :  { %v1240_v45 = vadd.f32 0.5, %v1239_v43  ;;  %v1244_v62 = vmul.f32 0.5, %v5735_v1 }
 0x366   :  { %v1247_v34 = vmul.f32 %v5733_v6, %v1236_v54 }
 0x367   :  { %v1246_v21 = vmul.f32 %v1240_v45, %v6474_v20  ;;  %v1245_v53 = vadd.f32 0.5, %v1244_v62  ;;  %v1255_v20 = vld [vmem:[#allocation5 + $0x58] sm:$0xff]  ;;  %v7576_v62 = vld [vmem:[#allocation81_spill] sm:$0xff] }
 0x369   :  { %v6588_v23 = vadd.f32 %v1247_v34, %v1246_v21  ;;  %v7574_v21 = vld [vmem:[#allocation79_spill] sm:$0xff] }
 0x36b   :  { %5736 = vtanh.f32 %v6588_v23 }
 0x372   :  { %v1322_v35 = vpop.f32.mrb[8].mxu0  ;;  %v1393_v31 = vpop.f32.mrb[8].mxu1 }
 0x373   :  { %v1398_v55 = vadd.f32 %v1322_v35, %v1252_v24  ;;  %v1324_v52 = vpop.f32.mrb[9].mxu0  ;;  %v1395_v4 = vpop.f32.mrb[9].mxu1  ;;  %v1400_v34 = vadd.f32 %v1393_v31, %v1254_v61  ;;  %v7577_v24 = vld [vmem:[#allocation82_spill] sm:$0xff] }
 0x374   :  { %v1399_v50 = vadd.f32 %v1324_v52, %v1253_v59  ;;  %v1401_v1 = vadd.f32 %v1395_v4, %v1255_v20  ;;  %v7578_v59 = vld [vmem:[#allocation83_spill] sm:$0xff]  ;;  %v7580_v52 = vld [vmem:[#allocation85_spill] sm:$0xff]  ;;  %v7581_v61 = vld [vmem:[#allocation86_spill] sm:$0xff] }
 0x375   :  { %v5737_v43 = vpop.eup %5736  ;;  %v1402_v6 = vmul.f32 0.5, %v1398_v55  ;;  %v7579_v55 = vld [vmem:[#allocation84_spill] sm:$0xff]  ;;  %v7582_v20 = vld [vmem:[#allocation90_spill] sm:$0xff] }
 0x376   :  { %v1250_v54 = vmul.f32 %v5737_v43, %v1245_v53  ;;  %v1406_v45 = vmul.f32 0.5, %v1399_v50  ;;  %v7575_v50 = vld [vmem:[#allocation80_spill] sm:$0xff]  ;;  %v1411_v35 = vmul.f32 0.5, %v1401_v1  ;;  %v7583_v1 = vld [vmem:[#allocation91_spill] sm:$0xff] }
 0x377   :  { %5738 = vtanh.f32 %v1402_v6 }
 0x378   :  { %5740 = vtanh.f32 %v1406_v45  ;;  %1485 = vmatmul.mubr.f32.vlgmr.msra.gmra.mrb[10].mxu0 %v1250_v54  ;;  %1556 = vmatmul.mubr.f32.vlgmr.msra.gmra.mrb[10].mxu1 %v1250_v54 }
 0x379   :  { %4637 = vmatpush1.bf16.msra.mxu0 %v7515_v56  ;;  %4669 = vmatpush1.bf16.msra.mxu1 %v7516_v2  ;;  %5742 = vtanh.f32 %v1400_v34 }
 0x37a   :  { %4639 = vmatprep.subr.bf16.mxu0 %v7517_v3  ;;  %4671 = vmatprep.subr.bf16.mxu1 %v7574_v21  ;;  %5744 = vtanh.f32 %v1411_v35  ;;  %v7587_v35 = vld [vmem:[#allocation94_spill] sm:$0xff] }
 0x37b   :  { %1626 = vmatprep.mubr.f32.mxu0 %v7461_v47  ;;  %1697 = vmatprep.mubr.f32.mxu1 %v7461_v47 }
 0x37d   :  { %4641 = vmatpush1.bf16.msra.mxu0 %v7575_v50  ;;  %4673 = vmatpush1.bf16.msra.mxu1 %v7576_v62 }
 0x37e   :  { %4643 = vmatprep.subr.bf16.mxu0 %v7577_v24  ;;  %4675 = vmatprep.subr.bf16.mxu1 %v7578_v59 }
 0x381   :  { %v5739_v31 = vpop.eup %5738  ;;  %4645 = vmatpush1.bf16.msra.mxu0 %v7579_v55  ;;  %4677 = vmatpush1.bf16.msra.mxu1 %v7580_v52  ;;  %v7584_v52 = vld [vmem:[#allocation76_spill] sm:$0xff] }
 0x382   :  { %v5741_v53 = vpop.eup %5740  ;;  %v1404_v4 = vmul.f32 0.5, %v5739_v31  ;;  %4647 = vmatprep.subr.bf16.mxu0 %v7581_v61  ;;  %4679 = vmatprep.subr.bf16.mxu1 %v7526_v37  ;;  %v7585_v61 = vld [vmem:[#allocation92_spill] sm:$0xff] }
 0x383   :  { %v1408_v43 = vmul.f32 0.5, %v5741_v53  ;;  %v5743_v54 = vpop.eup %5742  ;;  %v7586_v53 = vld [vmem:[#allocation93_spill] sm:$0xff] }
 0x384   :  { %v1405_v6 = vadd.f32 0.5, %v1404_v4  ;;  %v7588_v4 = vld [vmem:[#allocation95_spill] sm:$0xff] }
 0x385   :  { %v1409_v45 = vadd.f32 0.5, %v1408_v43  ;;  %4649 = vmatpush1.bf16.msra.mxu0 %v7527_v40  ;;  %4681 = vmatpush1.bf16.msra.mxu1 %v7528_v14  ;;  %v5745_v43 = vpop.eup %5744 }
 0x386   :  { %v1416_v34 = vmul.f32 %v5743_v54, %v1405_v6  ;;  %4651 = vmatprep.subr.bf16.mxu0 %v7582_v20  ;;  %4683 = vmatprep.subr.bf16.mxu1 %v7583_v1  ;;  %v7589_v6 = vld [vmem:[#allocation96_spill] sm:$0xff]  ;;  %v7590_v54 = vld [vmem:[#allocation97_spill] sm:$0xff]  ;;  %v7591_v1 = vld [vmem:[#allocation98_spill] sm:$0xff] }
 0x387   :  { %v1415_v31 = vmul.f32 %v1409_v45, %v7584_v52  ;;  %v1413_v52 = vmul.f32 0.5, %v5745_v43  ;;  %v7592_v43 = vld [vmem:[#allocation37_spill] sm:$0xff] }
 0x389   :  { %v6610_v55 = vadd.f32 %v1416_v34, %v1415_v31  ;;  %4653 = vmatpush1.bf16.msra.mxu0 %v7585_v61  ;;  %4685 = vmatpush1.bf16.msra.mxu1 %v7586_v53  ;;  %v1414_v45 = vadd.f32 0.5, %v1413_v52  ;;  %v7593_v52 = vld [vmem:[#allocation40_spill] sm:$0xff] }
 0x38a   :  { %4655 = vmatprep.subr.bf16.mxu0 %v7587_v35  ;;  %4687 = vmatprep.subr.bf16.mxu1 %v7588_v4 }
 0x38b   :  { %5746 = vtanh.f32 %v6610_v55 }
 0x38d   :  { %4657 = vmatpush1.bf16.msra.mxu0 %v7589_v6  ;;  %4689 = vmatpush1.bf16.msra.mxu1 %v7590_v54 }
 0x38e   :  { %4659 = vmatprep.subr.bf16.mxu0 %v7591_v1  ;;  %4691 = vmatprep.subr.bf16.mxu1 %v7539_v38 }
 0x391   :  { %4661 = vmatpush1.bf16.msra.mxu0 %v7540_v13  ;;  %4693 = vmatpush1.bf16.msra.mxu1 %v7541_v11 }
 0x392   :  { %4663 = vmatprep.subr.bf16.mxu0 %v7542_v17  ;;  %4695 = vmatprep.subr.bf16.mxu1 %v7543_v5 }
 0x395   :  { %v5747_v34 = vpop.eup %5746  ;;  %4665 = vmatpush1.bf16.msra.mxu0 %v7544_v28  ;;  %4697 = vmatpush1.bf16.msra.mxu1 %v7545_v33 }
 0x396   :  { %v1419_v31 = vmul.f32 %v5747_v34, %v1414_v45  ;;  %4699 = vmatprep.subr.bf16.mxu0 %v7546_v41  ;;  %4731 = vmatprep.subr.bf16.mxu1 %v7547_v19  ;;  %v7594_v45 = vld [vmem:[#allocation39_spill] sm:$0xff]  ;;  %v7595_v34 = vld [vmem:[#allocation42_spill] sm:$0xff] }
 0x398   :  { %1627 = vmatmul.mubr.f32.vlgmr.msra.gmra.mrb[10].mxu0 %v1419_v31  ;;  %1698 = vmatmul.mubr.f32.vlgmr.msra.gmra.mrb[10].mxu1 %v1419_v31 }
 0x399   :  { %4701 = vmatpush1.bf16.msra.mxu0 %v6092_v8  ;;  %4733 = vmatpush1.bf16.msra.mxu1 %v6102_v18 }
 0x39a   :  { %4703 = vmatprep.subr.bf16.mxu0 %v6094_v9  ;;  %4735 = vmatprep.subr.bf16.mxu1 %v6108_v26 }
 0x39b   :  { %1795 = vmatprep.mubr.f32.mxu0 %v7461_v47  ;;  %1866 = vmatprep.mubr.f32.mxu1 %v7461_v47 }
 0x39d   :  { %4705 = vmatpush1.bf16.msra.mxu0 %v6098_v16  ;;  %4737 = vmatpush1.bf16.msra.mxu1 %v6111_v30 }
 0x39e   :  { %4707 = vmatprep.subr.bf16.mxu0 %v6105_v22  ;;  %4739 = vmatprep.subr.bf16.mxu1 %v6120_v39 }
 0x3a1   :  { %4709 = vmatpush1.bf16.msra.mxu0 %v6114_v32  ;;  %4741 = vmatpush1.bf16.msra.mxu1 %v6123_v44 }
 0x3a2   :  { %4711 = vmatprep.subr.bf16.mxu0 %v6118_v36  ;;  %4743 = vmatprep.subr.bf16.mxu1 %v6129_v48 }
 0x3a5   :  { %4713 = vmatpush1.bf16.msra.mxu0 %v6126_v46  ;;  %4745 = vmatpush1.bf16.msra.mxu1 %v6135_v57 }
 0x3a6   :  { %4715 = vmatprep.subr.bf16.mxu0 %v6132_v51  ;;  %4747 = vmatprep.subr.bf16.mxu1 %v6141_v60 }
 0x3a9   :  { %4717 = vmatpush1.bf16.msra.mxu0 %v6138_v58  ;;  %4749 = vmatpush1.bf16.msra.mxu1 %v6147_v7 }
 0x3aa   :  { %4719 = vmatprep.subr.bf16.mxu0 %v6144_v63  ;;  %4751 = vmatprep.subr.bf16.mxu1 %v6153_v12  ;;  %v7596_v12 = vld [vmem:[#allocation41_spill] sm:$0xff] }
 0x3ad   :  { %4721 = vmatpush1.bf16.msra.mxu0 %v6150_v10  ;;  %4753 = vmatpush1.bf16.msra.mxu1 %v6159_v25  ;;  %v7597_v10 = vld [vmem:[#allocation43_spill] sm:$0xff]  ;;  %v7630_v25 = vld [vmem:[#allocation106_spill] sm:$0xff] }
 0x3ae   :  { %4723 = vmatprep.subr.bf16.mxu0 %v6156_v15  ;;  %4755 = vmatprep.subr.bf16.mxu1 %v6165_v29  ;;  %v7598_v15 = vld [vmem:[#allocation44_spill] sm:$0xff]  ;;  %v7599_v29 = vld [vmem:[#allocation46_spill] sm:$0xff] }
 0x3b1   :  { %4725 = vmatpush1.bf16.msra.mxu0 %v6162_v27  ;;  %4757 = vmatpush1.bf16.msra.mxu1 %v6171_v42  ;;  %v7600_v27 = vld [vmem:[#allocation45_spill] sm:$0xff]  ;;  %v7601_v42 = vld [vmem:[#allocation47_spill] sm:$0xff] }
 0x3b2   :  { %4727 = vmatprep.subr.bf16.mxu0 %v7592_v43  ;;  %4759 = vmatprep.subr.bf16.mxu1 %v7593_v52  ;;  %v7611_v52 = vld [vmem:[#allocation58_spill] sm:$0xff]  ;;  %v7612_v43 = vld [vmem:[#allocation57_spill] sm:$0xff] }
 0x3b5   :  { %4729 = vmatpush1.bf16.msra.mxu0 %v7594_v45  ;;  %4761 = vmatpush1.bf16.msra.mxu1 %v7595_v34  ;;  %v7602_v45 = vld [vmem:[#allocation48_spill] sm:$0xff]  ;;  %v7603_v34 = vld [vmem:[#allocation50_spill] sm:$0xff] }
 0x3b6   :  { %4763 = vmatprep.subr.bf16.mxu0 %v7596_v12  ;;  %4795 = vmatprep.subr.bf16.mxu1 %v7597_v10  ;;  %v7604_v12 = vld [vmem:[#allocation49_spill] sm:$0xff]  ;;  %v7605_v10 = vld [vmem:[#allocation51_spill] sm:$0xff] }
 0x3b8   :  { %1796 = vmatmul.mubr.f32.vlgmr.msra.gmra.mrb[12].mxu0 %v1419_v31  ;;  %1867 = vmatmul.mubr.f32.vlgmr.msra.gmra.mrb[12].mxu1 %v1419_v31  ;;  %v7606_v31 = vld [vmem:[#allocation52_spill] sm:$0xff] }
 0x3b9   :  { %4765 = vmatpush1.bf16.msra.mxu0 %v7598_v15  ;;  %4797 = vmatpush1.bf16.msra.mxu1 %v7599_v29  ;;  %v7607_v15 = vld [vmem:[#allocation54_spill] sm:$0xff]  ;;  %v7608_v29 = vld [vmem:[#allocation53_spill] sm:$0xff] }
 0x3ba   :  { %4767 = vmatprep.subr.bf16.mxu0 %v7600_v27  ;;  %4799 = vmatprep.subr.bf16.mxu1 %v7601_v42  ;;  %v7609_v27 = vld [vmem:[#allocation55_spill] sm:$0xff]  ;;  %v7610_v42 = vld [vmem:[#allocation56_spill] sm:$0xff] }
 0x3bb   :  { %1959 = vmatprep.mubr.f32.mxu0 %v7461_v47  ;;  %2030 = vmatprep.mubr.f32.mxu1 %v7461_v47 }
 0x3bd   :  { %4769 = vmatpush1.bf16.msra.mxu0 %v7602_v45  ;;  %4801 = vmatpush1.bf16.msra.mxu1 %v7603_v34  ;;  %v7613_v45 = vld [vmem:[#allocation59_spill] sm:$0xff]  ;;  %v7614_v34 = vld [vmem:[#allocation60_spill] sm:$0xff] }
 0x3be   :  { %4771 = vmatprep.subr.bf16.mxu0 %v7604_v12  ;;  %4803 = vmatprep.subr.bf16.mxu1 %v7605_v10  ;;  %v7615_v12 = vld [vmem:[#allocation62_spill] sm:$0xff]  ;;  %v7616_v10 = vld [vmem:[#allocation61_spill] sm:$0xff] }
 0x3c1   :  { %4773 = vmatpush1.bf16.msra.mxu0 %v7606_v31  ;;  %4805 = vmatpush1.bf16.msra.mxu1 %v7607_v15  ;;  %v7617_v31 = vld [vmem:[#allocation63_spill] sm:$0xff]  ;;  %v7618_v15 = vld [vmem:[#allocation64_spill] sm:$0xff] }
 0x3c2   :  { %4775 = vmatprep.subr.bf16.mxu0 %v7608_v29  ;;  %4807 = vmatprep.subr.bf16.mxu1 %v7609_v27  ;;  %v7619_v29 = vld [vmem:[#allocation66_spill] sm:$0xff]  ;;  %v7620_v27 = vld [vmem:[#allocation65_spill] sm:$0xff] }
 0x3c5   :  { %4777 = vmatpush1.bf16.msra.mxu0 %v7610_v42  ;;  %4809 = vmatpush1.bf16.msra.mxu1 %v7611_v52  ;;  %v7621_v42 = vld [vmem:[#allocation67_spill] sm:$0xff]  ;;  %v7622_v52 = vld [vmem:[#allocation68_spill] sm:$0xff] }
 0x3c6   :  { %4779 = vmatprep.subr.bf16.mxu0 %v7612_v43  ;;  %4811 = vmatprep.subr.bf16.mxu1 %v7613_v45  ;;  %v7623_v43 = vld [vmem:[#allocation69_spill] sm:$0xff]  ;;  %v7624_v45 = vld [vmem:[#allocation70_spill] sm:$0xff] }
 0x3c9   :  { %4781 = vmatpush1.bf16.msra.mxu0 %v7614_v34  ;;  %4813 = vmatpush1.bf16.msra.mxu1 %v7615_v12  ;;  %v7625_v34 = vld [vmem:[#allocation71_spill] sm:$0xff]  ;;  %v7626_v12 = vld [vmem:[#allocation72_spill] sm:$0xff] }
 0x3ca   :  { %4783 = vmatprep.subr.bf16.mxu0 %v7616_v10  ;;  %4815 = vmatprep.subr.bf16.mxu1 %v7617_v31  ;;  %v7627_v10 = vld [vmem:[#allocation73_spill] sm:$0xff]  ;;  %v7628_v31 = vld [vmem:[#allocation74_spill] sm:$0xff] }
 0x3cd   :  { %4785 = vmatpush1.bf16.msra.mxu0 %v7618_v15  ;;  %4817 = vmatpush1.bf16.msra.mxu1 %v7619_v29  ;;  %v7629_v15 = vld [vmem:[#allocation75_spill] sm:$0xff] }
 0x3ce   :  { %4787 = vmatprep.subr.bf16.mxu0 %v7620_v27  ;;  %4819 = vmatprep.subr.bf16.mxu1 %v7621_v42 }
 0x3d1   :  { %4789 = vmatpush1.bf16.msra.mxu0 %v7622_v52  ;;  %4821 = vmatpush1.bf16.msra.mxu1 %v7623_v43 }
 0x3d2   :  { %4791 = vmatprep.subr.bf16.mxu0 %v7624_v45  ;;  %4823 = vmatprep.subr.bf16.mxu1 %v7625_v34 }
 0x3d5   :  { %4793 = vmatpush1.bf16.msra.mxu0 %v7626_v12  ;;  %4825 = vmatpush1.bf16.msra.mxu1 %v7627_v10  ;;  %v7631_v10 = vld [vmem:[#allocation108_spill] sm:$0xff] }
 0x3d6   :  { %4827 = vmatprep.subr.bf16.mxu0 %v7628_v31  ;;  %4859 = vmatprep.subr.bf16.mxu1 %v7629_v15 }
 0x46b   :  { %v1628_v29 = vpop.f32.mrb[10].mxu0  ;;  %v1699_v27 = vpop.f32.mrb[10].mxu1 }
 0x46c   :  { %v1704_v42 = vadd.f32 %v1628_v29, %v7630_v25  ;;  %v1630_v63 = vpop.f32.mrb[11].mxu0  ;;  %v1701_v52 = vpop.f32.mrb[11].mxu1  ;;  %v1706_v34 = vadd.f32 %v1699_v27, %v7572_v49 }
 0x46d   :  { %v1705_v43 = vadd.f32 %v1630_v63, %v6464_v0  ;;  %v1707_v12 = vadd.f32 %v1701_v52, %v7631_v10  ;;  %v1728_v52 = vld [vmem:[#allocation5 + $0x68] sm:$0xff] }
 0x46e   :  { %v1708_v7 = vmul.f32 0.5, %v1704_v42 }
 0x46f   :  { %v1712_v45 = vmul.f32 0.5, %v1705_v43  ;;  %v1717_v31 = vmul.f32 0.5, %v1707_v12  ;;  %v1727_v43 = vld [vmem:[#allocation5 + $0x60] sm:$0xff] }
 0x470   :  { %5748 = vtanh.f32 %v1708_v7 }
 0x471   :  { %5750 = vtanh.f32 %v1712_v45 }
 0x472   :  { %5752 = vtanh.f32 %v1706_v34 }
 0x473   :  { %5754 = vtanh.f32 %v1717_v31 }
 0x47a   :  { %v5749_v58 = vpop.eup %5748 }
 0x47b   :  { %v5751_v15 = vpop.eup %5750  ;;  %v1710_v60 = vmul.f32 0.5, %v5749_v58 }
 0x47c   :  { %v1714_v51 = vmul.f32 0.5, %v5751_v15  ;;  %v5753_v25 = vpop.eup %5752 }
 0x47d   :  { %v1711_v29 = vadd.f32 0.5, %v1710_v60  ;;  %v5755_v7 = vpop.eup %5754  ;;  %v1729_v60 = vld [vmem:[#allocation5 + $0x70] sm:$0xff] }
 0x47e   :  { %v1715_v57 = vadd.f32 0.5, %v1714_v51  ;;  %v1719_v27 = vmul.f32 0.5, %v5755_v7 }
 0x47f   :  { %v1722_v46 = vmul.f32 %v5753_v25, %v1711_v29 }
 0x480   :  { %v1721_v63 = vmul.f32 %v1715_v57, %v6588_v23  ;;  %v1720_v31 = vadd.f32 0.5, %v1719_v27  ;;  %v1730_v23 = vld [vmem:[#allocation5 + $0x78] sm:$0xff] }
 0x481   :  { %v7632_v27 = vld [vmem:[#allocation84_spill] sm:$0xff] }
 0x482   :  { %v6702_v42 = vadd.f32 %v1722_v46, %v1721_v63 }
 0x484   :  { %5756 = vtanh.f32 %v6702_v42 }
 0x48b   :  { %v1797_v12 = vpop.f32.mrb[12].mxu0  ;;  %v1868_v45 = vpop.f32.mrb[12].mxu1 }
 0x48c   :  { %v1873_v34 = vadd.f32 %v1797_v12, %v1727_v43  ;;  %v1799_v58 = vpop.f32.mrb[13].mxu0  ;;  %v1870_v15 = vpop.f32.mrb[13].mxu1  ;;  %v1875_v46 = vadd.f32 %v1868_v45, %v1729_v60  ;;  %v7633_v43 = vld [vmem:[#allocation85_spill] sm:$0xff]  ;;  %v7634_v45 = vld [vmem:[#allocation86_spill] sm:$0xff] }
 0x48d   :  { %v1874_v10 = vadd.f32 %v1799_v58, %v1728_v52  ;;  %v1876_v63 = vadd.f32 %v1870_v15, %v1730_v23 }
 0x48e   :  { %v5757_v51 = vpop.eup %5756  ;;  %v1877_v25 = vmul.f32 0.5, %v1873_v34 }
 0x48f   :  { %v1725_v29 = vmul.f32 %v5757_v51, %v1720_v31  ;;  %v1881_v57 = vmul.f32 0.5, %v1874_v10  ;;  %v1886_v10 = vmul.f32 0.5, %v1876_v63  ;;  %v7635_v51 = vld [vmem:[#allocation91_spill] sm:$0xff] }
 0x490   :  { %5758 = vtanh.f32 %v1877_v25 }
 0x491   :  { %5760 = vtanh.f32 %v1881_v57  ;;  %1960 = vmatmul.mubr.f32.vlgmr.msra.gmra.mrb[14].mxu0 %v1725_v29  ;;  %2031 = vmatmul.mubr.f32.vlgmr.msra.gmra.mrb[14].mxu1 %v1725_v29 }
 0x492   :  { %4829 = vmatpush1.bf16.msra.mxu0 %v7515_v56  ;;  %4861 = vmatpush1.bf16.msra.mxu1 %v7516_v2  ;;  %5762 = vtanh.f32 %v1875_v46 }
 0x493   :  { %4831 = vmatprep.subr.bf16.mxu0 %v7517_v3  ;;  %4863 = vmatprep.subr.bf16.mxu1 %v7574_v21  ;;  %5764 = vtanh.f32 %v1886_v10  ;;  %v7636_v10 = vld [vmem:[#allocation23_spill] sm:$0xff] }
 0x494   :  { %2101 = vmatprep.mubr.f32.mxu0 %v7461_v47  ;;  %2172 = vmatprep.mubr.f32.mxu1 %v7461_v47 }
 0x496   :  { %4833 = vmatpush1.bf16.msra.mxu0 %v7575_v50  ;;  %4865 = vmatpush1.bf16.msra.mxu1 %v7576_v62 }
 0x497   :  { %4835 = vmatprep.subr.bf16.mxu0 %v7577_v24  ;;  %4867 = vmatprep.subr.bf16.mxu1 %v7578_v59 }
 0x49a   :  { %v5759_v7 = vpop.eup %5758  ;;  %4837 = vmatpush1.bf16.msra.mxu0 %v7632_v27  ;;  %4869 = vmatpush1.bf16.msra.mxu1 %v7633_v43 }
 0x49b   :  { %v5761_v52 = vpop.eup %5760  ;;  %v1879_v12 = vmul.f32 0.5, %v5759_v7  ;;  %4839 = vmatprep.subr.bf16.mxu0 %v7634_v45  ;;  %4871 = vmatprep.subr.bf16.mxu1 %v7526_v37  ;;  %v7637_v7 = vld [vmem:[#allocation26_spill] sm:$0xff] }
 0x49c   :  { %v1883_v34 = vmul.f32 0.5, %v5761_v52  ;;  %v5763_v15 = vpop.eup %5762  ;;  %v7638_v52 = vld [vmem:[#allocation25_spill] sm:$0xff] }
 0x49d   :  { %v1880_v58 = vadd.f32 0.5, %v1879_v12  ;;  %v5765_v57 = vpop.eup %5764  ;;  %v7639_v12 = vld [vmem:[#allocation28_spill] sm:$0xff] }
 0x49e   :  { %v1884_v31 = vadd.f32 0.5, %v1883_v34  ;;  %4841 = vmatpush1.bf16.msra.mxu0 %v7527_v40  ;;  %4873 = vmatpush1.bf16.msra.mxu1 %v7528_v14  ;;  %v7640_v34 = vld [vmem:[#allocation27_spill] sm:$0xff] }
 0x49f   :  { %v1891_v60 = vmul.f32 %v5763_v15, %v1880_v58  ;;  %4843 = vmatprep.subr.bf16.mxu0 %v7582_v20  ;;  %4875 = vmatprep.subr.bf16.mxu1 %v7635_v51  ;;  %v7641_v58 = vld [vmem:[#allocation30_spill] sm:$0xff]  ;;  %v7642_v15 = vld [vmem:[#allocation29_spill] sm:$0xff] }
 0x4a0   :  { %v1890_v25 = vmul.f32 %v1884_v31, %v6610_v55  ;;  %v1888_v55 = vmul.f32 0.5, %v5765_v57  ;;  %v7643_v31 = vld [vmem:[#allocation32_spill] sm:$0xff]  ;;  %v7646_v57 = vld [vmem:[#allocation33_spill] sm:$0xff] }
 0x4a2   :  { %v6724_v29 = vadd.f32 %v1891_v60, %v1890_v25  ;;  %4845 = vmatpush1.bf16.msra.mxu0 %v7585_v61  ;;  %4877 = vmatpush1.bf16.msra.mxu1 %v7586_v53  ;;  %v1889_v46 = vadd.f32 0.5, %v1888_v55  ;;  %v7644_v60 = vld [vmem:[#allocation31_spill] sm:$0xff]  ;;  %v7645_v25 = vld [vmem:[#allocation34_spill] sm:$0xff]  ;;  %v7647_v55 = vld [vmem:[#allocation36_spill] sm:$0xff] }
 0x4a3   :  { %4847 = vmatprep.subr.bf16.mxu0 %v7587_v35  ;;  %4879 = vmatprep.subr.bf16.mxu1 %v7588_v4 }
 0x4a4   :  { %5766 = vtanh.f32 %v6724_v29 }
 0x4a6   :  { %4849 = vmatpush1.bf16.msra.mxu0 %v7589_v6  ;;  %4881 = vmatpush1.bf16.msra.mxu1 %v7590_v54 }
 0x4a7   :  { %4851 = vmatprep.subr.bf16.mxu0 %v7591_v1  ;;  %4883 = vmatprep.subr.bf16.mxu1 %v7539_v38 }
 0x4aa   :  { %4853 = vmatpush1.bf16.msra.mxu0 %v7540_v13  ;;  %4885 = vmatpush1.bf16.msra.mxu1 %v7541_v11 }
 0x4ab   :  { %4855 = vmatprep.subr.bf16.mxu0 %v7542_v17  ;;  %4887 = vmatprep.subr.bf16.mxu1 %v7543_v5 }
 0x4ae   :  { %v5767_v23 = vpop.eup %5766  ;;  %4857 = vmatpush1.bf16.msra.mxu0 %v7544_v28  ;;  %4889 = vmatpush1.bf16.msra.mxu1 %v7545_v33 }
 0x4af   :  { %v1894_v63 = vmul.f32 %v5767_v23, %v1889_v46  ;;  %4891 = vmatprep.subr.bf16.mxu0 %v7546_v41  ;;  %4923 = vmatprep.subr.bf16.mxu1 %v7547_v19  ;;  %v7648_v46 = vld [vmem:[#allocation35_spill] sm:$0xff]  ;;  %v7649_v23 = vld [vmem:[#allocation38_spill] sm:$0xff] }
 0x4b1   :  { %2102 = vmatmul.mubr.f32.vlgmr.msra.gmra.mrb[14].mxu0 %v1894_v63  ;;  %2173 = vmatmul.mubr.f32.vlgmr.msra.gmra.mrb[14].mxu1 %v1894_v63 }
 0x4b2   :  { %4893 = vmatpush1.bf16.msra.mxu0 %v6092_v8  ;;  %4925 = vmatpush1.bf16.msra.mxu1 %v6102_v18 }
 0x4b3   :  { %4895 = vmatprep.subr.bf16.mxu0 %v6094_v9  ;;  %4927 = vmatprep.subr.bf16.mxu1 %v6108_v26 }
 0x4b4   :  { %2270 = vmatprep.mubr.f32.mxu0 %v7461_v47  ;;  %2341 = vmatprep.mubr.f32.mxu1 %v7461_v47 }
 0x4b6   :  { %4897 = vmatpush1.bf16.msra.mxu0 %v6098_v16  ;;  %4929 = vmatpush1.bf16.msra.mxu1 %v6111_v30 }
 0x4b7   :  { %4899 = vmatprep.subr.bf16.mxu0 %v6105_v22  ;;  %4931 = vmatprep.subr.bf16.mxu1 %v6120_v39 }
 0x4ba   :  { %4901 = vmatpush1.bf16.msra.mxu0 %v6114_v32  ;;  %4933 = vmatpush1.bf16.msra.mxu1 %v6123_v44 }
 0x4bb   :  { %4903 = vmatprep.subr.bf16.mxu0 %v6118_v36  ;;  %4935 = vmatprep.subr.bf16.mxu1 %v6129_v48 }
 0x4be   :  { %4905 = vmatpush1.bf16.msra.mxu0 %v7636_v10  ;;  %4937 = vmatpush1.bf16.msra.mxu1 %v7637_v7 }
 0x4bf   :  { %4907 = vmatprep.subr.bf16.mxu0 %v7638_v52  ;;  %4939 = vmatprep.subr.bf16.mxu1 %v7639_v12  ;;  %v7650_v12 = vld [vmem:[#allocation37_spill] sm:$0xff] }
 0x4c2   :  { %4909 = vmatpush1.bf16.msra.mxu0 %v7640_v34  ;;  %4941 = vmatpush1.bf16.msra.mxu1 %v7641_v58  ;;  %v7651_v34 = vld [vmem:[#allocation40_spill] sm:$0xff]  ;;  %v7652_v58 = vld [vmem:[#allocation39_spill] sm:$0xff] }
 0x4c3   :  { %4911 = vmatprep.subr.bf16.mxu0 %v7642_v15  ;;  %4943 = vmatprep.subr.bf16.mxu1 %v7643_v31  ;;  %v7653_v15 = vld [vmem:[#allocation42_spill] sm:$0xff]  ;;  %v7654_v31 = vld [vmem:[#allocation41_spill] sm:$0xff] }
 0x4c6   :  { %4913 = vmatpush1.bf16.msra.mxu0 %v7644_v60  ;;  %4945 = vmatpush1.bf16.msra.mxu1 %v7645_v25  ;;  %v7655_v60 = vld [vmem:[#allocation43_spill] sm:$0xff]  ;;  %v7688_v25 = vld [vmem:[#allocation106_spill] sm:$0xff] }
 0x4c7   :  { %4915 = vmatprep.subr.bf16.mxu0 %v7646_v57  ;;  %4947 = vmatprep.subr.bf16.mxu1 %v7647_v55  ;;  %v7656_v57 = vld [vmem:[#allocation44_spill] sm:$0xff]  ;;  %v7657_v55 = vld [vmem:[#allocation46_spill] sm:$0xff] }
 0x4ca   :  { %4917 = vmatpush1.bf16.msra.mxu0 %v7648_v46  ;;  %4949 = vmatpush1.bf16.msra.mxu1 %v7649_v23  ;;  %v7658_v46 = vld [vmem:[#allocation45_spill] sm:$0xff]  ;;  %v7659_v23 = vld [vmem:[#allocation47_spill] sm:$0xff] }
 0x4cb   :  { %4919 = vmatprep.subr.bf16.mxu0 %v7650_v12  ;;  %4951 = vmatprep.subr.bf16.mxu1 %v7651_v34  ;;  %v7669_v34 = vld [vmem:[#allocation58_spill] sm:$0xff]  ;;  %v7670_v12 = vld [vmem:[#allocation57_spill] sm:$0xff] }
 0x4ce   :  { %4921 = vmatpush1.bf16.msra.mxu0 %v7652_v58  ;;  %4953 = vmatpush1.bf16.msra.mxu1 %v7653_v15  ;;  %v7660_v58 = vld [vmem:[#allocation48_spill] sm:$0xff]  ;;  %v7661_v15 = vld [vmem:[#allocation50_spill] sm:$0xff] }
 0x4cf   :  { %4955 = vmatprep.subr.bf16.mxu0 %v7654_v31  ;;  %4987 = vmatprep.subr.bf16.mxu1 %v7655_v60  ;;  %v7662_v31 = vld [vmem:[#allocation49_spill] sm:$0xff]  ;;  %v7663_v60 = vld [vmem:[#allocation51_spill] sm:$0xff] }
 0x4d1   :  { %2271 = vmatmul.mubr.f32.vlgmr.msra.gmra.mrb[16].mxu0 %v1894_v63  ;;  %2342 = vmatmul.mubr.f32.vlgmr.msra.gmra.mrb[16].mxu1 %v1894_v63  ;;  %v7664_v63 = vld [vmem:[#allocation52_spill] sm:$0xff] }
 0x4d2   :  { %4957 = vmatpush1.bf16.msra.mxu0 %v7656_v57  ;;  %4989 = vmatpush1.bf16.msra.mxu1 %v7657_v55  ;;  %v7665_v57 = vld [vmem:[#allocation54_spill] sm:$0xff]  ;;  %v7666_v55 = vld [vmem:[#allocation53_spill] sm:$0xff] }
 0x4d3   :  { %4959 = vmatprep.subr.bf16.mxu0 %v7658_v46  ;;  %4991 = vmatprep.subr.bf16.mxu1 %v7659_v23  ;;  %v7667_v46 = vld [vmem:[#allocation55_spill] sm:$0xff]  ;;  %v7668_v23 = vld [vmem:[#allocation56_spill] sm:$0xff] }
 0x4d4   :  { %2434 = vmatprep.mubr.f32.mxu0 %v7461_v47  ;;  %2505 = vmatprep.mubr.f32.mxu1 %v7461_v47 }
 0x4d6   :  { %4961 = vmatpush1.bf16.msra.mxu0 %v7660_v58  ;;  %4993 = vmatpush1.bf16.msra.mxu1 %v7661_v15  ;;  %v7671_v58 = vld [vmem:[#allocation59_spill] sm:$0xff]  ;;  %v7672_v15 = vld [vmem:[#allocation60_spill] sm:$0xff] }
 0x4d7   :  { %4963 = vmatprep.subr.bf16.mxu0 %v7662_v31  ;;  %4995 = vmatprep.subr.bf16.mxu1 %v7663_v60  ;;  %v7673_v31 = vld [vmem:[#allocation62_spill] sm:$0xff]  ;;  %v7674_v60 = vld [vmem:[#allocation61_spill] sm:$0xff] }
 0x4da   :  { %4965 = vmatpush1.bf16.msra.mxu0 %v7664_v63  ;;  %4997 = vmatpush1.bf16.msra.mxu1 %v7665_v57  ;;  %v7675_v63 = vld [vmem:[#allocation63_spill] sm:$0xff]  ;;  %v7676_v57 = vld [vmem:[#allocation64_spill] sm:$0xff] }
 0x4db   :  { %4967 = vmatprep.subr.bf16.mxu0 %v7666_v55  ;;  %4999 = vmatprep.subr.bf16.mxu1 %v7667_v46  ;;  %v7677_v55 = vld [vmem:[#allocation66_spill] sm:$0xff]  ;;  %v7678_v46 = vld [vmem:[#allocation65_spill] sm:$0xff] }
 0x4de   :  { %4969 = vmatpush1.bf16.msra.mxu0 %v7668_v23  ;;  %5001 = vmatpush1.bf16.msra.mxu1 %v7669_v34  ;;  %v7679_v23 = vld [vmem:[#allocation67_spill] sm:$0xff]  ;;  %v7680_v34 = vld [vmem:[#allocation68_spill] sm:$0xff] }
 0x4df   :  { %4971 = vmatprep.subr.bf16.mxu0 %v7670_v12  ;;  %5003 = vmatprep.subr.bf16.mxu1 %v7671_v58  ;;  %v7681_v12 = vld [vmem:[#allocation69_spill] sm:$0xff]  ;;  %v7682_v58 = vld [vmem:[#allocation70_spill] sm:$0xff] }
 0x4e2   :  { %4973 = vmatpush1.bf16.msra.mxu0 %v7672_v15  ;;  %5005 = vmatpush1.bf16.msra.mxu1 %v7673_v31  ;;  %v7683_v15 = vld [vmem:[#allocation71_spill] sm:$0xff]  ;;  %v7684_v31 = vld [vmem:[#allocation72_spill] sm:$0xff] }
 0x4e3   :  { %4975 = vmatprep.subr.bf16.mxu0 %v7674_v60  ;;  %5007 = vmatprep.subr.bf16.mxu1 %v7675_v63  ;;  %v7685_v60 = vld [vmem:[#allocation73_spill] sm:$0xff]  ;;  %v7686_v63 = vld [vmem:[#allocation74_spill] sm:$0xff] }
 0x4e6   :  { %4977 = vmatpush1.bf16.msra.mxu0 %v7676_v57  ;;  %5009 = vmatpush1.bf16.msra.mxu1 %v7677_v55  ;;  %v7687_v57 = vld [vmem:[#allocation75_spill] sm:$0xff] }
 0x4e7   :  { %4979 = vmatprep.subr.bf16.mxu0 %v7678_v46  ;;  %5011 = vmatprep.subr.bf16.mxu1 %v7679_v23 }
 0x4ea   :  { %4981 = vmatpush1.bf16.msra.mxu0 %v7680_v34  ;;  %5013 = vmatpush1.bf16.msra.mxu1 %v7681_v12 }
 0x4eb   :  { %4983 = vmatprep.subr.bf16.mxu0 %v7682_v58  ;;  %5015 = vmatprep.subr.bf16.mxu1 %v7683_v15 }
 0x4ee   :  { %4985 = vmatpush1.bf16.msra.mxu0 %v7684_v31  ;;  %5017 = vmatpush1.bf16.msra.mxu1 %v7685_v60  ;;  %v7689_v60 = vld [vmem:[#allocation108_spill] sm:$0xff] }
 0x4ef   :  { %5019 = vmatprep.subr.bf16.mxu0 %v7686_v63  ;;  %5051 = vmatprep.subr.bf16.mxu1 %v7687_v57 }
 0x584   :  { %v2103_v55 = vpop.f32.mrb[14].mxu0  ;;  %v2174_v46 = vpop.f32.mrb[14].mxu1 }
 0x585   :  { %v2179_v23 = vadd.f32 %v2103_v55, %v7688_v25  ;;  %v2105_v52 = vpop.f32.mrb[15].mxu0  ;;  %v2176_v34 = vpop.f32.mrb[15].mxu1  ;;  %v2181_v15 = vadd.f32 %v2174_v46, %v7572_v49 }
 0x586   :  { %v2180_v12 = vadd.f32 %v2105_v52, %v6464_v0  ;;  %v2182_v31 = vadd.f32 %v2176_v34, %v7689_v60  ;;  %v2203_v34 = vld [vmem:[#allocation5 + $0x88] sm:$0xff] }
 0x587   :  { %v2183_v7 = vmul.f32 0.5, %v2179_v23 }
 0x588   :  { %v2187_v58 = vmul.f32 0.5, %v2180_v12  ;;  %v2192_v63 = vmul.f32 0.5, %v2182_v31 }
 0x589   :  { %5768 = vtanh.f32 %v2183_v7 }
 0x58a   :  { %5770 = vtanh.f32 %v2187_v58 }
 0x58b   :  { %5772 = vtanh.f32 %v2181_v15  ;;  %v2202_v15 = vld [vmem:[#allocation5 + $0x80] sm:$0xff] }
 0x58c   :  { %5774 = vtanh.f32 %v2192_v63 }
 0x593   :  { %v5769_v10 = vpop.eup %5768 }
 0x594   :  { %v5771_v57 = vpop.eup %5770  ;;  %v2185_v48 = vmul.f32 0.5, %v5769_v10 }
 0x595   :  { %v2189_v36 = vmul.f32 0.5, %v5771_v57  ;;  %v5773_v25 = vpop.eup %5772 }
 0x596   :  { %v2186_v55 = vadd.f32 0.5, %v2185_v48  ;;  %v5775_v7 = vpop.eup %5774  ;;  %v2204_v48 = vld [vmem:[#allocation5 + $0x90] sm:$0xff] }
 0x597   :  { %v2190_v44 = vadd.f32 0.5, %v2189_v36  ;;  %v2194_v58 = vmul.f32 0.5, %v5775_v7 }
 0x598   :  { %v2197_v32 = vmul.f32 %v5773_v25, %v2186_v55 }
 0x599   :  { %v2196_v52 = vmul.f32 %v2190_v44, %v6702_v42  ;;  %v2195_v63 = vadd.f32 0.5, %v2194_v58  ;;  %v2205_v42 = vld [vmem:[#allocation5 + $0x98] sm:$0xff] }
 0x59b   :  { %v6816_v12 = vadd.f32 %v2197_v32, %v2196_v52 }
 0x59d   :  { %5776 = vtanh.f32 %v6816_v12 }
 0x5a4   :  { %v2272_v31 = vpop.f32.mrb[16].mxu0  ;;  %v2343_v46 = vpop.f32.mrb[16].mxu1 }
 0x5a5   :  { %v2348_v23 = vadd.f32 %v2272_v31, %v2202_v15  ;;  %v2274_v10 = vpop.f32.mrb[17].mxu0  ;;  %v2345_v57 = vpop.f32.mrb[17].mxu1  ;;  %v2350_v32 = vadd.f32 %v2343_v46, %v2204_v48 }
 0x5a6   :  { %v2349_v60 = vadd.f32 %v2274_v10, %v2203_v34  ;;  %v2351_v52 = vadd.f32 %v2345_v57, %v2205_v42  ;;  %v7692_v42 = vld [vmem:[#allocation21_spill] sm:$0xff] }
 0x5a7   :  { %v5777_v36 = vpop.eup %5776  ;;  %v2352_v25 = vmul.f32 0.5, %v2348_v23 }
 0x5a8   :  { %v2200_v55 = vmul.f32 %v5777_v36, %v2195_v63  ;;  %v2356_v44 = vmul.f32 0.5, %v2349_v60  ;;  %v2361_v60 = vmul.f32 0.5, %v2351_v52  ;;  %v7693_v52 = vld [vmem:[#allocation24_spill] sm:$0xff] }
 0x5a9   :  { %5778 = vtanh.f32 %v2352_v25 }
 0x5aa   :  { %5780 = vtanh.f32 %v2356_v44  ;;  %2435 = vmatmul.mubr.f32.vlgmr.msra.gmra.mrb[18].mxu0 %v2200_v55  ;;  %2506 = vmatmul.mubr.f32.vlgmr.msra.gmra.mrb[18].mxu1 %v2200_v55  ;;  %v7690_v44 = vld [vmem:[#allocation20_spill] sm:$0xff] }
 0x5ab   :  { %5021 = vmatpush1.bf16.msra.mxu0 %v7515_v56  ;;  %5053 = vmatpush1.bf16.msra.mxu1 %v7516_v2  ;;  %5782 = vtanh.f32 %v2350_v32  ;;  %v7691_v32 = vld [vmem:[#allocation22_spill] sm:$0xff] }
 0x5ac   :  { %5023 = vmatprep.subr.bf16.mxu0 %v7517_v3  ;;  %5055 = vmatprep.subr.bf16.mxu1 %v7574_v21  ;;  %5784 = vtanh.f32 %v2361_v60  ;;  %v7694_v60 = vld [vmem:[#allocation23_spill] sm:$0xff] }
 0x5ad   :  { %2576 = vmatprep.mubr.f32.mxu0 %v7461_v47  ;;  %2647 = vmatprep.mubr.f32.mxu1 %v7461_v47 }
 0x5af   :  { %5025 = vmatpush1.bf16.msra.mxu0 %v7575_v50  ;;  %5057 = vmatpush1.bf16.msra.mxu1 %v7576_v62 }
 0x5b0   :  { %5027 = vmatprep.subr.bf16.mxu0 %v7577_v24  ;;  %5059 = vmatprep.subr.bf16.mxu1 %v7578_v59 }
 0x5b3   :  { %v5779_v7 = vpop.eup %5778  ;;  %5029 = vmatpush1.bf16.msra.mxu0 %v7632_v27  ;;  %5061 = vmatpush1.bf16.msra.mxu1 %v7633_v43 }
 0x5b4   :  { %v5781_v58 = vpop.eup %5780  ;;  %v2354_v15 = vmul.f32 0.5, %v5779_v7  ;;  %5031 = vmatprep.subr.bf16.mxu0 %v7634_v45  ;;  %5063 = vmatprep.subr.bf16.mxu1 %v7526_v37  ;;  %v7695_v7 = vld [vmem:[#allocation26_spill] sm:$0xff] }
 0x5b5   :  { %v2358_v34 = vmul.f32 0.5, %v5781_v58  ;;  %v5783_v46 = vpop.eup %5782  ;;  %v7696_v58 = vld [vmem:[#allocation25_spill] sm:$0xff] }
 0x5b6   :  { %v2355_v31 = vadd.f32 0.5, %v2354_v15  ;;  %v5785_v48 = vpop.eup %5784  ;;  %v7697_v15 = vld [vmem:[#allocation28_spill] sm:$0xff] }
 0x5b7   :  { %v2359_v23 = vadd.f32 0.5, %v2358_v34  ;;  %5033 = vmatpush1.bf16.msra.mxu0 %v7527_v40  ;;  %5065 = vmatpush1.bf16.msra.mxu1 %v7528_v14  ;;  %v7698_v34 = vld [vmem:[#allocation27_spill] sm:$0xff] }
 0x5b8   :  { %v2366_v10 = vmul.f32 %v5783_v46, %v2355_v31  ;;  %5035 = vmatprep.subr.bf16.mxu0 %v7582_v20  ;;  %5067 = vmatprep.subr.bf16.mxu1 %v7635_v51  ;;  %v7699_v31 = vld [vmem:[#allocation30_spill] sm:$0xff]  ;;  %v7700_v46 = vld [vmem:[#allocation29_spill] sm:$0xff] }
 0x5b9   :  { %v2365_v57 = vmul.f32 %v2359_v23, %v6724_v29  ;;  %v2363_v29 = vmul.f32 0.5, %v5785_v48  ;;  %v7701_v23 = vld [vmem:[#allocation32_spill] sm:$0xff]  ;;  %v7704_v48 = vld [vmem:[#allocation33_spill] sm:$0xff] }
 0x5bb   :  { %v6838_v63 = vadd.f32 %v2366_v10, %v2365_v57  ;;  %5037 = vmatpush1.bf16.msra.mxu0 %v7585_v61  ;;  %5069 = vmatpush1.bf16.msra.mxu1 %v7586_v53  ;;  %v2364_v36 = vadd.f32 0.5, %v2363_v29  ;;  %v7702_v10 = vld [vmem:[#allocation31_spill] sm:$0xff]  ;;  %v7703_v57 = vld [vmem:[#allocation34_spill] sm:$0xff]  ;;  %v7705_v29 = vld [vmem:[#allocation36_spill] sm:$0xff] }
 0x5bc   :  { %5039 = vmatprep.subr.bf16.mxu0 %v7587_v35  ;;  %5071 = vmatprep.subr.bf16.mxu1 %v7588_v4 }
 0x5bd   :  { %5786 = vtanh.f32 %v6838_v63 }
 0x5bf   :  { %5041 = vmatpush1.bf16.msra.mxu0 %v7589_v6  ;;  %5073 = vmatpush1.bf16.msra.mxu1 %v7590_v54 }
 0x5c0   :  { %5043 = vmatprep.subr.bf16.mxu0 %v7591_v1  ;;  %5075 = vmatprep.subr.bf16.mxu1 %v7539_v38 }
 0x5c3   :  { %5045 = vmatpush1.bf16.msra.mxu0 %v7540_v13  ;;  %5077 = vmatpush1.bf16.msra.mxu1 %v7541_v11 }
 0x5c4   :  { %5047 = vmatprep.subr.bf16.mxu0 %v7542_v17  ;;  %5079 = vmatprep.subr.bf16.mxu1 %v7543_v5 }
 0x5c7   :  { %v5787_v25 = vpop.eup %5786  ;;  %5049 = vmatpush1.bf16.msra.mxu0 %v7544_v28  ;;  %5081 = vmatpush1.bf16.msra.mxu1 %v7545_v33 }
 0x5c8   :  { %v2369_v55 = vmul.f32 %v5787_v25, %v2364_v36  ;;  %5083 = vmatprep.subr.bf16.mxu0 %v7546_v41  ;;  %5115 = vmatprep.subr.bf16.mxu1 %v7547_v19  ;;  %v7706_v36 = vld [vmem:[#allocation35_spill] sm:$0xff]  ;;  %v7707_v25 = vld [vmem:[#allocation38_spill] sm:$0xff] }
 0x5ca   :  { %2577 = vmatmul.mubr.f32.vlgmr.msra.gmra.mrb[18].mxu0 %v2369_v55  ;;  %2648 = vmatmul.mubr.f32.vlgmr.msra.gmra.mrb[18].mxu1 %v2369_v55 }
 0x5cb   :  { %5085 = vmatpush1.bf16.msra.mxu0 %v6092_v8  ;;  %5117 = vmatpush1.bf16.msra.mxu1 %v6102_v18 }
 0x5cc   :  { %5087 = vmatprep.subr.bf16.mxu0 %v6094_v9  ;;  %5119 = vmatprep.subr.bf16.mxu1 %v6108_v26 }
 0x5cd   :  { %2745 = vmatprep.mubr.f32.mxu0 %v7461_v47  ;;  %2816 = vmatprep.mubr.f32.mxu1 %v7461_v47 }
 0x5cf   :  { %5089 = vmatpush1.bf16.msra.mxu0 %v6098_v16  ;;  %5121 = vmatpush1.bf16.msra.mxu1 %v6111_v30 }
 0x5d0   :  { %5091 = vmatprep.subr.bf16.mxu0 %v6105_v22  ;;  %5123 = vmatprep.subr.bf16.mxu1 %v6120_v39 }
 0x5d3   :  { %5093 = vmatpush1.bf16.msra.mxu0 %v7690_v44  ;;  %5125 = vmatpush1.bf16.msra.mxu1 %v7691_v32 }
 0x5d4   :  { %5095 = vmatprep.subr.bf16.mxu0 %v7692_v42  ;;  %5127 = vmatprep.subr.bf16.mxu1 %v7693_v52 }
 0x5d7   :  { %5097 = vmatpush1.bf16.msra.mxu0 %v7694_v60  ;;  %5129 = vmatpush1.bf16.msra.mxu1 %v7695_v7 }
 0x5d8   :  { %5099 = vmatprep.subr.bf16.mxu0 %v7696_v58  ;;  %5131 = vmatprep.subr.bf16.mxu1 %v7697_v15  ;;  %v7708_v15 = vld [vmem:[#allocation37_spill] sm:$0xff] }
 0x5db   :  { %5101 = vmatpush1.bf16.msra.mxu0 %v7698_v34  ;;  %5133 = vmatpush1.bf16.msra.mxu1 %v7699_v31  ;;  %v7709_v34 = vld [vmem:[#allocation40_spill] sm:$0xff]  ;;  %v7710_v31 = vld [vmem:[#allocation39_spill] sm:$0xff] }
 0x5dc   :  { %5103 = vmatprep.subr.bf16.mxu0 %v7700_v46  ;;  %5135 = vmatprep.subr.bf16.mxu1 %v7701_v23  ;;  %v7711_v46 = vld [vmem:[#allocation42_spill] sm:$0xff]  ;;  %v7712_v23 = vld [vmem:[#allocation41_spill] sm:$0xff] }
 0x5df   :  { %5105 = vmatpush1.bf16.msra.mxu0 %v7702_v10  ;;  %5137 = vmatpush1.bf16.msra.mxu1 %v7703_v57  ;;  %v7713_v10 = vld [vmem:[#allocation43_spill] sm:$0xff]  ;;  %v7746_v57 = vld [vmem:[#allocation106_spill] sm:$0xff] }
 0x5e0   :  { %5107 = vmatprep.subr.bf16.mxu0 %v7704_v48  ;;  %5139 = vmatprep.subr.bf16.mxu1 %v7705_v29  ;;  %v7714_v48 = vld [vmem:[#allocation44_spill] sm:$0xff]  ;;  %v7715_v29 = vld [vmem:[#allocation46_spill] sm:$0xff] }
 0x5e3   :  { %5109 = vmatpush1.bf16.msra.mxu0 %v7706_v36  ;;  %5141 = vmatpush1.bf16.msra.mxu1 %v7707_v25  ;;  %v7716_v36 = vld [vmem:[#allocation45_spill] sm:$0xff]  ;;  %v7717_v25 = vld [vmem:[#allocation47_spill] sm:$0xff] }
 0x5e4   :  { %5111 = vmatprep.subr.bf16.mxu0 %v7708_v15  ;;  %5143 = vmatprep.subr.bf16.mxu1 %v7709_v34  ;;  %v7727_v34 = vld [vmem:[#allocation58_spill] sm:$0xff]  ;;  %v7728_v15 = vld [vmem:[#allocation57_spill] sm:$0xff] }
 0x5e7   :  { %5113 = vmatpush1.bf16.msra.mxu0 %v7710_v31  ;;  %5145 = vmatpush1.bf16.msra.mxu1 %v7711_v46  ;;  %v7718_v31 = vld [vmem:[#allocation48_spill] sm:$0xff]  ;;  %v7719_v46 = vld [vmem:[#allocation50_spill] sm:$0xff] }
 0x5e8   :  { %5147 = vmatprep.subr.bf16.mxu0 %v7712_v23  ;;  %5179 = vmatprep.subr.bf16.mxu1 %v7713_v10  ;;  %v7720_v23 = vld [vmem:[#allocation49_spill] sm:$0xff]  ;;  %v7721_v10 = vld [vmem:[#allocation51_spill] sm:$0xff] }
 0x5ea   :  { %2746 = vmatmul.mubr.f32.vlgmr.msra.gmra.mrb[20].mxu0 %v2369_v55  ;;  %2817 = vmatmul.mubr.f32.vlgmr.msra.gmra.mrb[20].mxu1 %v2369_v55  ;;  %v7722_v55 = vld [vmem:[#allocation52_spill] sm:$0xff] }
 0x5eb   :  { %5149 = vmatpush1.bf16.msra.mxu0 %v7714_v48  ;;  %5181 = vmatpush1.bf16.msra.mxu1 %v7715_v29  ;;  %v7723_v48 = vld [vmem:[#allocation54_spill] sm:$0xff]  ;;  %v7724_v29 = vld [vmem:[#allocation53_spill] sm:$0xff] }
 0x5ec   :  { %5151 = vmatprep.subr.bf16.mxu0 %v7716_v36  ;;  %5183 = vmatprep.subr.bf16.mxu1 %v7717_v25  ;;  %v7725_v36 = vld [vmem:[#allocation55_spill] sm:$0xff]  ;;  %v7726_v25 = vld [vmem:[#allocation56_spill] sm:$0xff] }
 0x5ed   :  { %2909 = vmatprep.mubr.f32.mxu0 %v7461_v47  ;;  %2980 = vmatprep.mubr.f32.mxu1 %v7461_v47 }
 0x5ef   :  { %5153 = vmatpush1.bf16.msra.mxu0 %v7718_v31  ;;  %5185 = vmatpush1.bf16.msra.mxu1 %v7719_v46  ;;  %v7729_v31 = vld [vmem:[#allocation59_spill] sm:$0xff]  ;;  %v7730_v46 = vld [vmem:[#allocation60_spill] sm:$0xff] }
 0x5f0   :  { %5155 = vmatprep.subr.bf16.mxu0 %v7720_v23  ;;  %5187 = vmatprep.subr.bf16.mxu1 %v7721_v10  ;;  %v7731_v23 = vld [vmem:[#allocation62_spill] sm:$0xff]  ;;  %v7732_v10 = vld [vmem:[#allocation61_spill] sm:$0xff] }
 0x5f3   :  { %5157 = vmatpush1.bf16.msra.mxu0 %v7722_v55  ;;  %5189 = vmatpush1.bf16.msra.mxu1 %v7723_v48  ;;  %v7733_v55 = vld [vmem:[#allocation63_spill] sm:$0xff]  ;;  %v7734_v48 = vld [vmem:[#allocation64_spill] sm:$0xff] }
 0x5f4   :  { %5159 = vmatprep.subr.bf16.mxu0 %v7724_v29  ;;  %5191 = vmatprep.subr.bf16.mxu1 %v7725_v36  ;;  %v7735_v29 = vld [vmem:[#allocation66_spill] sm:$0xff]  ;;  %v7736_v36 = vld [vmem:[#allocation65_spill] sm:$0xff] }
 0x5f7   :  { %5161 = vmatpush1.bf16.msra.mxu0 %v7726_v25  ;;  %5193 = vmatpush1.bf16.msra.mxu1 %v7727_v34  ;;  %v7737_v25 = vld [vmem:[#allocation67_spill] sm:$0xff]  ;;  %v7738_v34 = vld [vmem:[#allocation68_spill] sm:$0xff] }
 0x5f8   :  { %5163 = vmatprep.subr.bf16.mxu0 %v7728_v15  ;;  %5195 = vmatprep.subr.bf16.mxu1 %v7729_v31  ;;  %v7739_v15 = vld [vmem:[#allocation69_spill] sm:$0xff]  ;;  %v7740_v31 = vld [vmem:[#allocation70_spill] sm:$0xff] }
 0x5fb   :  { %5165 = vmatpush1.bf16.msra.mxu0 %v7730_v46  ;;  %5197 = vmatpush1.bf16.msra.mxu1 %v7731_v23  ;;  %v7741_v46 = vld [vmem:[#allocation71_spill] sm:$0xff]  ;;  %v7742_v23 = vld [vmem:[#allocation72_spill] sm:$0xff] }
 0x5fc   :  { %5167 = vmatprep.subr.bf16.mxu0 %v7732_v10  ;;  %5199 = vmatprep.subr.bf16.mxu1 %v7733_v55  ;;  %v7743_v10 = vld [vmem:[#allocation73_spill] sm:$0xff]  ;;  %v7744_v55 = vld [vmem:[#allocation74_spill] sm:$0xff] }
 0x5ff   :  { %5169 = vmatpush1.bf16.msra.mxu0 %v7734_v48  ;;  %5201 = vmatpush1.bf16.msra.mxu1 %v7735_v29  ;;  %v7745_v48 = vld [vmem:[#allocation75_spill] sm:$0xff] }
 0x600   :  { %5171 = vmatprep.subr.bf16.mxu0 %v7736_v36  ;;  %5203 = vmatprep.subr.bf16.mxu1 %v7737_v25 }
 0x603   :  { %5173 = vmatpush1.bf16.msra.mxu0 %v7738_v34  ;;  %5205 = vmatpush1.bf16.msra.mxu1 %v7739_v15 }
 0x604   :  { %5175 = vmatprep.subr.bf16.mxu0 %v7740_v31  ;;  %5207 = vmatprep.subr.bf16.mxu1 %v7741_v46 }
 0x607   :  { %5177 = vmatpush1.bf16.msra.mxu0 %v7742_v23  ;;  %5209 = vmatpush1.bf16.msra.mxu1 %v7743_v10  ;;  %v7747_v10 = vld [vmem:[#allocation108_spill] sm:$0xff] }
 0x608   :  { %5211 = vmatprep.subr.bf16.mxu0 %v7744_v55  ;;  %5243 = vmatprep.subr.bf16.mxu1 %v7745_v48 }
 0x69d   :  { %v2578_v29 = vpop.f32.mrb[18].mxu0  ;;  %v2649_v36 = vpop.f32.mrb[18].mxu1 }
 0x69e   :  { %v2654_v25 = vadd.f32 %v2578_v29, %v7746_v57  ;;  %v2580_v58 = vpop.f32.mrb[19].mxu0  ;;  %v2651_v34 = vpop.f32.mrb[19].mxu1  ;;  %v2656_v46 = vadd.f32 %v2649_v36, %v7572_v49 }
 0x69f   :  { %v2655_v15 = vadd.f32 %v2580_v58, %v6464_v0  ;;  %v2657_v23 = vadd.f32 %v2651_v34, %v7747_v10  ;;  %v2678_v34 = vld [vmem:[#allocation5 + $0xa8] sm:$0xff] }
 0x6a0   :  { %v2658_v7 = vmul.f32 0.5, %v2654_v25 }
 0x6a1   :  { %v2662_v31 = vmul.f32 0.5, %v2655_v15  ;;  %v2667_v55 = vmul.f32 0.5, %v2657_v23 }
 0x6a2   :  { %5788 = vtanh.f32 %v2658_v7 }
 0x6a3   :  { %5790 = vtanh.f32 %v2662_v31 }
 0x6a4   :  { %5792 = vtanh.f32 %v2656_v46  ;;  %v2677_v46 = vld [vmem:[#allocation5 + $0xa0] sm:$0xff] }
 0x6a5   :  { %5794 = vtanh.f32 %v2667_v55 }
 0x6ac   :  { %v5789_v60 = vpop.eup %5788 }
 0x6ad   :  { %v5791_v48 = vpop.eup %5790  ;;  %v2660_v52 = vmul.f32 0.5, %v5789_v60 }
 0x6ae   :  { %v2664_v42 = vmul.f32 0.5, %v5791_v48  ;;  %v5793_v57 = vpop.eup %5792 }
 0x6af   :  { %v2661_v29 = vadd.f32 0.5, %v2660_v52  ;;  %v5795_v7 = vpop.eup %5794  ;;  %v2679_v52 = vld [vmem:[#allocation5 + $0xb0] sm:$0xff] }
 0x6b0   :  { %v2665_v32 = vadd.f32 0.5, %v2664_v42  ;;  %v2669_v31 = vmul.f32 0.5, %v5795_v7 }
 0x6b1   :  { %v2672_v44 = vmul.f32 %v5793_v57, %v2661_v29 }
 0x6b2   :  { %v2671_v58 = vmul.f32 %v2665_v32, %v6816_v12  ;;  %v2670_v55 = vadd.f32 0.5, %v2669_v31  ;;  %v2680_v32 = vld [vmem:[#allocation5 + $0xb8] sm:$0xff] }
 0x6b4   :  { %v6930_v15 = vadd.f32 %v2672_v44, %v2671_v58 }
 0x6b6   :  { %5796 = vtanh.f32 %v6930_v15 }
 0x6bd   :  { %v2747_v23 = vpop.f32.mrb[20].mxu0  ;;  %v2818_v36 = vpop.f32.mrb[20].mxu1 }
 0x6be   :  { %v2823_v25 = vadd.f32 %v2747_v23, %v2677_v46  ;;  %v2749_v60 = vpop.f32.mrb[21].mxu0  ;;  %v2820_v48 = vpop.f32.mrb[21].mxu1  ;;  %v2825_v44 = vadd.f32 %v2818_v36, %v2679_v52 }
 0x6bf   :  { %v2824_v10 = vadd.f32 %v2749_v60, %v2678_v34  ;;  %v2826_v58 = vadd.f32 %v2820_v48, %v2680_v32  ;;  %v7750_v32 = vld [vmem:[#allocation21_spill] sm:$0xff] }
 0x6c0   :  { %v5797_v42 = vpop.eup %5796  ;;  %v2827_v57 = vmul.f32 0.5, %v2823_v25 }
 0x6c1   :  { %v2675_v29 = vmul.f32 %v5797_v42, %v2670_v55  ;;  %v2831_v12 = vmul.f32 0.5, %v2824_v10  ;;  %v2836_v10 = vmul.f32 0.5, %v2826_v58  ;;  %v7751_v58 = vld [vmem:[#allocation24_spill] sm:$0xff] }
 0x6c2   :  { %5798 = vtanh.f32 %v2827_v57 }
 0x6c3   :  { %5800 = vtanh.f32 %v2831_v12  ;;  %2910 = vmatmul.mubr.f32.vlgmr.msra.gmra.mrb[22].mxu0 %v2675_v29  ;;  %2981 = vmatmul.mubr.f32.vlgmr.msra.gmra.mrb[22].mxu1 %v2675_v29  ;;  %v7748_v12 = vld [vmem:[#allocation20_spill] sm:$0xff] }
 0x6c4   :  { %5213 = vmatpush1.bf16.msra.mxu0 %v7515_v56  ;;  %5245 = vmatpush1.bf16.msra.mxu1 %v7516_v2  ;;  %5802 = vtanh.f32 %v2825_v44  ;;  %v7749_v44 = vld [vmem:[#allocation22_spill] sm:$0xff] }
 0x6c5   :  { %5215 = vmatprep.subr.bf16.mxu0 %v7517_v3  ;;  %5247 = vmatprep.subr.bf16.mxu1 %v7574_v21  ;;  %5804 = vtanh.f32 %v2836_v10  ;;  %v7752_v10 = vld [vmem:[#allocation23_spill] sm:$0xff] }
 0x6c6   :  { %3051 = vmatprep.mubr.f32.mxu0 %v7461_v47  ;;  %3122 = vmatprep.mubr.f32.mxu1 %v7461_v47 }
 0x6c8   :  { %5217 = vmatpush1.bf16.msra.mxu0 %v7575_v50  ;;  %5249 = vmatpush1.bf16.msra.mxu1 %v7576_v62 }
 0x6c9   :  { %5219 = vmatprep.subr.bf16.mxu0 %v7577_v24  ;;  %5251 = vmatprep.subr.bf16.mxu1 %v7578_v59 }
 0x6cc   :  { %v5799_v7 = vpop.eup %5798  ;;  %5221 = vmatpush1.bf16.msra.mxu0 %v7632_v27  ;;  %5253 = vmatpush1.bf16.msra.mxu1 %v7633_v43 }
 0x6cd   :  { %v5801_v31 = vpop.eup %5800  ;;  %v2829_v46 = vmul.f32 0.5, %v5799_v7  ;;  %5223 = vmatprep.subr.bf16.mxu0 %v7634_v45  ;;  %5255 = vmatprep.subr.bf16.mxu1 %v7526_v37  ;;  %v7753_v7 = vld [vmem:[#allocation26_spill] sm:$0xff] }
 0x6ce   :  { %v2833_v34 = vmul.f32 0.5, %v5801_v31  ;;  %v5803_v36 = vpop.eup %5802  ;;  %v7754_v31 = vld [vmem:[#allocation25_spill] sm:$0xff] }
 0x6cf   :  { %v2830_v23 = vadd.f32 0.5, %v2829_v46  ;;  %v5805_v52 = vpop.eup %5804  ;;  %v7755_v46 = vld [vmem:[#allocation28_spill] sm:$0xff] }
 0x6d0   :  { %v2834_v25 = vadd.f32 0.5, %v2833_v34  ;;  %5225 = vmatpush1.bf16.msra.mxu0 %v7527_v40  ;;  %5257 = vmatpush1.bf16.msra.mxu1 %v7528_v14  ;;  %v7756_v34 = vld [vmem:[#allocation27_spill] sm:$0xff] }
 0x6d1   :  { %v2841_v60 = vmul.f32 %v5803_v36, %v2830_v23  ;;  %5227 = vmatprep.subr.bf16.mxu0 %v7582_v20  ;;  %5259 = vmatprep.subr.bf16.mxu1 %v7635_v51  ;;  %v7757_v23 = vld [vmem:[#allocation30_spill] sm:$0xff]  ;;  %v7758_v36 = vld [vmem:[#allocation29_spill] sm:$0xff] }
 0x6d2   :  { %v2840_v48 = vmul.f32 %v2834_v25, %v6838_v63  ;;  %v2838_v63 = vmul.f32 0.5, %v5805_v52  ;;  %v7759_v25 = vld [vmem:[#allocation32_spill] sm:$0xff]  ;;  %v7762_v52 = vld [vmem:[#allocation33_spill] sm:$0xff] }
 0x6d4   :  { %v6952_v55 = vadd.f32 %v2841_v60, %v2840_v48  ;;  %5229 = vmatpush1.bf16.msra.mxu0 %v7585_v61  ;;  %5261 = vmatpush1.bf16.msra.mxu1 %v7586_v53  ;;  %v2839_v42 = vadd.f32 0.5, %v2838_v63  ;;  %v7760_v60 = vld [vmem:[#allocation31_spill] sm:$0xff]  ;;  %v7761_v48 = vld [vmem:[#allocation34_spill] sm:$0xff]  ;;  %v7763_v63 = vld [vmem:[#allocation36_spill] sm:$0xff] }
 0x6d5   :  { %5231 = vmatprep.subr.bf16.mxu0 %v7587_v35  ;;  %5263 = vmatprep.subr.bf16.mxu1 %v7588_v4 }
 0x6d6   :  { %5806 = vtanh.f32 %v6952_v55 }
 0x6d8   :  { %5233 = vmatpush1.bf16.msra.mxu0 %v7589_v6  ;;  %5265 = vmatpush1.bf16.msra.mxu1 %v7590_v54 }
 0x6d9   :  { %5235 = vmatprep.subr.bf16.mxu0 %v7591_v1  ;;  %5267 = vmatprep.subr.bf16.mxu1 %v7539_v38 }
 0x6dc   :  { %5237 = vmatpush1.bf16.msra.mxu0 %v7540_v13  ;;  %5269 = vmatpush1.bf16.msra.mxu1 %v7541_v11 }
 0x6dd   :  { %5239 = vmatprep.subr.bf16.mxu0 %v7542_v17  ;;  %5271 = vmatprep.subr.bf16.mxu1 %v7543_v5 }
 0x6e0   :  { %v5807_v57 = vpop.eup %5806  ;;  %5241 = vmatpush1.bf16.msra.mxu0 %v7544_v28  ;;  %5273 = vmatpush1.bf16.msra.mxu1 %v7545_v33 }
 0x6e1   :  { %v2844_v29 = vmul.f32 %v5807_v57, %v2839_v42  ;;  %5275 = vmatprep.subr.bf16.mxu0 %v7546_v41  ;;  %5307 = vmatprep.subr.bf16.mxu1 %v7547_v19  ;;  %v7764_v42 = vld [vmem:[#allocation35_spill] sm:$0xff]  ;;  %v7765_v57 = vld [vmem:[#allocation38_spill] sm:$0xff] }
 0x6e3   :  { %3052 = vmatmul.mubr.f32.vlgmr.msra.gmra.mrb[22].mxu0 %v2844_v29  ;;  %3123 = vmatmul.mubr.f32.vlgmr.msra.gmra.mrb[22].mxu1 %v2844_v29 }
 0x6e4   :  { %5277 = vmatpush1.bf16.msra.mxu0 %v6092_v8  ;;  %5309 = vmatpush1.bf16.msra.mxu1 %v6102_v18 }
 0x6e5   :  { %5279 = vmatprep.subr.bf16.mxu0 %v6094_v9  ;;  %5311 = vmatprep.subr.bf16.mxu1 %v6108_v26 }
 0x6e6   :  { %3220 = vmatprep.mubr.f32.mxu0 %v7461_v47  ;;  %3291 = vmatprep.mubr.f32.mxu1 %v7461_v47 }
 0x6e8   :  { %5281 = vmatpush1.bf16.msra.mxu0 %v6098_v16  ;;  %5313 = vmatpush1.bf16.msra.mxu1 %v6111_v30 }
 0x6e9   :  { %5283 = vmatprep.subr.bf16.mxu0 %v6105_v22  ;;  %5315 = vmatprep.subr.bf16.mxu1 %v6120_v39 }
 0x6ec   :  { %5285 = vmatpush1.bf16.msra.mxu0 %v7748_v12  ;;  %5317 = vmatpush1.bf16.msra.mxu1 %v7749_v44 }
 0x6ed   :  { %5287 = vmatprep.subr.bf16.mxu0 %v7750_v32  ;;  %5319 = vmatprep.subr.bf16.mxu1 %v7751_v58 }
 0x6f0   :  { %5289 = vmatpush1.bf16.msra.mxu0 %v7752_v10  ;;  %5321 = vmatpush1.bf16.msra.mxu1 %v7753_v7 }
 0x6f1   :  { %5291 = vmatprep.subr.bf16.mxu0 %v7754_v31  ;;  %5323 = vmatprep.subr.bf16.mxu1 %v7755_v46  ;;  %v7766_v46 = vld [vmem:[#allocation37_spill] sm:$0xff] }
 0x6f4   :  { %5293 = vmatpush1.bf16.msra.mxu0 %v7756_v34  ;;  %5325 = vmatpush1.bf16.msra.mxu1 %v7757_v23  ;;  %v7767_v34 = vld [vmem:[#allocation40_spill] sm:$0xff]  ;;  %v7768_v23 = vld [vmem:[#allocation39_spill] sm:$0xff] }
 0x6f5   :  { %5295 = vmatprep.subr.bf16.mxu0 %v7758_v36  ;;  %5327 = vmatprep.subr.bf16.mxu1 %v7759_v25  ;;  %v7769_v36 = vld [vmem:[#allocation42_spill] sm:$0xff]  ;;  %v7770_v25 = vld [vmem:[#allocation41_spill] sm:$0xff] }
 0x6f8   :  { %5297 = vmatpush1.bf16.msra.mxu0 %v7760_v60  ;;  %5329 = vmatpush1.bf16.msra.mxu1 %v7761_v48  ;;  %v7771_v60 = vld [vmem:[#allocation43_spill] sm:$0xff]  ;;  %v7804_v48 = vld [vmem:[#allocation106_spill] sm:$0xff] }
 0x6f9   :  { %5299 = vmatprep.subr.bf16.mxu0 %v7762_v52  ;;  %5331 = vmatprep.subr.bf16.mxu1 %v7763_v63  ;;  %v7772_v52 = vld [vmem:[#allocation44_spill] sm:$0xff]  ;;  %v7773_v63 = vld [vmem:[#allocation46_spill] sm:$0xff] }
 0x6fc   :  { %5301 = vmatpush1.bf16.msra.mxu0 %v7764_v42  ;;  %5333 = vmatpush1.bf16.msra.mxu1 %v7765_v57  ;;  %v7774_v42 = vld [vmem:[#allocation45_spill] sm:$0xff]  ;;  %v7775_v57 = vld [vmem:[#allocation47_spill] sm:$0xff] }
 0x6fd   :  { %5303 = vmatprep.subr.bf16.mxu0 %v7766_v46  ;;  %5335 = vmatprep.subr.bf16.mxu1 %v7767_v34  ;;  %v7785_v34 = vld [vmem:[#allocation58_spill] sm:$0xff]  ;;  %v7786_v46 = vld [vmem:[#allocation57_spill] sm:$0xff] }
 0x700   :  { %5305 = vmatpush1.bf16.msra.mxu0 %v7768_v23  ;;  %5337 = vmatpush1.bf16.msra.mxu1 %v7769_v36  ;;  %v7776_v23 = vld [vmem:[#allocation48_spill] sm:$0xff]  ;;  %v7777_v36 = vld [vmem:[#allocation50_spill] sm:$0xff] }
 0x701   :  { %5339 = vmatprep.subr.bf16.mxu0 %v7770_v25  ;;  %5371 = vmatprep.subr.bf16.mxu1 %v7771_v60  ;;  %v7778_v25 = vld [vmem:[#allocation49_spill] sm:$0xff]  ;;  %v7779_v60 = vld [vmem:[#allocation51_spill] sm:$0xff] }
 0x703   :  { %3221 = vmatmul.mubr.f32.vlgmr.msra.gmra.mrb[24].mxu0 %v2844_v29  ;;  %3292 = vmatmul.mubr.f32.vlgmr.msra.gmra.mrb[24].mxu1 %v2844_v29  ;;  %v7780_v29 = vld [vmem:[#allocation52_spill] sm:$0xff] }
 0x704   :  { %5341 = vmatpush1.bf16.msra.mxu0 %v7772_v52  ;;  %5373 = vmatpush1.bf16.msra.mxu1 %v7773_v63  ;;  %v7781_v52 = vld [vmem:[#allocation54_spill] sm:$0xff]  ;;  %v7782_v63 = vld [vmem:[#allocation53_spill] sm:$0xff] }
 0x705   :  { %5343 = vmatprep.subr.bf16.mxu0 %v7774_v42  ;;  %5375 = vmatprep.subr.bf16.mxu1 %v7775_v57  ;;  %v7783_v42 = vld [vmem:[#allocation55_spill] sm:$0xff]  ;;  %v7784_v57 = vld [vmem:[#allocation56_spill] sm:$0xff] }
 0x706   :  { %3384 = vmatprep.mubr.f32.mxu0 %v7461_v47  ;;  %3455 = vmatprep.mubr.f32.mxu1 %v7461_v47 }
 0x708   :  { %5345 = vmatpush1.bf16.msra.mxu0 %v7776_v23  ;;  %5377 = vmatpush1.bf16.msra.mxu1 %v7777_v36  ;;  %v7787_v23 = vld [vmem:[#allocation59_spill] sm:$0xff]  ;;  %v7788_v36 = vld [vmem:[#allocation60_spill] sm:$0xff] }
 0x709   :  { %5347 = vmatprep.subr.bf16.mxu0 %v7778_v25  ;;  %5379 = vmatprep.subr.bf16.mxu1 %v7779_v60  ;;  %v7789_v25 = vld [vmem:[#allocation62_spill] sm:$0xff]  ;;  %v7790_v60 = vld [vmem:[#allocation61_spill] sm:$0xff] }
 0x70c   :  { %5349 = vmatpush1.bf16.msra.mxu0 %v7780_v29  ;;  %5381 = vmatpush1.bf16.msra.mxu1 %v7781_v52  ;;  %v7791_v29 = vld [vmem:[#allocation63_spill] sm:$0xff]  ;;  %v7792_v52 = vld [vmem:[#allocation64_spill] sm:$0xff] }
 0x70d   :  { %5351 = vmatprep.subr.bf16.mxu0 %v7782_v63  ;;  %5383 = vmatprep.subr.bf16.mxu1 %v7783_v42  ;;  %v7793_v63 = vld [vmem:[#allocation66_spill] sm:$0xff]  ;;  %v7794_v42 = vld [vmem:[#allocation65_spill] sm:$0xff] }
 0x710   :  { %5353 = vmatpush1.bf16.msra.mxu0 %v7784_v57  ;;  %5385 = vmatpush1.bf16.msra.mxu1 %v7785_v34  ;;  %v7795_v57 = vld [vmem:[#allocation67_spill] sm:$0xff]  ;;  %v7796_v34 = vld [vmem:[#allocation68_spill] sm:$0xff] }
 0x711   :  { %5355 = vmatprep.subr.bf16.mxu0 %v7786_v46  ;;  %5387 = vmatprep.subr.bf16.mxu1 %v7787_v23  ;;  %v7797_v46 = vld [vmem:[#allocation69_spill] sm:$0xff]  ;;  %v7798_v23 = vld [vmem:[#allocation70_spill] sm:$0xff] }
 0x714   :  { %5357 = vmatpush1.bf16.msra.mxu0 %v7788_v36  ;;  %5389 = vmatpush1.bf16.msra.mxu1 %v7789_v25  ;;  %v7799_v36 = vld [vmem:[#allocation71_spill] sm:$0xff]  ;;  %v7800_v25 = vld [vmem:[#allocation72_spill] sm:$0xff] }
 0x715   :  { %5359 = vmatprep.subr.bf16.mxu0 %v7790_v60  ;;  %5391 = vmatprep.subr.bf16.mxu1 %v7791_v29  ;;  %v7801_v60 = vld [vmem:[#allocation73_spill] sm:$0xff]  ;;  %v7802_v29 = vld [vmem:[#allocation74_spill] sm:$0xff] }
 0x718   :  { %5361 = vmatpush1.bf16.msra.mxu0 %v7792_v52  ;;  %5393 = vmatpush1.bf16.msra.mxu1 %v7793_v63  ;;  %v7803_v52 = vld [vmem:[#allocation75_spill] sm:$0xff] }
 0x719   :  { %5363 = vmatprep.subr.bf16.mxu0 %v7794_v42  ;;  %5395 = vmatprep.subr.bf16.mxu1 %v7795_v57 }
 0x71c   :  { %5365 = vmatpush1.bf16.msra.mxu0 %v7796_v34  ;;  %5397 = vmatpush1.bf16.msra.mxu1 %v7797_v46 }
 0x71d   :  { %5367 = vmatprep.subr.bf16.mxu0 %v7798_v23  ;;  %5399 = vmatprep.subr.bf16.mxu1 %v7799_v36 }
 0x720   :  { %5369 = vmatpush1.bf16.msra.mxu0 %v7800_v25  ;;  %5401 = vmatpush1.bf16.msra.mxu1 %v7801_v60  ;;  %v7805_v60 = vld [vmem:[#allocation108_spill] sm:$0xff] }
 0x721   :  { %5403 = vmatprep.subr.bf16.mxu0 %v7802_v29  ;;  %5435 = vmatprep.subr.bf16.mxu1 %v7803_v52 }
 0x7b6   :  { %v3053_v63 = vpop.f32.mrb[22].mxu0  ;;  %v3124_v42 = vpop.f32.mrb[22].mxu1 }
 0x7b7   :  { %v3129_v57 = vadd.f32 %v3053_v63, %v7804_v48  ;;  %v3055_v31 = vpop.f32.mrb[23].mxu0  ;;  %v3126_v34 = vpop.f32.mrb[23].mxu1  ;;  %v3131_v36 = vadd.f32 %v3124_v42, %v7572_v49 }
 0x7b8   :  { %v3130_v46 = vadd.f32 %v3055_v31, %v6464_v0  ;;  %v3132_v25 = vadd.f32 %v3126_v34, %v7805_v60  ;;  %v3153_v34 = vld [vmem:[#allocation5 + $0xc8] sm:$0xff] }
 0x7b9   :  { %v3133_v7 = vmul.f32 0.5, %v3129_v57 }
 0x7ba   :  { %v3137_v23 = vmul.f32 0.5, %v3130_v46  ;;  %v3142_v29 = vmul.f32 0.5, %v3132_v25 }
 0x7bb   :  { %5808 = vtanh.f32 %v3133_v7 }
 0x7bc   :  { %5810 = vtanh.f32 %v3137_v23 }
 0x7bd   :  { %5812 = vtanh.f32 %v3131_v36  ;;  %v3152_v36 = vld [vmem:[#allocation5 + $0xc0] sm:$0xff] }
 0x7be   :  { %5814 = vtanh.f32 %v3142_v29 }
 0x7c5   :  { %v5809_v10 = vpop.eup %5808 }
 0x7c6   :  { %v5811_v52 = vpop.eup %5810  ;;  %v3135_v58 = vmul.f32 0.5, %v5809_v10 }
 0x7c7   :  { %v3139_v32 = vmul.f32 0.5, %v5811_v52  ;;  %v5813_v48 = vpop.eup %5812 }
 0x7c8   :  { %v3136_v63 = vadd.f32 0.5, %v3135_v58  ;;  %v5815_v7 = vpop.eup %5814  ;;  %v3154_v58 = vld [vmem:[#allocation5 + $0xd0] sm:$0xff] }
 0x7c9   :  { %v3140_v44 = vadd.f32 0.5, %v3139_v32  ;;  %v3144_v23 = vmul.f32 0.5, %v5815_v7 }
 0x7ca   :  { %v3147_v12 = vmul.f32 %v5813_v48, %v3136_v63 }
 0x7cb   :  { %v3146_v31 = vmul.f32 %v3140_v44, %v6930_v15  ;;  %v3145_v29 = vadd.f32 0.5, %v3144_v23  ;;  %v3155_v44 = vld [vmem:[#allocation5 + $0xd8] sm:$0xff] }
 0x7cd   :  { %v7044_v46 = vadd.f32 %v3147_v12, %v3146_v31 }
 0x7cf   :  { %5816 = vtanh.f32 %v7044_v46 }
 0x7d6   :  { %v3222_v25 = vpop.f32.mrb[24].mxu0  ;;  %v3293_v42 = vpop.f32.mrb[24].mxu1 }
 0x7d7   :  { %v3298_v57 = vadd.f32 %v3222_v25, %v3152_v36  ;;  %v3224_v10 = vpop.f32.mrb[25].mxu0  ;;  %v3295_v52 = vpop.f32.mrb[25].mxu1  ;;  %v3300_v12 = vadd.f32 %v3293_v42, %v3154_v58 }
 0x7d8   :  { %v3299_v60 = vadd.f32 %v3224_v10, %v3153_v34  ;;  %v3301_v31 = vadd.f32 %v3295_v52, %v3155_v44  ;;  %v7818_v44 = vld [vmem:[#allocation31_spill] sm:$0xff] }
 0x7d9   :  { %v5817_v32 = vpop.eup %5816  ;;  %v3302_v48 = vmul.f32 0.5, %v3298_v57 }
 0x7da   :  { %v3150_v63 = vmul.f32 %v5817_v32, %v3145_v29  ;;  %v3306_v15 = vmul.f32 0.5, %v3299_v60  ;;  %v3311_v60 = vmul.f32 0.5, %v3301_v31  ;;  %v7819_v31 = vld [vmem:[#allocation34_spill] sm:$0xff] }
 0x7db   :  { %5818 = vtanh.f32 %v3302_v48 }
 0x7dc   :  { %5820 = vtanh.f32 %v3306_v15  ;;  %3385 = vmatmul.mubr.f32.vlgmr.msra.gmra.mrb[26].mxu0 %v3150_v63  ;;  %3456 = vmatmul.mubr.f32.vlgmr.msra.gmra.mrb[26].mxu1 %v3150_v63  ;;  %v7812_v15 = vld [vmem:[#allocation25_spill] sm:$0xff] }
 0x7dd   :  { %5405 = vmatpush1.bf16.msra.mxu0 %v7515_v56  ;;  %5437 = vmatpush1.bf16.msra.mxu1 %v7516_v2  ;;  %5822 = vtanh.f32 %v3300_v12  ;;  %v7817_v12 = vld [vmem:[#allocation32_spill] sm:$0xff] }
 0x7de   :  { %5407 = vmatprep.subr.bf16.mxu0 %v7517_v3  ;;  %5439 = vmatprep.subr.bf16.mxu1 %v7574_v21  ;;  %5824 = vtanh.f32 %v3311_v60  ;;  %v7820_v60 = vld [vmem:[#allocation33_spill] sm:$0xff] }
 0x7df   :  { %3526 = vmatprep.mubr.f32.mxu0 %v7461_v47  ;;  %3597 = vmatprep.mubr.f32.mxu1 %v7461_v47 }
 0x7e1   :  { %5409 = vmatpush1.bf16.msra.mxu0 %v7575_v50  ;;  %5441 = vmatpush1.bf16.msra.mxu1 %v7576_v62 }
 0x7e2   :  { %5411 = vmatprep.subr.bf16.mxu0 %v7577_v24  ;;  %5443 = vmatprep.subr.bf16.mxu1 %v7578_v59 }
 0x7e5   :  { %v5819_v7 = vpop.eup %5818  ;;  %5413 = vmatpush1.bf16.msra.mxu0 %v7632_v27  ;;  %5445 = vmatpush1.bf16.msra.mxu1 %v7633_v43 }
 0x7e6   :  { %v5821_v23 = vpop.eup %5820  ;;  %v3304_v36 = vmul.f32 0.5, %v5819_v7  ;;  %5415 = vmatprep.subr.bf16.mxu0 %v7634_v45  ;;  %5447 = vmatprep.subr.bf16.mxu1 %v7526_v37  ;;  %v7821_v7 = vld [vmem:[#allocation36_spill] sm:$0xff] }
 0x7e7   :  { %v3308_v34 = vmul.f32 0.5, %v5821_v23  ;;  %v5823_v42 = vpop.eup %5822  ;;  %v7822_v23 = vld [vmem:[#allocation35_spill] sm:$0xff] }
 0x7e8   :  { %v3305_v25 = vadd.f32 0.5, %v3304_v36  ;;  %v5825_v58 = vpop.eup %5824  ;;  %v7823_v36 = vld [vmem:[#allocation38_spill] sm:$0xff] }
 0x7e9   :  { %v3309_v57 = vadd.f32 0.5, %v3308_v34  ;;  %5417 = vmatpush1.bf16.msra.mxu0 %v7527_v40  ;;  %5449 = vmatpush1.bf16.msra.mxu1 %v7528_v14  ;;  %v7824_v34 = vld [vmem:[#allocation37_spill] sm:$0xff] }
 0x7ea   :  { %v3316_v10 = vmul.f32 %v5823_v42, %v3305_v25  ;;  %5419 = vmatprep.subr.bf16.mxu0 %v7582_v20  ;;  %5451 = vmatprep.subr.bf16.mxu1 %v7635_v51  ;;  %v7825_v25 = vld [vmem:[#allocation40_spill] sm:$0xff]  ;;  %v7826_v42 = vld [vmem:[#allocation39_spill] sm:$0xff] }
 0x7eb   :  { %v3315_v52 = vmul.f32 %v3309_v57, %v6952_v55  ;;  %v3313_v55 = vmul.f32 0.5, %v5825_v58  ;;  %v7827_v57 = vld [vmem:[#allocation42_spill] sm:$0xff]  ;;  %v7830_v58 = vld [vmem:[#allocation44_spill] sm:$0xff] }
 0x7ed   :  { %v7066_v29 = vadd.f32 %v3316_v10, %v3315_v52  ;;  %5421 = vmatpush1.bf16.msra.mxu0 %v7585_v61  ;;  %5453 = vmatpush1.bf16.msra.mxu1 %v7586_v53  ;;  %v3314_v32 = vadd.f32 0.5, %v3313_v55  ;;  %v7828_v10 = vld [vmem:[#allocation41_spill] sm:$0xff]  ;;  %v7829_v52 = vld [vmem:[#allocation43_spill] sm:$0xff]  ;;  %v7831_v55 = vld [vmem:[#allocation46_spill] sm:$0xff] }
 0x7ee   :  { %5423 = vmatprep.subr.bf16.mxu0 %v7587_v35  ;;  %5455 = vmatprep.subr.bf16.mxu1 %v7588_v4 }
 0x7ef   :  { %5826 = vtanh.f32 %v7066_v29 }
 0x7f1   :  { %5425 = vmatpush1.bf16.msra.mxu0 %v7589_v6  ;;  %5457 = vmatpush1.bf16.msra.mxu1 %v7590_v54 }
 0x7f2   :  { %5427 = vmatprep.subr.bf16.mxu0 %v7591_v1  ;;  %5459 = vmatprep.subr.bf16.mxu1 %v7539_v38 }
 0x7f5   :  { %5429 = vmatpush1.bf16.msra.mxu0 %v7540_v13  ;;  %5461 = vmatpush1.bf16.msra.mxu1 %v7541_v11 }
 0x7f6   :  { %5431 = vmatprep.subr.bf16.mxu0 %v7542_v17  ;;  %5463 = vmatprep.subr.bf16.mxu1 %v7543_v5 }
 0x7f9   :  { %v5827_v48 = vpop.eup %5826  ;;  %5433 = vmatpush1.bf16.msra.mxu0 %v7544_v28  ;;  %5465 = vmatpush1.bf16.msra.mxu1 %v7545_v33 }
 0x7fa   :  { %v3319_v63 = vmul.f32 %v5827_v48, %v3314_v32  ;;  %5467 = vmatprep.subr.bf16.mxu0 %v7546_v41  ;;  %5499 = vmatprep.subr.bf16.mxu1 %v7547_v19  ;;  %v7806_v41 = vld [vmem:[#allocation20_spill] sm:$0xff]  ;;  %v7811_v19 = vld [vmem:[#allocation26_spill] sm:$0xff]  ;;  %v7832_v32 = vld [vmem:[#allocation45_spill] sm:$0xff] }
 0x7fb   :  { %v7833_v48 = vld [vmem:[#allocation47_spill] sm:$0xff] }
 0x7fc   :  { %3527 = vmatmul.mubr.f32.vlgmr.msra.gmra.mrb[26].mxu0 %v3319_v63  ;;  %3598 = vmatmul.mubr.f32.vlgmr.msra.gmra.mrb[26].mxu1 %v3319_v63 }
 0x7fd   :  { %5469 = vmatpush1.bf16.msra.mxu0 %v6092_v8  ;;  %5501 = vmatpush1.bf16.msra.mxu1 %v6102_v18  ;;  %v7807_v8 = vld [vmem:[#allocation22_spill] sm:$0xff]  ;;  %v7808_v18 = vld [vmem:[#allocation21_spill] sm:$0xff] }
 0x7fe   :  { %5471 = vmatprep.subr.bf16.mxu0 %v6094_v9  ;;  %5503 = vmatprep.subr.bf16.mxu1 %v6108_v26  ;;  %v7809_v9 = vld [vmem:[#allocation24_spill] sm:$0xff]  ;;  %v7810_v26 = vld [vmem:[#allocation23_spill] sm:$0xff] }
 0x7ff   :  { %3695 = vmatprep.mubr.f32.mxu0 %v7461_v47  ;;  %3766 = vmatprep.mubr.f32.mxu1 %v7461_v47 }
 0x801   :  { %5473 = vmatpush1.bf16.msra.mxu0 %v6098_v16  ;;  %5505 = vmatpush1.bf16.msra.mxu1 %v6111_v30  ;;  %v7813_v16 = vld [vmem:[#allocation28_spill] sm:$0xff]  ;;  %v7814_v30 = vld [vmem:[#allocation27_spill] sm:$0xff] }
 0x802   :  { %5475 = vmatprep.subr.bf16.mxu0 %v6105_v22  ;;  %5507 = vmatprep.subr.bf16.mxu1 %v6120_v39  ;;  %v7815_v22 = vld [vmem:[#allocation30_spill] sm:$0xff]  ;;  %v7816_v39 = vld [vmem:[#allocation29_spill] sm:$0xff] }
 0x805   :  { %5477 = vmatpush1.bf16.msra.mxu0 %v7806_v41  ;;  %5509 = vmatpush1.bf16.msra.mxu1 %v7807_v8  ;;  %v7834_v41 = vld [vmem:[#allocation48_spill] sm:$0xff]  ;;  %v7835_v8 = vld [vmem:[#allocation50_spill] sm:$0xff] }
 0x806   :  { %5479 = vmatprep.subr.bf16.mxu0 %v7808_v18  ;;  %5511 = vmatprep.subr.bf16.mxu1 %v7809_v9  ;;  %v7836_v18 = vld [vmem:[#allocation49_spill] sm:$0xff]  ;;  %v7837_v9 = vld [vmem:[#allocation51_spill] sm:$0xff] }
 0x809   :  { %5481 = vmatpush1.bf16.msra.mxu0 %v7810_v26  ;;  %5513 = vmatpush1.bf16.msra.mxu1 %v7811_v19  ;;  %v7839_v26 = vld [vmem:[#allocation54_spill] sm:$0xff]  ;;  %v7840_v19 = vld [vmem:[#allocation53_spill] sm:$0xff] }
 0x80a   :  { %5483 = vmatprep.subr.bf16.mxu0 %v7812_v15  ;;  %5515 = vmatprep.subr.bf16.mxu1 %v7813_v16  ;;  %v7841_v15 = vld [vmem:[#allocation55_spill] sm:$0xff]  ;;  %v7842_v16 = vld [vmem:[#allocation56_spill] sm:$0xff] }
 0x80d   :  { %5485 = vmatpush1.bf16.msra.mxu0 %v7814_v30  ;;  %5517 = vmatpush1.bf16.msra.mxu1 %v7815_v22  ;;  %v7843_v30 = vld [vmem:[#allocation58_spill] sm:$0xff]  ;;  %v7844_v22 = vld [vmem:[#allocation57_spill] sm:$0xff] }
 0x80e   :  { %5487 = vmatprep.subr.bf16.mxu0 %v7816_v39  ;;  %5519 = vmatprep.subr.bf16.mxu1 %v7817_v12  ;;  %v7845_v39 = vld [vmem:[#allocation59_spill] sm:$0xff]  ;;  %v7846_v12 = vld [vmem:[#allocation60_spill] sm:$0xff] }
 0x811   :  { %5489 = vmatpush1.bf16.msra.mxu0 %v7818_v44  ;;  %5521 = vmatpush1.bf16.msra.mxu1 %v7819_v31  ;;  %v7847_v44 = vld [vmem:[#allocation62_spill] sm:$0xff]  ;;  %v7848_v31 = vld [vmem:[#allocation61_spill] sm:$0xff] }
 0x812   :  { %5491 = vmatprep.subr.bf16.mxu0 %v7820_v60  ;;  %5523 = vmatprep.subr.bf16.mxu1 %v7821_v7  ;;  %v7849_v60 = vld [vmem:[#allocation63_spill] sm:$0xff]  ;;  %v7850_v7 = vld [vmem:[#allocation64_spill] sm:$0xff] }
 0x815   :  { %5493 = vmatpush1.bf16.msra.mxu0 %v7822_v23  ;;  %5525 = vmatpush1.bf16.msra.mxu1 %v7823_v36  ;;  %v7851_v23 = vld [vmem:[#allocation66_spill] sm:$0xff]  ;;  %v7852_v36 = vld [vmem:[#allocation65_spill] sm:$0xff] }
 0x816   :  { %5495 = vmatprep.subr.bf16.mxu0 %v7824_v34  ;;  %5527 = vmatprep.subr.bf16.mxu1 %v7825_v25  ;;  %v7853_v34 = vld [vmem:[#allocation67_spill] sm:$0xff]  ;;  %v7854_v25 = vld [vmem:[#allocation68_spill] sm:$0xff] }
 0x819   :  { %5497 = vmatpush1.bf16.msra.mxu0 %v7826_v42  ;;  %5529 = vmatpush1.bf16.msra.mxu1 %v7827_v57  ;;  %v7855_v42 = vld [vmem:[#allocation69_spill] sm:$0xff]  ;;  %v7856_v57 = vld [vmem:[#allocation70_spill] sm:$0xff] }
 0x81a   :  { %5531 = vmatprep.subr.bf16.mxu0 %v7828_v10  ;;  %5563 = vmatprep.subr.bf16.mxu1 %v7829_v52  ;;  %v7857_v10 = vld [vmem:[#allocation71_spill] sm:$0xff]  ;;  %v7858_v52 = vld [vmem:[#allocation72_spill] sm:$0xff] }
 0x81c   :  { %3696 = vmatmul.mubr.f32.vlgmr.msra.gmra.mrb[28].mxu0 %v3319_v63  ;;  %3767 = vmatmul.mubr.f32.vlgmr.msra.gmra.mrb[28].mxu1 %v3319_v63  ;;  %v7838_v63 = vld [vmem:[#allocation52_spill] sm:$0xff] }
 0x81d   :  { %5533 = vmatpush1.bf16.msra.mxu0 %v7830_v58  ;;  %5565 = vmatpush1.bf16.msra.mxu1 %v7831_v55  ;;  %v7859_v58 = vld [vmem:[#allocation73_spill] sm:$0xff]  ;;  %v7860_v55 = vld [vmem:[#allocation74_spill] sm:$0xff] }
 0x81e   :  { %5535 = vmatprep.subr.bf16.mxu0 %v7832_v32  ;;  %5567 = vmatprep.subr.bf16.mxu1 %v7833_v48  ;;  %v7861_v32 = vld [vmem:[#allocation75_spill] sm:$0xff] }
 0x81f   :  { %3859 = vmatprep.mubr.f32.mxu0 %v7461_v47  ;;  %3930 = vmatprep.mubr.f32.mxu1 %v7461_v47 }
 0x821   :  { %5537 = vmatpush1.bf16.msra.mxu0 %v7834_v41  ;;  %5569 = vmatpush1.bf16.msra.mxu1 %v7835_v8  ;;  %v7862_v8 = vld [vmem:[#allocation106_spill] sm:$0xff] }
 0x822   :  { %5539 = vmatprep.subr.bf16.mxu0 %v7836_v18  ;;  %5571 = vmatprep.subr.bf16.mxu1 %v7837_v9 }
 0x825   :  { %5541 = vmatpush1.bf16.msra.mxu0 %v7838_v63  ;;  %5573 = vmatpush1.bf16.msra.mxu1 %v7839_v26 }
 0x826   :  { %5543 = vmatprep.subr.bf16.mxu0 %v7840_v19  ;;  %5575 = vmatprep.subr.bf16.mxu1 %v7841_v15 }
 0x829   :  { %5545 = vmatpush1.bf16.msra.mxu0 %v7842_v16  ;;  %5577 = vmatpush1.bf16.msra.mxu1 %v7843_v30  ;;  %v7863_v30 = vld [vmem:[#allocation108_spill] sm:$0xff] }
 0x82a   :  { %5547 = vmatprep.subr.bf16.mxu0 %v7844_v22  ;;  %5579 = vmatprep.subr.bf16.mxu1 %v7845_v39 }
 0x82d   :  { %5549 = vmatpush1.bf16.msra.mxu0 %v7846_v12  ;;  %5581 = vmatpush1.bf16.msra.mxu1 %v7847_v44 }
 0x82e   :  { %5551 = vmatprep.subr.bf16.mxu0 %v7848_v31  ;;  %5583 = vmatprep.subr.bf16.mxu1 %v7849_v60 }
 0x831   :  { %5553 = vmatpush1.bf16.msra.mxu0 %v7850_v7  ;;  %5585 = vmatpush1.bf16.msra.mxu1 %v7851_v23 }
 0x832   :  { %5555 = vmatprep.subr.bf16.mxu0 %v7852_v36  ;;  %5587 = vmatprep.subr.bf16.mxu1 %v7853_v34 }
 0x835   :  { %5557 = vmatpush1.bf16.msra.mxu0 %v7854_v25  ;;  %5589 = vmatpush1.bf16.msra.mxu1 %v7855_v42 }
 0x836   :  { %5559 = vmatprep.subr.bf16.mxu0 %v7856_v57  ;;  %5591 = vmatprep.subr.bf16.mxu1 %v7857_v10 }
 0x839   :  { %5561 = vmatpush1.bf16.msra.mxu0 %v7858_v52  ;;  %5593 = vmatpush1.bf16.msra.mxu1 %v7859_v58  ;;  %v3627_v52 = vld [vmem:[#allocation5 + $0xe0] sm:$0xff]  ;;  %v3628_v58 = vld [vmem:[#allocation5 + $0xe8] sm:$0xff] }
 0x83a   :  { %5595 = vmatprep.subr.bf16.mxu0 %v7860_v55  ;;  %5627 = vmatprep.subr.bf16.mxu1 %v7861_v32 }
 0x8cf   :  { %v3528_v48 = vpop.f32.mrb[26].mxu0  ;;  %v3599_v41 = vpop.f32.mrb[26].mxu1 }
 0x8d0   :  { %v3604_v18 = vadd.f32 %v3528_v48, %v7862_v8  ;;  %v3530_v9 = vpop.f32.mrb[27].mxu0  ;;  %v3601_v63 = vpop.f32.mrb[27].mxu1  ;;  %v3606_v16 = vadd.f32 %v3599_v41, %v7572_v49 }
 0x8d1   :  { %v3605_v26 = vadd.f32 %v3530_v9, %v6464_v0  ;;  %v3607_v22 = vadd.f32 %v3601_v63, %v7863_v30  ;;  %v3629_v63 = vld [vmem:[#allocation5 + $0xf0] sm:$0xff] }
 0x8d2   :  { %v3608_v19 = vmul.f32 0.5, %v3604_v18 }
 0x8d3   :  { %v3612_v15 = vmul.f32 0.5, %v3605_v26  ;;  %v3617_v39 = vmul.f32 0.5, %v3607_v22 }
 0x8d4   :  { %5828 = vtanh.f32 %v3608_v19 }
 0x8d5   :  { %5830 = vtanh.f32 %v3612_v15 }
 0x8d6   :  { %5832 = vtanh.f32 %v3606_v16 }
 0x8d7   :  { %5834 = vtanh.f32 %v3617_v39  ;;  %v3630_v39 = vld [vmem:[#allocation5 + $0xf8] sm:$0xff] }
 0x8de   :  { %v5829_v12 = vpop.eup %5828 }
 0x8df   :  { %v5831_v44 = vpop.eup %5830  ;;  %v3610_v31 = vmul.f32 0.5, %v5829_v12 }
 0x8e0   :  { %v3614_v60 = vmul.f32 0.5, %v5831_v44  ;;  %v5833_v23 = vpop.eup %5832 }
 0x8e1   :  { %v3611_v7 = vadd.f32 0.5, %v3610_v31  ;;  %v5835_v57 = vpop.eup %5834 }
 0x8e2   :  { %v3615_v36 = vadd.f32 0.5, %v3614_v60  ;;  %v3619_v10 = vmul.f32 0.5, %v5835_v57 }
 0x8e3   :  { %v3622_v34 = vmul.f32 %v5833_v23, %v3611_v7 }
 0x8e4   :  { %v3621_v25 = vmul.f32 %v3615_v36, %v7044_v46  ;;  %v3620_v9 = vadd.f32 0.5, %v3619_v10 }
 0x8e6   :  { %v7158_v42 = vadd.f32 %v3622_v34, %v3621_v25 }
 0x8e8   :  { %5836 = vtanh.f32 %v7158_v42 }
 0x8ef   :  { %v3697_v55 = vpop.f32.mrb[28].mxu0  ;;  %v3768_v32 = vpop.f32.mrb[28].mxu1 }
 0x8f0   :  { %v3773_v48 = vadd.f32 %v3697_v55, %v3627_v52  ;;  %v3699_v41 = vpop.f32.mrb[29].mxu0  ;;  %v3770_v18 = vpop.f32.mrb[29].mxu1  ;;  %v3775_v22 = vadd.f32 %v3768_v32, %v3629_v63 }
 0x8f1   :  { %v3774_v26 = vadd.f32 %v3699_v41, %v3628_v58  ;;  %v3776_v12 = vadd.f32 %v3770_v18, %v3630_v39 }
 0x8f2   :  { %v5837_v19 = vpop.eup %5836  ;;  %v3777_v15 = vmul.f32 0.5, %v3773_v48 }
 0x8f3   :  { %v3625_v16 = vmul.f32 %v5837_v19, %v3620_v9  ;;  %v3781_v46 = vmul.f32 0.5, %v3774_v26 }
 0x8f4   :  { %5838 = vtanh.f32 %v3777_v15 }
 0x8f5   :  { %5840 = vtanh.f32 %v3781_v46  ;;  %3860 = vmatmul.mubr.f32.vlgmr.msra.gmra.mrb[30].mxu0 %v3625_v16  ;;  %3931 = vmatmul.mubr.f32.vlgmr.msra.gmra.mrb[30].mxu1 %v3625_v16 }
 0x8f6   :  { %5597 = vmatpush1.bf16.msra.mxu0 %v7515_v56  ;;  %5629 = vmatpush1.bf16.msra.mxu1 %v7516_v2  ;;  %5842 = vtanh.f32 %v3775_v22  ;;  %v3786_v56 = vmul.f32 0.5, %v3776_v12 }
 0x8f7   :  { %5599 = vmatprep.subr.bf16.mxu0 %v7517_v3  ;;  %5631 = vmatprep.subr.bf16.mxu1 %v7574_v21 }
 0x8f8   :  { %4001 = vmatprep.mubr.f32.mxu0 %v7461_v47  ;;  %4072 = vmatprep.mubr.f32.mxu1 %v7461_v47  ;;  %5844 = vtanh.f32 %v3786_v56 }
 0x8fa   :  { %5601 = vmatpush1.bf16.msra.mxu0 %v7575_v50  ;;  %5633 = vmatpush1.bf16.msra.mxu1 %v7576_v62 }
 0x8fb   :  { %5603 = vmatprep.subr.bf16.mxu0 %v7577_v24  ;;  %5635 = vmatprep.subr.bf16.mxu1 %v7578_v59 }
 0x8fe   :  { %v5839_v2 = vpop.eup %5838  ;;  %5605 = vmatpush1.bf16.msra.mxu0 %v7632_v27  ;;  %5637 = vmatpush1.bf16.msra.mxu1 %v7633_v43 }
 0x8ff   :  { %v5841_v3 = vpop.eup %5840  ;;  %v3779_v21 = vmul.f32 0.5, %v5839_v2  ;;  %5607 = vmatprep.subr.bf16.mxu0 %v7634_v45  ;;  %5639 = vmatprep.subr.bf16.mxu1 %v7526_v37 }
 0x900   :  { %v3783_v47 = vmul.f32 0.5, %v5841_v3  ;;  %v5843_v62 = vpop.eup %5842 }
 0x901   :  { %v3780_v50 = vadd.f32 0.5, %v3779_v21 }
 0x902   :  { %v3784_v44 = vadd.f32 0.5, %v3783_v47  ;;  %5609 = vmatpush1.bf16.msra.mxu0 %v7527_v40  ;;  %5641 = vmatpush1.bf16.msra.mxu1 %v7528_v14  ;;  %v5845_v40 = vpop.eup %5844 }
 0x903   :  { %v3791_v24 = vmul.f32 %v5843_v62, %v3780_v50  ;;  %5611 = vmatprep.subr.bf16.mxu0 %v7582_v20  ;;  %5643 = vmatprep.subr.bf16.mxu1 %v7635_v51  ;;  %v3788_v14 = vmul.f32 0.5, %v5845_v40 }
 0x904   :  { %v3790_v59 = vmul.f32 %v3784_v44, %v7066_v29 }
 0x905   :  { %v3789_v37 = vadd.f32 0.5, %v3788_v14 }
 0x906   :  { %v3792_v27 = vadd.f32 %v3791_v24, %v3790_v59  ;;  %5613 = vmatpush1.bf16.msra.mxu0 %v7585_v61  ;;  %5645 = vmatpush1.bf16.msra.mxu1 %v7586_v53 }
 0x907   :  { %5615 = vmatprep.subr.bf16.mxu0 %v7587_v35  ;;  %5647 = vmatprep.subr.bf16.mxu1 %v7588_v4 }
 0x908   :  { %5846 = vtanh.f32 %v3792_v27 }
 0x90a   :  { %5617 = vmatpush1.bf16.msra.mxu0 %v7589_v6  ;;  %5649 = vmatpush1.bf16.msra.mxu1 %v7590_v54 }
 0x90b   :  { %5619 = vmatprep.subr.bf16.mxu0 %v7591_v1  ;;  %5651 = vmatprep.subr.bf16.mxu1 %v7539_v38 }
 0x90e   :  { %5621 = vmatpush1.bf16.msra.mxu0 %v7540_v13  ;;  %5653 = vmatpush1.bf16.msra.mxu1 %v7541_v11 }
 0x90f   :  { %5623 = vmatprep.subr.bf16.mxu0 %v7542_v17  ;;  %5655 = vmatprep.subr.bf16.mxu1 %v7543_v5 }
 0x912   :  { %v5847_v61 = vpop.eup %5846  ;;  %5625 = vmatpush1.bf16.msra.mxu0 %v7544_v28  ;;  %5657 = vmatpush1.bf16.msra.mxu1 %v7545_v33 }
 0x913   :  { %v3794_v20 = vmul.f32 %v5847_v61, %v3789_v37 }
 0x915   :  { %4002 = vmatmul.mubr.f32.vlgmr.msra.gmra.mrb[30].mxu0 %v3794_v20  ;;  %4073 = vmatmul.mubr.f32.vlgmr.msra.gmra.mrb[30].mxu1 %v3794_v20 }
 0x9e8   :  { %v4003_v1 = vpop.f32.mrb[30].mxu0  ;;  %v4074_v38 = vpop.f32.mrb[30].mxu1 }
 0x9e9   :  { %v4079_v53 = vadd.f32 %v4003_v1, %v7862_v8  ;;  %v4005_v13 = vpop.f32.mrb[31].mxu0  ;;  %v4076_v35 = vpop.f32.mrb[31].mxu1  ;;  %v4081_v5 = vadd.f32 %v4074_v38, %v7572_v49 }
 0x9ea   :  { %v4080_v11 = vadd.f32 %v4005_v13, %v6464_v0  ;;  %v4082_v28 = vadd.f32 %v4076_v35, %v7863_v30 }
 0x9eb   :  { %v4083_v17 = vmul.f32 0.5, %v4079_v53 }
 0x9ec   :  { %v4087_v4 = vmul.f32 0.5, %v4080_v11  ;;  %v4092_v33 = vmul.f32 0.5, %v4082_v28 }
 0x9ed   :  { %5848 = vtanh.f32 %v4083_v17 }
 0x9ee   :  { %5850 = vtanh.f32 %v4087_v4 }
 0x9ef   :  { %5852 = vtanh.f32 %v4081_v5 }
 0x9f0   :  { %5854 = vtanh.f32 %v4092_v33 }
 0x9f7   :  { %v5849_v6 = vpop.eup %5848 }
 0x9f8   :  { %v5851_v54 = vpop.eup %5850  ;;  %v4085_v43 = vmul.f32 0.5, %v5849_v6 }
 0x9f9   :  { %v4089_v45 = vmul.f32 0.5, %v5851_v54  ;;  %v5853_v29 = vpop.eup %5852 }
 0x9fa   :  { %v4086_v51 = vadd.f32 0.5, %v4085_v43  ;;  %v5855_v7 = vpop.eup %5854 }
 0x9fb   :  { %v4090_v8 = vadd.f32 0.5, %v4089_v45  ;;  %v4094_v49 = vmul.f32 0.5, %v5855_v7 }
 0x9fc   :  { %v4097_v31 = vmul.f32 %v5853_v29, %v4086_v51 }
 0x9fd   :  { %v4096_v0 = vmul.f32 %v4090_v8, %v7158_v42  ;;  %v4095_v23 = vadd.f32 0.5, %v4094_v49 }
 0x9ff   :  { %v4098_v60 = vadd.f32 %v4097_v31, %v4096_v0 }
 0xa01   :  { %5856 = vtanh.f32 %v4098_v60 }
 0xa0b   :  { %v5857_v30 = vpop.eup %5856 }
 0xa0c   :  { %v4100_v36 = vmul.f32 %v5857_v30, %v4095_v23 }
 0xa0e   :  { %4104 = vst [vmem:[#allocation13] sm:$0xff] %v4100_v36 }
 0xa0f   :  { %5957 = shalt.err (!%p5954_p8)
}
 0xa10   :  { %s5958_s19 = scalar_lea.hbm %s7216_s5, 128 }
 0xa11   :  { %p5959_p9 = scmp.ne.s32.totalorder %s7216_s5, %s5958_s19  ;;  %p5962_p10 = scmp.lt.u32.totalorder %s5958_s19, %s7216_s5 }
 0xa13   :  { %p5964_p11 = pnand %p5962_p10, %p5959_p9 }
 0xa15   :  { %5967 = shalt.err (!%p5964_p11)
}
 0xa16   :  { %4114 = dma.vmem_to_hbm [thread:$0]  %s4112_s6, 128, %s7216_s5, [#allocation7]  }
 0xa17   :  { %5974 = dma.done.wait [#allocation7], 128  }
 0xa18   :  { %5975 = vsyncadd [#allocation7], 4294967168 }
 0xa19   :  { %4118 = vsyncpa [#allocation6], 1 }
 0xa1a   :  { %4119 = vsyncpa [#allocation9], 1 }
 0xa1b   :  { %4120 = vsyncpa [#allocation12], 1 }
 0xa1c   :  { %4121 = vsyncpa [#allocation7], 1 }

</bundles_post_ra>
